<compile_context>
chip_gen: v6e
topology: v6e:2x2x1
jax: 0.10.0
libtpu: 0.0.40
codegen_flags: <defaults>
</compile_context>

<pallas_src>
import numpy as np
import jax
import jax.numpy as jnp
from jax import lax
from jax.experimental import pallas as pl
from jax.experimental.pallas import tpu as pltpu

# ---------------- hyperparameters (GraphBlock.__init__ args) ----------------
B        = 2      # batch
SEQ_LEN  = 8      # seq_len (L)  -- also end_conv output channels (T)
D_MODEL  = 32     # d_model (D)
C_OUT    = 16     # c_out   (V)  -- number of graph nodes
NODE_DIM = 10     # node_dim
CONV_CH  = 8      # conv_channel (CC)
SKIP_CH  = 8      # skip_channel (SC)
GDEP     = 2      # gcn_depth
ALPHA    = 0.05   # propalpha
K        = D_MODEL - C_OUT + 1     # start_conv kernel height (along d_model)
LN_EPS   = 1e-5

BL = B * SEQ_LEN                   # (batch, time) lanes per channel block = 16
HP = jax.lax.Precision.HIGHEST

# ---- small-parameter slab layout (all row offsets multiples of 8) ----
ROW_NV1, ROW_NV2 = 0, 16
ROW_BST, ROW_BMLP, ROW_BEND = 32, 40, 48
ROW_BLIN, ROW_GAMMA, ROW_BETA = 56, 64, 72
SLAB_ROWS, SLAB_LANES = 80, 128


# ------------------------------ Pallas kernel -------------------------------
def graph_block_kernel(x_ref, wband_ref, wmlp_ref, wend_ref, wlin_ref,
                       slab_ref, out_ref):
    L, D, V, CC, SC, G, Bn, T = SEQ_LEN, D_MODEL, C_OUT, CONV_CH, SKIP_CH, GDEP, B, SEQ_LEN
    f32 = jnp.float32

    # --- unpack the small-parameter slab (static VMEM slices, no extra DMAs) ---
    nv1   = slab_ref[ROW_NV1:ROW_NV1 + V, 0:NODE_DIM]        # (V, node_dim)
    nv2   = slab_ref[ROW_NV2:ROW_NV2 + NODE_DIM, 0:V]        # (node_dim, V)
    bst   = slab_ref[ROW_BST:ROW_BST + 1, :]                 # (1, CC*B*L)
    bmlp  = slab_ref[ROW_BMLP:ROW_BMLP + 1, :]               # (1, SC*B*L)
    bend  = slab_ref[ROW_BEND:ROW_BEND + 1, 0:Bn * T]        # (1, B*T)
    blin  = slab_ref[ROW_BLIN:ROW_BLIN + 1, 0:D]             # (1, D)
    gamma = slab_ref[ROW_GAMMA:ROW_GAMMA + 1, 0:D]           # (1, D)
    beta  = slab_ref[ROW_BETA:ROW_BETA + 1, 0:D]             # (1, D)

    # --- adaptive adjacency: adp = softmax(relu(nv1 @ nv2), dim=1); self-loops; row-normalize ---
    s = jnp.dot(nv1, nv2, preferred_element_type=f32, precision=HP)          # (V, V)
    s = jnp.maximum(s, 0.0)
    s = s - jnp.max(s, axis=1, keepdims=True)
    e = jnp.exp(s)
    adp = e / jnp.sum(e, axis=1, keepdims=True)
    ri = lax.broadcasted_iota(jnp.int32, (V, V), 0)
    ci = lax.broadcasted_iota(jnp.int32, (V, V), 1)
    eye = jnp.where(ri == ci, 1.0, 0.0).astype(f32)
    adj = adp + eye
    a = adj / jnp.sum(adj, axis=1, keepdims=True)                            # (V, V)

    # --- start_conv: ONE MXU push for all channels and all batches ---
    # h0_raw[cc*V + v, b*L + l] = sum_d wst[cc, d-v] * x[b, l, d]
    x2 = x_ref[...]                                                          # (B*L, D)
    h0_raw = lax.dot_general(wband_ref[...], x2, (((1,), (1,)), ((), ())),
                             preferred_element_type=f32, precision=HP)       # (CC*V, B*L)
    # relayout rows=(cc,v) -> lanes=(cc,b,l): aligned static row slices + one lane concat
    h0 = jnp.concatenate([h0_raw[cc * V:(cc + 1) * V, :] for cc in range(CC)], axis=1)
    h0 = h0 + bst                                                            # (V, CC*B*L)

    # --- mixprop graph propagation: h_{i+1} = alpha*h0 + (1-alpha) * a @ h_i ---
    hs = [h0]
    h = h0
    for _ in range(G):
        h = ALPHA * h0 + (1.0 - ALPHA) * jnp.dot(a, h, preferred_element_type=f32,
                                                 precision=HP)
        hs.append(h)
    H = jnp.concatenate(hs, axis=1)                                          # (V, (G+1)*CC*B*L)

    # --- fused 1x1 conv (mlp) over all hops/channels: single block-diag dot ---
    g = jnp.dot(H, wmlp_ref[...], preferred_element_type=f32, precision=HP) + bmlp  # (V, SC*B*L)

    # --- exact (erf-based) GELU; erf via Abramowitz–Stegun 7.1.26 (|err| < 1.5e-7) ---
    z = g * 0.7071067811865476
    az = jnp.abs(z)
    t = 1.0 / (1.0 + 0.3275911 * az)
    poly = ((((1.061405429 * t - 1.453152027) * t + 1.421413741) * t
             - 0.284496736) * t + 0.254829592) * t
    erf_abs = 1.0 - poly * jnp.exp(-az * az)
    erf_z = jnp.where(z >= 0.0, erf_abs, -erf_abs)
    g = 0.5 * g * (1.0 + erf_z)                                              # (V, SC*B*L)

    # --- end_conv: single dot against batch-block-diagonal packed weight ---
    oe = jnp.dot(g, wend_ref[...], preferred_element_type=f32, precision=HP) + bend  # (V, B*T)

    # --- Linear(c_out -> d_model): lin[b*T+t, d] = sum_v oe[v, b*T+t] * Wlin[d, v] ---
    lin = jnp.dot(oe.T, wlin_ref[...], preferred_element_type=f32, precision=HP)     # (B*T, D)

    # --- residual + LayerNorm(d_model) ---
    y = x2 + lin + blin                                                      # (B*L, D)
    mu = jnp.sum(y, axis=-1, keepdims=True) * (1.0 / D)
    yc = y - mu
    var = jnp.sum(yc * yc, axis=-1, keepdims=True) * (1.0 / D)
    out = yc * lax.rsqrt(var + LN_EPS) * gamma + beta
    out_ref[...] = out.astype(out_ref.dtype)


# ------------------------------- wrapper -------------------------------------
def graph_block_forward(x, packed):
    wband2, wmlp_full, wend_pack, wlinT, slab = packed
    Bsz, L, D = x.shape
    x2 = x.reshape(Bsz * L, D)                     # free row-major collapse (no transpose)

    def const_spec(shape):
        nd = len(shape)
        return pl.BlockSpec(shape, lambda i, _nd=nd: (0,) * _nd)

    grid_spec = pltpu.PrefetchScalarGridSpec(
        num_scalar_prefetch=0,
        grid=(1,),                                 # whole batch fused: a single grid step
        in_specs=[
            const_spec(x2.shape),
            const_spec(wband2.shape),
            const_spec(wmlp_full.shape),
            const_spec(wend_pack.shape),
            const_spec(wlinT.shape),
            const_spec(slab.shape),
        ],
        out_specs=const_spec((Bsz * L, D)),
    )
    out2 = pl.pallas_call(
        graph_block_kernel,
        out_shape=jax.ShapeDtypeStruct((Bsz * L, D), jnp.float32),
        grid_spec=grid_spec,
        compiler_params=pltpu.CompilerParams(dimension_semantics=("arbitrary",)),
    )(x2, wband2, wmlp_full, wend_pack, wlinT, slab)
    return out2.reshape(Bsz, L, D)


# --------------------------- parameter handling -------------------------------
def init_params(key):
    ks = jax.random.split(key, 10)
    return dict(
        nv1  = jax.random.normal(ks[0], (C_OUT, NODE_DIM), jnp.float32),          # nodevec1
        nv2  = jax.random.normal(ks[1], (NODE_DIM, C_OUT), jnp.float32),          # nodevec2
        wst  = 0.1 * jax.random.normal(ks[2], (CONV_CH, K), jnp.float32),         # start_conv.weight[:,0,:,0]
        bst  = 0.1 * jax.random.normal(ks[3], (CONV_CH,), jnp.float32),           # start_conv.bias
        wmlp = 0.1 * jax.random.normal(ks[4], (SKIP_CH, (GDEP + 1) * CONV_CH), jnp.float32),  # mixprop.mlp
        bmlp = 0.1 * jax.random.normal(ks[5], (SKIP_CH,), jnp.float32),
        wend = 0.1 * jax.random.normal(ks[6], (SEQ_LEN, SKIP_CH, SEQ_LEN), jnp.float32),      # end_conv.weight[:,:,0,:]
        bend = 0.1 * jax.random.normal(ks[7], (SEQ_LEN,), jnp.float32),
        wlin = 0.1 * jax.random.normal(ks[8], (D_MODEL, C_OUT), jnp.float32),     # nn.Linear weight
        blin = 0.1 * jax.random.normal(ks[9], (D_MODEL,), jnp.float32),
        gamma = jnp.ones((D_MODEL,), jnp.float32),                                # LayerNorm (torch defaults)
        beta  = jnp.zeros((D_MODEL,), jnp.float32),
    )


def pack_params(p):
    f32 = jnp.float32
    L, D, V, CC, SC, G, Bn, T = SEQ_LEN, D_MODEL, C_OUT, CONV_CH, SKIP_CH, GDEP, B, SEQ_LEN

    # fused banded start-conv weight, rows = (cc, v): wband2[cc*V+v, d] = wst[cc, d-v]
    wband3 = jnp.zeros((CC, V, D), f32)
    for v in range(V):
        wband3 = wband3.at[:, v, v:v + K].set(p['wst'])
    wband2 = wband3.reshape(CC * V, D)                                       # (CC*V, D)

    # fused mixprop mlp weight: all hops stacked on K, block-diagonal over (b, l)
    eyeBL = jnp.eye(BL, dtype=f32)
    wmlp_full = jnp.concatenate(
        [jnp.kron(p['wmlp'][:, hop * CC:(hop + 1) * CC].T, eyeBL) for hop in range(G + 1)],
        axis=0)                                                              # ((G+1)*CC*B*L, SC*B*L)

    # end_conv weight, batch-block-diagonal: [(sc,b',l),(b,t)] = Wend[t,sc,l]*delta(b,b')
    wend_p = jnp.transpose(p['wend'], (1, 2, 0))                             # (SC, L, T)
    wend_pack = jnp.zeros((SC, Bn, L, Bn, T), f32)
    for b in range(Bn):
        wend_pack = wend_pack.at[:, b, :, b, :].set(wend_p)
    wend_pack = wend_pack.reshape(SC * Bn * L, Bn * T)                       # (SC*B*L, B*T)

    wlinT = p['wlin'].T                                                      # (V, D)

    # one lane-dense slab for nodevecs + all bias/scale vectors (single DMA stream)
    slab = jnp.zeros((SLAB_ROWS, SLAB_LANES), f32)
    slab = slab.at[ROW_NV1:ROW_NV1 + V, 0:NODE_DIM].set(p['nv1'])
    slab = slab.at[ROW_NV2:ROW_NV2 + NODE_DIM, 0:V].set(p['nv2'])
    slab = slab.at[ROW_BST, 0:CC * BL].set(jnp.repeat(p['bst'], BL))         # lane = cc*BL + b*L + l
    slab = slab.at[ROW_BMLP, 0:SC * BL].set(jnp.repeat(p['bmlp'], BL))       # lane = sc*BL + b*L + l
    slab = slab.at[ROW_BEND, 0:Bn * T].set(jnp.tile(p['bend'], Bn))          # lane = b*T + t
    slab = slab.at[ROW_BLIN, 0:D].set(p['blin'])
    slab = slab.at[ROW_GAMMA, 0:D].set(p['gamma'])
    slab = slab.at[ROW_BETA, 0:D].set(p['beta'])

    return (wband2, wmlp_full, wend_pack, wlinT, slab)


# --------------------------- pure-JAX reference -------------------------------
def reference_forward(x, p):
    L, D, V, CC, SC, G = SEQ_LEN, D_MODEL, C_OUT, CONV_CH, SKIP_CH, GDEP
    adp = jax.nn.softmax(jax.nn.relu(jnp.dot(p['nv1'], p['nv2'], precision=HP)), axis=1)
    # start_conv on (B,1,D,L): out_sc[b,cc,v,l] = bst[cc] + sum_k wst[cc,k]*x[b,l,v+k]
    xw = jnp.stack([x[:, :, v:v + K] for v in range(V)], axis=1)             # (B, V, L, K)
    out_sc = jnp.einsum('ck,bvlk->bcvl', p['wst'], xw, precision=HP) + p['bst'][None, :, None, None]
    adj = adp + jnp.eye(V, dtype=jnp.float32)
    a = adj / adj.sum(1)[:, None]
    h = out_sc
    outs = [h]
    for _ in range(G):
        h = ALPHA * out_sc + (1.0 - ALPHA) * jnp.einsum('bcwl,vw->bcvl', h, a, precision=HP)
        outs.append(h)
    ho = jnp.concatenate(outs, axis=1)
    ho = jnp.einsum('bjvl,sj->bsvl', ho, p['wmlp'], precision=HP) + p['bmlp'][None, :, None, None]
    g = 0.5 * ho * (1.0 + lax.erf(ho / jnp.sqrt(2.0).astype(jnp.float32)))   # exact GELU
    e = jnp.einsum('bsvl,tsl->btv', g, p['wend'], precision=HP) + p['bend'][None, :, None]
    lin = jnp.einsum('btv,dv->btd', e, p['wlin'], precision=HP) + p['blin']
    y = x + lin
    mu = y.mean(-1, keepdims=True)
    var = ((y - mu) ** 2).mean(-1, keepdims=True)
    return (y - mu) / jnp.sqrt(var + LN_EPS) * p['gamma'] + p['beta']


# ----------------------------------- main --------------------------------------
if __name__ == "__main__":
    key = jax.random.PRNGKey(0)
    pkey, xkey = jax.random.split(key)
    params = init_params(pkey)
    x = jax.random.normal(xkey, (B, SEQ_LEN, D_MODEL), jnp.float32)

    packed = pack_params(params)
    out = graph_block_forward(x, packed)
    out = jax.block_until_ready(out)

    ref = reference_forward(x, params)
    np.testing.assert_allclose(np.asarray(out), np.asarray(ref), rtol=2e-3, atol=2e-3)
    print("KERNEL_OK")
</pallas_src>

<mosaic_0001>
module attributes {stable_mosaic.version = 11 : i64} {
  func.func @graph_block_kernel(%arg0: i32, %arg1: memref<16x32xf32, #tpu.memory_space<vmem>>, %arg2: memref<128x32xf32, #tpu.memory_space<vmem>>, %arg3: memref<384x128xf32, #tpu.memory_space<vmem>>, %arg4: memref<128x16xf32, #tpu.memory_space<vmem>>, %arg5: memref<16x32xf32, #tpu.memory_space<vmem>>, %arg6: memref<80x128xf32, #tpu.memory_space<vmem>>, %arg7: memref<16x32xf32, #tpu.memory_space<vmem>>) attributes {dimension_semantics = [#tpu.dimension_semantics<arbitrary>], iteration_bounds = array<i64: 1>, scalar_prefetch = 0 : i64, scratch_operands = 0 : i64, tpu.core_type = #tpu.core_type<tc>, window_params = [{pipeline_mode = #tpu.pipeline_mode<synchronous>, transform_indices = @transform_0, window_bounds = array<i64: 16, 32>}, {pipeline_mode = #tpu.pipeline_mode<synchronous>, transform_indices = @transform_1, window_bounds = array<i64: 128, 32>}, {pipeline_mode = #tpu.pipeline_mode<synchronous>, transform_indices = @transform_2, window_bounds = array<i64: 384, 128>}, {pipeline_mode = #tpu.pipeline_mode<synchronous>, transform_indices = @transform_3, window_bounds = array<i64: 128, 16>}, {pipeline_mode = #tpu.pipeline_mode<synchronous>, transform_indices = @transform_4, window_bounds = array<i64: 16, 32>}, {pipeline_mode = #tpu.pipeline_mode<synchronous>, transform_indices = @transform_5, window_bounds = array<i64: 80, 128>}, {pipeline_mode = #tpu.pipeline_mode<synchronous>, transform_indices = @transform_6, window_bounds = array<i64: 16, 32>}]} {
    %c0 = arith.constant 0 : index
    %c0_0 = arith.constant 0 : index
    %0 = vector.load %arg6[%c0, %c0_0] : memref<80x128xf32, #tpu.memory_space<vmem>>, vector<16x10xf32>
    %c16 = arith.constant 16 : index
    %c0_1 = arith.constant 0 : index
    %1 = vector.load %arg6[%c16, %c0_1] : memref<80x128xf32, #tpu.memory_space<vmem>>, vector<10x16xf32>
    %c32 = arith.constant 32 : index
    %c0_2 = arith.constant 0 : index
    %2 = vector.load %arg6[%c32, %c0_2] : memref<80x128xf32, #tpu.memory_space<vmem>>, vector<1x128xf32>
    %c40 = arith.constant 40 : index
    %c0_3 = arith.constant 0 : index
    %3 = vector.load %arg6[%c40, %c0_3] : memref<80x128xf32, #tpu.memory_space<vmem>>, vector<1x128xf32>
    %c48 = arith.constant 48 : index
    %c0_4 = arith.constant 0 : index
    %4 = vector.load %arg6[%c48, %c0_4] : memref<80x128xf32, #tpu.memory_space<vmem>>, vector<1x16xf32>
    %c56 = arith.constant 56 : index
    %c0_5 = arith.constant 0 : index
    %5 = vector.load %arg6[%c56, %c0_5] : memref<80x128xf32, #tpu.memory_space<vmem>>, vector<1x32xf32>
    %c64 = arith.constant 64 : index
    %c0_6 = arith.constant 0 : index
    %6 = vector.load %arg6[%c64, %c0_6] : memref<80x128xf32, #tpu.memory_space<vmem>>, vector<1x32xf32>
    %c72 = arith.constant 72 : index
    %c0_7 = arith.constant 0 : index
    %7 = vector.load %arg6[%c72, %c0_7] : memref<80x128xf32, #tpu.memory_space<vmem>>, vector<1x32xf32>
    %cst = arith.constant dense<0.000000e+00> : vector<16x16xf32>
    %8 = tpu.matmul %0, %1, %cst {dimension_numbers = #tpu.dot_dimension_numbers<[1], [0], [0], [1], [0, 0, 1, 1], [], []>, precision = #tpu.contract_precision<fp32>} : vector<16x10xf32>, vector<10x16xf32>, vector<16x16xf32> -> vector<16x16xf32>
    %cst_8 = arith.constant 0.000000e+00 : f32
    %9 = vector.broadcast %cst_8 : f32 to vector<16x16xf32>
    %10 = arith.maximumf %8, %9 : vector<16x16xf32>
    %cst_9 = arith.constant dense<0xFF800000> : vector<16xf32>
    %11 = vector.multi_reduction <maximumf>, %10, %cst_9 [1] : vector<16x16xf32> to vector<16xf32>
    %12 = vector.shape_cast %11 : vector<16xf32> to vector<16x1xf32>
    %13 = vector.broadcast %12 : vector<16x1xf32> to vector<16x16xf32>
    %14 = arith.subf %10, %13 : vector<16x16xf32>
    %15 = math.exp %14 : vector<16x16xf32>
    %cst_10 = arith.constant dense<0.000000e+00> : vector<16xf32>
    %16 = vector.multi_reduction <add>, %15, %cst_10 [1] : vector<16x16xf32> to vector<16xf32>
    %17 = vector.shape_cast %16 : vector<16xf32> to vector<16x1xf32>
    %18 = vector.broadcast %17 : vector<16x1xf32> to vector<16x16xf32>
    %19 = arith.divf %15, %18 : vector<16x16xf32>
    %20 = tpu.iota {dimensions = array<i32: 0>} : vector<16x16xi32>
    %21 = tpu.iota {dimensions = array<i32: 1>} : vector<16x16xi32>
    %22 = arith.cmpi eq, %20, %21 : vector<16x16xi32>
    %cst_11 = arith.constant 1.000000e+00 : f32
    %cst_12 = arith.constant 0.000000e+00 : f32
    %23 = vector.broadcast %cst_11 : f32 to vector<16x16xf32>
    %24 = vector.broadcast %cst_12 : f32 to vector<16x16xf32>
    %25 = arith.select %22, %23, %24 : vector<16x16xi1>, vector<16x16xf32>
    %26 = arith.addf %19, %25 : vector<16x16xf32>
    %cst_13 = arith.constant dense<0.000000e+00> : vector<16xf32>
    %27 = vector.multi_reduction <add>, %26, %cst_13 [1] : vector<16x16xf32> to vector<16xf32>
    %28 = vector.shape_cast %27 : vector<16xf32> to vector<16x1xf32>
    %29 = vector.broadcast %28 : vector<16x1xf32> to vector<16x16xf32>
    %30 = arith.divf %26, %29 : vector<16x16xf32>
    %c0_14 = arith.constant 0 : index
    %c0_15 = arith.constant 0 : index
    %31 = vector.load %arg1[%c0_14, %c0_15] : memref<16x32xf32, #tpu.memory_space<vmem>>, vector<16x32xf32>
    %c0_16 = arith.constant 0 : index
    %c0_17 = arith.constant 0 : index
    %32 = vector.load %arg2[%c0_16, %c0_17] : memref<128x32xf32, #tpu.memory_space<vmem>>, vector<128x32xf32>
    %cst_18 = arith.constant dense<0.000000e+00> : vector<128x16xf32>
    %33 = tpu.matmul %32, %31, %cst_18 {dimension_numbers = #tpu.dot_dimension_numbers<[1], [1], [0], [0], [0, 0, 1, 0], [], []>, precision = #tpu.contract_precision<fp32>} : vector<128x32xf32>, vector<16x32xf32>, vector<128x16xf32> -> vector<128x16xf32>
    %34 = vector.extract_strided_slice %33 {offsets = [0, 0], sizes = [16, 16], strides = [1, 1]} : vector<128x16xf32> to vector<16x16xf32>
    %35 = vector.extract_strided_slice %33 {offsets = [16, 0], sizes = [16, 16], strides = [1, 1]} : vector<128x16xf32> to vector<16x16xf32>
    %36 = vector.extract_strided_slice %33 {offsets = [32, 0], sizes = [16, 16], strides = [1, 1]} : vector<128x16xf32> to vector<16x16xf32>
    %37 = vector.extract_strided_slice %33 {offsets = [48, 0], sizes = [16, 16], strides = [1, 1]} : vector<128x16xf32> to vector<16x16xf32>
    %38 = vector.extract_strided_slice %33 {offsets = [64, 0], sizes = [16, 16], strides = [1, 1]} : vector<128x16xf32> to vector<16x16xf32>
    %39 = vector.extract_strided_slice %33 {offsets = [80, 0], sizes = [16, 16], strides = [1, 1]} : vector<128x16xf32> to vector<16x16xf32>
    %40 = vector.extract_strided_slice %33 {offsets = [96, 0], sizes = [16, 16], strides = [1, 1]} : vector<128x16xf32> to vector<16x16xf32>
    %41 = vector.extract_strided_slice %33 {offsets = [112, 0], sizes = [16, 16], strides = [1, 1]} : vector<128x16xf32> to vector<16x16xf32>
    %42 = tpu.concatenate %34, %35, %36, %37, %38, %39, %40, %41 in 1 : vector<16x16xf32>, vector<16x16xf32>, vector<16x16xf32>, vector<16x16xf32>, vector<16x16xf32>, vector<16x16xf32>, vector<16x16xf32>, vector<16x16xf32> -> vector<16x128xf32>
    %43 = vector.broadcast %2 : vector<1x128xf32> to vector<16x128xf32>
    %44 = arith.addf %42, %43 : vector<16x128xf32>
    %cst_19 = arith.constant 5.000000e-02 : f32
    %45 = vector.broadcast %cst_19 : f32 to vector<16x128xf32>
    %46 = arith.mulf %45, %44 : vector<16x128xf32>
    %cst_20 = arith.constant dense<0.000000e+00> : vector<16x128xf32>
    %47 = tpu.matmul %30, %44, %cst_20 {dimension_numbers = #tpu.dot_dimension_numbers<[1], [0], [0], [1], [0, 0, 1, 1], [], []>, precision = #tpu.contract_precision<fp32>} : vector<16x16xf32>, vector<16x128xf32>, vector<16x128xf32> -> vector<16x128xf32>
    %cst_21 = arith.constant 0.949999988 : f32
    %48 = vector.broadcast %cst_21 : f32 to vector<16x128xf32>
    %49 = arith.mulf %48, %47 : vector<16x128xf32>
    %50 = arith.addf %46, %49 : vector<16x128xf32>
    %cst_22 = arith.constant 5.000000e-02 : f32
    %51 = vector.broadcast %cst_22 : f32 to vector<16x128xf32>
    %52 = arith.mulf %51, %44 : vector<16x128xf32>
    %cst_23 = arith.constant dense<0.000000e+00> : vector<16x128xf32>
    %53 = tpu.matmul %30, %50, %cst_23 {dimension_numbers = #tpu.dot_dimension_numbers<[1], [0], [0], [1], [0, 0, 1, 1], [], []>, precision = #tpu.contract_precision<fp32>} : vector<16x16xf32>, vector<16x128xf32>, vector<16x128xf32> -> vector<16x128xf32>
    %cst_24 = arith.constant 0.949999988 : f32
    %54 = vector.broadcast %cst_24 : f32 to vector<16x128xf32>
    %55 = arith.mulf %54, %53 : vector<16x128xf32>
    %56 = arith.addf %52, %55 : vector<16x128xf32>
    %57 = tpu.concatenate %44, %50, %56 in 1 : vector<16x128xf32>, vector<16x128xf32>, vector<16x128xf32> -> vector<16x384xf32>
    %c0_25 = arith.constant 0 : index
    %c0_26 = arith.constant 0 : index
    %58 = vector.load %arg3[%c0_25, %c0_26] : memref<384x128xf32, #tpu.memory_space<vmem>>, vector<384x128xf32>
    %cst_27 = arith.constant dense<0.000000e+00> : vector<16x128xf32>
    %59 = tpu.matmul %57, %58, %cst_27 {dimension_numbers = #tpu.dot_dimension_numbers<[1], [0], [0], [1], [0, 0, 1, 1], [], []>, precision = #tpu.contract_precision<fp32>} : vector<16x384xf32>, vector<384x128xf32>, vector<16x128xf32> -> vector<16x128xf32>
    %60 = vector.broadcast %3 : vector<1x128xf32> to vector<16x128xf32>
    %61 = arith.addf %59, %60 : vector<16x128xf32>
    %cst_28 = arith.constant 0.707106769 : f32
    %62 = vector.broadcast %cst_28 : f32 to vector<16x128xf32>
    %63 = arith.mulf %61, %62 : vector<16x128xf32>
    %64 = math.absf %63 : vector<16x128xf32>
    %cst_29 = arith.constant 0.327591091 : f32
    %65 = vector.broadcast %cst_29 : f32 to vector<16x128xf32>
    %66 = arith.mulf %65, %64 : vector<16x128xf32>
    %cst_30 = arith.constant 1.000000e+00 : f32
    %67 = vector.broadcast %cst_30 : f32 to vector<16x128xf32>
    %68 = arith.addf %67, %66 : vector<16x128xf32>
    %cst_31 = arith.constant 1.000000e+00 : f32
    %69 = vector.broadcast %cst_31 : f32 to vector<16x128xf32>
    %70 = arith.divf %69, %68 : vector<16x128xf32>
    %cst_32 = arith.constant 1.06140542 : f32
    %71 = vector.broadcast %cst_32 : f32 to vector<16x128xf32>
    %72 = arith.mulf %71, %70 : vector<16x128xf32>
    %cst_33 = arith.constant 1.45315206 : f32
    %73 = vector.broadcast %cst_33 : f32 to vector<16x128xf32>
    %74 = arith.subf %72, %73 : vector<16x128xf32>
    %75 = arith.mulf %74, %70 : vector<16x128xf32>
    %cst_34 = arith.constant 1.42141378 : f32
    %76 = vector.broadcast %cst_34 : f32 to vector<16x128xf32>
    %77 = arith.addf %75, %76 : vector<16x128xf32>
    %78 = arith.mulf %77, %70 : vector<16x128xf32>
    %cst_35 = arith.constant 0.284496725 : f32
    %79 = vector.broadcast %cst_35 : f32 to vector<16x128xf32>
    %80 = arith.subf %78, %79 : vector<16x128xf32>
    %81 = arith.mulf %80, %70 : vector<16x128xf32>
    %cst_36 = arith.constant 0.254829586 : f32
    %82 = vector.broadcast %cst_36 : f32 to vector<16x128xf32>
    %83 = arith.addf %81, %82 : vector<16x128xf32>
    %84 = arith.mulf %83, %70 : vector<16x128xf32>
    %cst_37 = arith.constant 0.000000e+00 : f32
    %85 = vector.broadcast %cst_37 : f32 to vector<16x128xf32>
    %86 = arith.subf %85, %64 : vector<16x128xf32>
    %87 = arith.mulf %86, %64 : vector<16x128xf32>
    %88 = math.exp %87 : vector<16x128xf32>
    %89 = arith.mulf %84, %88 : vector<16x128xf32>
    %cst_38 = arith.constant 1.000000e+00 : f32
    %90 = vector.broadcast %cst_38 : f32 to vector<16x128xf32>
    %91 = arith.subf %90, %89 : vector<16x128xf32>
    %cst_39 = arith.constant 0.000000e+00 : f32
    %92 = vector.broadcast %cst_39 : f32 to vector<16x128xf32>
    %93 = arith.cmpf oge, %63, %92 : vector<16x128xf32>
    %cst_40 = arith.constant 0.000000e+00 : f32
    %94 = vector.broadcast %cst_40 : f32 to vector<16x128xf32>
    %95 = arith.subf %94, %91 : vector<16x128xf32>
    %96 = arith.select %93, %91, %95 : vector<16x128xi1>, vector<16x128xf32>
    %cst_41 = arith.constant 5.000000e-01 : f32
    %97 = vector.broadcast %cst_41 : f32 to vector<16x128xf32>
    %98 = arith.mulf %97, %61 : vector<16x128xf32>
    %cst_42 = arith.constant 1.000000e+00 : f32
    %99 = vector.broadcast %cst_42 : f32 to vector<16x128xf32>
    %100 = arith.addf %99, %96 : vector<16x128xf32>
    %101 = arith.mulf %98, %100 : vector<16x128xf32>
    %c0_43 = arith.constant 0 : index
    %c0_44 = arith.constant 0 : index
    %102 = vector.load %arg4[%c0_43, %c0_44] : memref<128x16xf32, #tpu.memory_space<vmem>>, vector<128x16xf32>
    %cst_45 = arith.constant dense<0.000000e+00> : vector<16x16xf32>
    %103 = tpu.matmul %101, %102, %cst_45 {dimension_numbers = #tpu.dot_dimension_numbers<[1], [0], [0], [1], [0, 0, 1, 1], [], []>, precision = #tpu.contract_precision<fp32>} : vector<16x128xf32>, vector<128x16xf32>, vector<16x16xf32> -> vector<16x16xf32>
    %104 = vector.broadcast %4 : vector<1x16xf32> to vector<16x16xf32>
    %105 = arith.addf %103, %104 : vector<16x16xf32>
    %106 = tpu.transpose %105, [1, 0] : vector<16x16xf32> -> vector<16x16xf32>
    %c0_46 = arith.constant 0 : index
    %c0_47 = arith.constant 0 : index
    %107 = vector.load %arg5[%c0_46, %c0_47] : memref<16x32xf32, #tpu.memory_space<vmem>>, vector<16x32xf32>
    %cst_48 = arith.constant dense<0.000000e+00> : vector<16x32xf32>
    %108 = tpu.matmul %106, %107, %cst_48 {dimension_numbers = #tpu.dot_dimension_numbers<[1], [0], [0], [1], [0, 0, 1, 1], [], []>, precision = #tpu.contract_precision<fp32>} : vector<16x16xf32>, vector<16x32xf32>, vector<16x32xf32> -> vector<16x32xf32>
    %109 = arith.addf %31, %108 : vector<16x32xf32>
    %110 = vector.broadcast %5 : vector<1x32xf32> to vector<16x32xf32>
    %111 = arith.addf %109, %110 : vector<16x32xf32>
    %cst_49 = arith.constant dense<0.000000e+00> : vector<16xf32>
    %112 = vector.multi_reduction <add>, %111, %cst_49 [1] : vector<16x32xf32> to vector<16xf32>
    %113 = vector.shape_cast %112 : vector<16xf32> to vector<16x1xf32>
    %cst_50 = arith.constant 3.125000e-02 : f32
    %114 = vector.broadcast %cst_50 : f32 to vector<16x1xf32>
    %115 = arith.mulf %113, %114 : vector<16x1xf32>
    %116 = vector.broadcast %115 : vector<16x1xf32> to vector<16x32xf32>
    %117 = arith.subf %111, %116 : vector<16x32xf32>
    %118 = arith.mulf %117, %117 : vector<16x32xf32>
    %cst_51 = arith.constant dense<0.000000e+00> : vector<16xf32>
    %119 = vector.multi_reduction <add>, %118, %cst_51 [1] : vector<16x32xf32> to vector<16xf32>
    %120 = vector.shape_cast %119 : vector<16xf32> to vector<16x1xf32>
    %cst_52 = arith.constant 3.125000e-02 : f32
    %121 = vector.broadcast %cst_52 : f32 to vector<16x1xf32>
    %122 = arith.mulf %120, %121 : vector<16x1xf32>
    %cst_53 = arith.constant 9.99999974E-6 : f32
    %123 = vector.broadcast %cst_53 : f32 to vector<16x1xf32>
    %124 = arith.addf %122, %123 : vector<16x1xf32>
    %125 = math.rsqrt %124 : vector<16x1xf32>
    %126 = vector.broadcast %125 : vector<16x1xf32> to vector<16x32xf32>
    %127 = arith.mulf %117, %126 : vector<16x32xf32>
    %128 = vector.broadcast %6 : vector<1x32xf32> to vector<16x32xf32>
    %129 = arith.mulf %127, %128 : vector<16x32xf32>
    %130 = vector.broadcast %7 : vector<1x32xf32> to vector<16x32xf32>
    %131 = arith.addf %129, %130 : vector<16x32xf32>
    %c0_54 = arith.constant 0 : index
    %c0_55 = arith.constant 0 : index
    %132 = vector.load %arg7[%c0_54, %c0_55] : memref<16x32xf32, #tpu.memory_space<vmem>>, vector<16x32xf32>
    tpu.vector_store %arg7[%c0_54, %c0_55], %131 {strides = array<i32>} : memref<16x32xf32, #tpu.memory_space<vmem>>, vector<16x32xf32>,
    return
  }
  func.func @transform_0(%arg0: i32) -> (i32, i32) {
    %c0_i32 = arith.constant 0 : i32
    %c0_i32_0 = arith.constant 0 : i32
    %c0_i32_1 = arith.constant 0 : i32
    return %c0_i32, %c0_i32_0 : i32, i32
  }
  func.func @transform_1(%arg0: i32) -> (i32, i32) {
    %c0_i32 = arith.constant 0 : i32
    %c0_i32_0 = arith.constant 0 : i32
    %c0_i32_1 = arith.constant 0 : i32
    return %c0_i32, %c0_i32_0 : i32, i32
  }
  func.func @transform_2(%arg0: i32) -> (i32, i32) {
    %c0_i32 = arith.constant 0 : i32
    %c0_i32_0 = arith.constant 0 : i32
    %c0_i32_1 = arith.constant 0 : i32
    return %c0_i32, %c0_i32_0 : i32, i32
  }
  func.func @transform_3(%arg0: i32) -> (i32, i32) {
    %c0_i32 = arith.constant 0 : i32
    %c0_i32_0 = arith.constant 0 : i32
    %c0_i32_1 = arith.constant 0 : i32
    return %c0_i32, %c0_i32_0 : i32, i32
  }
  func.func @transform_4(%arg0: i32) -> (i32, i32) {
    %c0_i32 = arith.constant 0 : i32
    %c0_i32_0 = arith.constant 0 : i32
    %c0_i32_1 = arith.constant 0 : i32
    return %c0_i32, %c0_i32_0 : i32, i32
  }
  func.func @transform_5(%arg0: i32) -> (i32, i32) {
    %c0_i32 = arith.constant 0 : i32
    %c0_i32_0 = arith.constant 0 : i32
    %c0_i32_1 = arith.constant 0 : i32
    return %c0_i32, %c0_i32_0 : i32, i32
  }
  func.func @transform_6(%arg0: i32) -> (i32, i32) {
    %c0_i32 = arith.constant 0 : i32
    %c0_i32_0 = arith.constant 0 : i32
    %c0_i32_1 = arith.constant 0 : i32
    return %c0_i32, %c0_i32_0 : i32, i32
  }
}

</mosaic_0001>

<bundles_post_ra>
// kernel: tpu_custom_call.1
= control target key start
LH: loop header
LB: loop body
LE: loop exit
PB: predicated region body
PF: predicated region fallthrough
CT: control target
= control target key end

     0   :  { %11 = vsyncpa [#allocation3], 0  ;;  %s9455_s0 = inlined_call_operand.vmem [shape: f32[16,32], index: 0, kind: input, shape index: {}]   ;;  %s9456_s1 = inlined_call_operand.vmem [shape: f32[128,32], index: 1, kind: input, shape index: {}]   ;;  %s9457_s2 = inlined_call_operand.hbm [shape: f32[384,128], index: 2, kind: input, shape index: {}]   ;;  %s9458_s3 = inlined_call_operand.vmem [shape: f32[128,16], index: 3, kind: input, shape index: {}]   ;;  %s9459_s4 = inlined_call_operand.vmem [shape: f32[16,32], index: 4, kind: input, shape index: {}]   ;;  %s9460_s5 = inlined_call_operand.vmem [shape: f32[80,128], index: 5, kind: input, shape index: {}]   ;;  %s9461_s6 = inlined_call_operand.hbm [shape: f32[16,32], index: 6, kind: output, shape index: {}]  }
   0x1   :  { %12 = vsyncpa [#allocation4], 0  ;;  %s7400_s21 = smov [#allocation2]  }
   0x2   :  { %s22_s22 = sshll.u32 %s7400_s21, 4  ;;  %s23_s22 = int_to_ptr.vmem [resolvable:$true] %s22_s22 }
   0x3   :  { %s7364_s23 = scalar_lea.vmem %s23_s22, 6144  ;;  %p7369_p1 = scmp.lt.s32.totalorder %s23_s22, %s23_s22 }
   0x4   :  { %p7365_p0 = scmp.ne.s32.totalorder %s23_s22, %s7364_s23  ;;  %p7370_p2 = scmp.lt.s32.totalorder %s7364_s23, %s7364_s23 }
   0x6   :  { %p7371_p3 = por %p7370_p2, %p7369_p1 }
   0x8   :  { %p7372_p4 = pnand %p7371_p3, %p7365_p0 }
   0xa   :  { %7375 = shalt.err (!%p7372_p4)
}
   0xb   :  { %s7401_s24 = smov 128   ;;  %s7402_s25 = smov 8  }
   0xc   :  { %28 = dma.hbm_to_vmem [thread:$0]  %s9457_s2, 6144, %s23_s22, [#allocation3], %s7401_s24, %s7401_s24, %s7402_s25  }
   0xd   :  { %7396 = dma.done.wait [#allocation3], 6144  }
   0xe   :  { %7397 = vsyncadd [#allocation3], 4294961152  ;;  %vm55_vm0 = vcmask 1041408   ;;  %vm48_vm1 = vcmask 80896   ;;  %v41_v0 = vld [vmem:[%s9460_s5 + $0x18] sm:$0x3] }
   0xf   :  { %v40_v1 = vld [vmem:[%s9460_s5 + $0x10] sm:$0xff]  ;;  %v38_v2 = vld [vmem:[%s9460_s5] sm:$0xff]  ;;  %v57_v3 = vsel %vm55_vm0, %v41_v0, 0  ;;  %v39_v5 = vld [vmem:[%s9460_s5 + $0x8] sm:$0xff]  ;;  %vm625_vm2 = vcmask 261120   ;;  %vm563_vm3 = vcmask 130048  }
  0x10   :  { %v7462_v4 = vand.u32 4294901760, %v40_v1  ;;  %v50_v6 = vsel %vm48_vm1, %v38_v2, 0  ;;  %v7467_v7 = vand.u32 4294901760, %v57_v3  ;;  %v53_v8 = vsel %vm48_vm1, %v39_v5, 0  ;;  %v608_v10 = vld [vmem:[%s9455_s0 + $0x8] sm:$0xff]  ;;  %v607_v11 = vld [vmem:[%s9455_s0] sm:$0xff] }
  0x11   :  { %v7469_v9 = vand.u32 4294901760, %v50_v6  ;;  %v7477_v12 = vand.u32 4294901760, %v53_v8  ;;  %v609_v14 = vld [vmem:[%s9456_s1] sm:$0xff]  ;;  %v678_v19 = vsel %vm625_vm2, %v608_v10, 0  ;;  %v675_v20 = vsel %vm625_vm2, %v607_v11, 0  ;;  %v610_v26 = vld [vmem:[%s9456_s1 + $0x8] sm:$0xff] }
  0x12   :  { %v183_v13 = vsub.f32 %v40_v1, %v7462_v4  ;;  %6562 = vmatprep.subr.mxu0 %v7467_v7  ;;  %v176_v16 = vsub.f32 %v57_v3, %v7467_v7  ;;  %v627_v23 = vsel %vm625_vm2, %v609_v14, 0  ;;  %v7507_v29 = vand.u32 4294901760, %v678_v19  ;;  %v611_v33 = vld [vmem:[%s9456_s1 + $0x10] sm:$0xff]  ;;  %v612_v42 = vld [vmem:[%s9456_s1 + $0x18] sm:$0xff]  ;;  %v613_v45 = vld [vmem:[%s9456_s1 + $0x20] sm:$0xff]  ;;  %s7404_s26 = smov 32  }
  0x13   :  { %v7485_v15 = vsub.f32 %v50_v6, %v7469_v9  ;;  %6573 = vmatprep.mubr.f32.mxu1 %v7469_v9  ;;  %6563 = vmatpush3.msra.mxu0 %v7467_v7  ;;  %v7491_v17 = vsub.f32 %v53_v8, %v7477_v12  ;;  %v7509_v30 = vand.u32 4294901760, %v675_v20  ;;  %v7514_v32 = vand.u32 4294901760, %v627_v23  ;;  %v614_v48 = vld [vmem:[%s9456_s1 + $0x28] sm:$0xff]  ;;  %v615_v52 = vld [vmem:[%s9456_s1 + $0x30] sm:$0xff]  ;;  %v616_v60 = vld [vmem:[%s9456_s1 + $0x38] sm:$0xff]  ;;  %s7405_s27 = smov 48  }
  0x14   :  { %v7493_v18 = vand.u32 4294901760, %v183_v13  ;;  %6564 = vmatprep.subr.mxu0 %v7462_v4  ;;  %v177_v22 = vand.u32 4294901760, %v176_v16  ;;  %v630_v37 = vsel %vm625_vm2, %v610_v26, 0  ;;  %v7521_v39 = vsub.f32 %v678_v19, %v7507_v29  ;;  %v617_v63 = vld [vmem:[%s9456_s1 + $0x40] sm:$0xff]  ;;  %s7406_s28 = smov 64   ;;  %s7407_s29 = smov 80  }
  0x15   :  { %v128_v21 = vand.u32 4294901760, %v7485_v15  ;;  %6565 = vmatpush3.msra.mxu0 %v7462_v4  ;;  %v138_v24 = vand.u32 4294901760, %v7491_v17  ;;  %v7524_v40 = vsub.f32 %v675_v20, %v7509_v30  ;;  %v633_v41 = vsel %vm625_vm2, %v611_v33, 0  ;;  %s7408_s30 = smov 96   ;;  %s7409_s7 = smov 112  }
  0x16   :  { %v185_v25 = vsub.f32 %v183_v13, %v7493_v18  ;;  %v178_v28 = vsub.f32 %v176_v16, %v177_v22  ;;  %6576 = vmatprep.subr.mxu0 %v176_v16  ;;  %v7531_v43 = vsub.f32 %v627_v23, %v7514_v32  ;;  %v7533_v44 = vand.u32 4294901760, %v630_v37  ;;  %s7411_s9 = smov [#allocation5]  }
  0x17   :  { %v129_v27 = vsub.f32 %v7485_v15, %v128_v21  ;;  %v139_v31 = vsub.f32 %v7491_v17, %v138_v24  ;;  %v7538_v46 = vand.u32 4294901760, %v633_v41  ;;  %v636_v47 = vsel %vm625_vm2, %v612_v42, 0  ;;  %s5892_s2 = sshll.u32 %s7411_s9, 4  ;;  %s5893_s2 = int_to_ptr.vmem [resolvable:$true] %s5892_s2 }
  0x18   :  { %v179_v35 = vand.u32 4294901760, %v178_v28  ;;  %v186_v36 = vand.u32 4294901760, %v185_v25  ;;  %v7546_v49 = vand.u32 4294901760, %v7521_v39  ;;  %v7549_v50 = vand.u32 4294901760, %v7524_v40  ;;  %v620_v25 = vld [vmem:[%s9456_s1 + $0x58] sm:$0xff]  ;;  %v621_v28 = vld [vmem:[%s9456_s1 + $0x60] sm:$0xff]  ;;  %p7381_p6 = scmp.lt.s32.totalorder %s5893_s2, %s5893_s2 }
  0x19   :  { %v130_v34 = vand.u32 4294901760, %v129_v27  ;;  %v140_v38 = vand.u32 4294901760, %v139_v31  ;;  %v639_v51 = vsel %vm625_vm2, %v613_v45, 0  ;;  %v749_v53 = vand.u32 4294901760, %v7531_v43  ;;  %v622_v45 = vld [vmem:[%s9456_s1 + $0x68] sm:$0xff]  ;;  %s7376_s10 = scalar_lea.vmem %s5893_s2, 256 }
  0x1a   :  { %6569 = vmatprep.subr.mxu1 %v179_v35  ;;  %v7559_v54 = vsub.f32 %v630_v37, %v7533_v44  ;;  %v7563_v55 = vand.u32 4294901760, %v636_v47  ;;  %v642_v56 = vsel %vm625_vm2, %v614_v48, 0  ;;  %v7568_v57 = vsub.f32 %v633_v41, %v7538_v46  ;;  %p7377_p5 = scmp.ne.s32.totalorder %s5893_s2, %s7376_s10  ;;  %p7382_p7 = scmp.lt.s32.totalorder %s7376_s10, %s7376_s10 }
  0x1b   :  { %6566 = vmatprep.mubr.f32.mxu0 %v130_v34  ;;  %6570 = vmatpush3.msra.mxu1 %v179_v35  ;;  %v7570_v58 = vand.u32 4294901760, %v639_v51  ;;  %v645_v59 = vsel %vm625_vm2, %v615_v52, 0  ;;  %v939_v61 = vsub.f32 %v7521_v39, %v7546_v49  ;;  %v946_v62 = vsub.f32 %v7524_v40, %v7549_v50  ;;  %v623_v52 = vld [vmem:[%s9456_s1 + $0x70] sm:$0xff] }
  0x1c   :  { %6567 = vmatmul.mubr.f32.vlgmr.msra.gmra.mxu0 %v140_v38  ;;  %6571 = vmatprep.subr.mxu1 %v186_v36  ;;  %v750_v0 = vsub.f32 %v7531_v43, %v749_v53  ;;  %v759_v1 = vand.u32 4294901760, %v7559_v54  ;;  %v7589_v2 = vand.u32 4294901760, %v642_v56  ;;  %v7595_v3 = vsub.f32 %v636_v47, %v7563_v55  ;;  %p7383_p8 = por %p7382_p7, %p7381_p6 }
  0x1d   :  { %6577 = vmatpush3.msra.mxu0 %v176_v16  ;;  %6572 = vmatpush3.msra.mxu1 %v186_v36  ;;  %v7597_v5 = vand.u32 4294901760, %v645_v59  ;;  %v648_v6 = vsel %vm625_vm2, %v616_v60, 0  ;;  %v769_v8 = vand.u32 4294901760, %v7568_v57  ;;  %v7604_v10 = vsub.f32 %v639_v51, %v7570_v58 }
  0x1e   :  { %6578 = vmatprep.subr.mxu0 %v183_v13  ;;  %6574 = vmatmul.mubr.f32.vlgmr.msra.gmra.mxu1 %v7477_v12  ;;  %v651_v11 = vsel %vm625_vm2, %v617_v63, 0  ;;  %v940_v14 = vand.u32 4294901760, %v939_v61  ;;  %v751_v16 = vand.u32 4294901760, %v750_v0  ;;  %v7620_v19 = vand.u32 4294901760, %v648_v6  ;;  %p7384_p9 = pnand %p7383_p8, %p7377_p5 }
  0x1f   :  { %6579 = vmatpush3.msra.mxu0 %v183_v13  ;;  %6580 = vmatprep.mubr.f32.mxu0 %v7485_v15  ;;  %v618_v13 = vld [vmem:[%s9456_s1 + $0x48] sm:$0xff]  ;;  %v947_v15 = vand.u32 4294901760, %v946_v62  ;;  %v7629_v20 = vsub.f32 %v645_v59, %v7597_v5  ;;  %v770_v23 = vsub.f32 %v7568_v57, %v769_v8  ;;  %v660_v41 = vsel %vm625_vm2, %v620_v25, 0 }
  0x20   :  { %6583 = vmatprep.subr.mxu1 %v7467_v7  ;;  %6581 = vmatmul.mubr.f32.vlgmr.msra.gmra.mxu0 %v7491_v17  ;;  %v760_v17 = vsub.f32 %v7559_v54, %v759_v1  ;;  %v7647_v26 = vsub.f32 %v648_v6, %v7620_v19  ;;  %v663_v42 = vsel %vm625_vm2, %v621_v28, 0  ;;  %v7688_v61 = vand.u32 4294901760, %v660_v41 }
  0x21   :  { %6584 = vmatpush3.msra.mxu1 %v7467_v7  ;;  %6590 = vmatprep.subr.mxu0 %v177_v22  ;;  %v809_v34 = vand.u32 4294901760, %v7629_v20  ;;  %v771_v36 = vand.u32 4294901760, %v770_v23  ;;  %v7694_v0 = vand.u32 4294901760, %v663_v42  ;;  %v666_v6 = vsel %vm625_vm2, %v622_v45, 0 }
  0x22   :  { %6585 = vmatprep.subr.mxu1 %v7462_v4  ;;  %6591 = vmatpush3.msra.mxu0 %v177_v22  ;;  %v654_v22 = vsel %vm625_vm2, %v618_v13, 0  ;;  %v761_v31 = vand.u32 4294901760, %v760_v17  ;;  %v819_v48 = vand.u32 4294901760, %v7647_v26  ;;  %v624_v13 = vld [vmem:[%s9456_s1 + $0x78] sm:$0xff]  ;;  %vm1844_vm5 = vcmask 392192  }
  0x23   :  { %6586 = vmatpush3.msra.mxu1 %v7462_v4  ;;  %6587 = vmatprep.mubr.f32.mxu1 %v128_v21  ;;  %v7631_v21 = vand.u32 4294901760, %v651_v11  ;;  %v7649_v27 = vand.u32 4294901760, %v654_v22  ;;  %v810_v59 = vsub.f32 %v7629_v20, %v809_v34  ;;  %v672_v28 = vsel %vm625_vm2, %v624_v13, 0 }
  0x24   :  { %6592 = vmatprep.subr.mxu0 %v7493_v18  ;;  %6588 = vmatmul.mubr.f32.vlgmr.msra.gmra.mxu1 %v138_v24  ;;  %vm1847_vm6 = vcmask 523264   ;;  %vm1850_vm7 = vcmask 654336   ;;  %vm1853_vm9 = vcmask 785408   ;;  %vm1856_vm10 = vcmask 916480  }
  0x25   :  { %6593 = vmatpush3.msra.mxu0 %v7493_v18  ;;  %6594 = vmatprep.mubr.f32.mxu0 %v7469_v9  ;;  %v7618_v18 = vsub.f32 %v642_v56, %v7589_v2  ;;  %v7660_v35 = vsub.f32 %v651_v11, %v7631_v21  ;;  %v7679_v51 = vsub.f32 %v654_v22, %v7649_v27  ;;  %v669_v11 = vsel %vm625_vm2, %v623_v52, 0 }
  0x26   :  { %6597 = vmatprep.subr.mxu1 %v7467_v7  ;;  %6595 = vmatmul.mubr.f32.vlgmr.msra.gmra.mxu0 %v7477_v12  ;;  %v7716_v22 = vand.u32 4294901760, %v666_v6  ;;  %v7723_v25 = vand.u32 4294901760, %v669_v11 }
  0x27   :  { %6598 = vmatpush3.msra.mxu1 %v7467_v7  ;;  %6601 = vmatprep.mubr.f32.mxu1 %v7469_v9  ;;  %v619_v7 = vld [vmem:[%s9456_s1 + $0x50] sm:$0xff]  ;;  %v779_v9 = vand.u32 4294901760, %v7595_v3  ;;  %v829_v60 = vand.u32 4294901760, %v7660_v35  ;;  %s7403_s1 = smov 16  }
  0x28   :  { %6599 = vmatprep.subr.mxu1 %v7462_v4  ;;  %6604 = vmatprep.subr.mxu0 %v7507_v29  ;;  %v657_v24 = vsel %vm625_vm2, %v619_v7, 0  ;;  %v7714_v7 = vsub.f32 %v660_v41, %v7688_v61 }
  0x29   :  { %6600 = vmatpush3.msra.mxu1 %v7462_v4  ;;  %6605 = vmatpush3.xpose.msra.mxu0 %v7507_v29  ;;  %v789_v4 = vand.u32 4294901760, %v7604_v10  ;;  %v780_v33 = vsub.f32 %v7595_v3, %v779_v9  ;;  %v7666_v38 = vand.u32 4294901760, %v657_v24  ;;  %v830_v17 = vsub.f32 %v7660_v35, %v829_v60 }
  0x2a   :  { %6602 = vmatmul.mubr.f32.vlgmr.msra.gmra.mxu1 %v7477_v12  ;;  %6632 = vmatprep.subr.mxu1 %v940_v14  ;;  %v799_v12 = vand.u32 4294901760, %v7618_v18 }
  0x2b   :  { %6606 = vmatprep.subr.mxu0 %v7509_v30  ;;  %6633 = vmatpush3.xpose.msra.mxu1 %v940_v14  ;;  %v790_v37 = vsub.f32 %v7604_v10, %v789_v4  ;;  %v781_v56 = vand.u32 4294901760, %v780_v33  ;;  %v7692_v63 = vsub.f32 %v657_v24, %v7666_v38  ;;  %v7721_v24 = vsub.f32 %v663_v42, %v7694_v0 }
  0x2c   :  { %6608 = vmatprep.mubr.f32.mxu0 %v751_v16  ;;  %6634 = vmatprep.subr.mxu1 %v947_v15  ;;  %v800_v47 = vsub.f32 %v7618_v18, %v799_v12  ;;  %v839_v16 = vand.u32 4294901760, %v7679_v51  ;;  %v831_v41 = vand.u32 4294901760, %v830_v17 }
  0x2d   :  { %6636 = vmatprep.mubr.f32.mxu1 %v7514_v32  ;;  %6607 = vmatpush3.xpose.msra.mxu0 %v7509_v30  ;;  %v791_v62 = vand.u32 4294901760, %v790_v37  ;;  %v849_v23 = vand.u32 4294901760, %v7692_v63  ;;  %v7736_v37 = vsub.f32 %v666_v6, %v7716_v22  ;;  %v869_v45 = vand.u32 4294901760, %v7721_v24 }
  0x2e   :  { %6660 = vmatprep.subr.mxu0 %v7521_v39  ;;  %v801_v14 = vand.u32 4294901760, %v800_v47  ;;  %v840_v33 = vsub.f32 %v7679_v51, %v839_v16  ;;  %v7746_v47 = vsub.f32 %v669_v11, %v7723_v25 }
  0x2f   :  { %6635 = vmatpush3.xpose.msra.mxu1 %v947_v15  ;;  %v820_v15 = vsub.f32 %v7647_v26, %v819_v48  ;;  %v850_v42 = vsub.f32 %v7692_v63, %v849_v23  ;;  %v870_v11 = vsub.f32 %v7721_v24, %v869_v45 }
  0x30   :  { %6609 = vmatmul.mubr.f32.vlgmr.msra.gmra.mxu0 %v761_v31  ;;  %6688 = vmatprep.subr.mxu1 %v7507_v29  ;;  %v841_v52 = vand.u32 4294901760, %v840_v33  ;;  %v889_v13 = vand.u32 4294901760, %v7746_v47 }
  0x31   :  { %6611 = vmatprep.mubr.f32.mxu0 %v771_v36  ;;  %6661 = vmatpush3.xpose.msra.mxu0 %v7521_v39  ;;  %v811_v39 = vand.u32 4294901760, %v810_v59  ;;  %v821_v31 = vand.u32 4294901760, %v820_v15  ;;  %v859_v36 = vand.u32 4294901760, %v7714_v7  ;;  %v879_v59 = vand.u32 4294901760, %v7736_v37 }
  0x32   :  { %6637 = vmatmul.mubr.f32.vlgmr.msra.gmra.mxu1 %v7533_v44  ;;  %6662 = vmatprep.subr.mxu0 %v7524_v40  ;;  %v851_v6 = vand.u32 4294901760, %v850_v42  ;;  %v871_v17 = vand.u32 4294901760, %v870_v11 }
  0x33   :  { %6639 = vmatprep.mubr.f32.mxu1 %v7538_v46  ;;  %6689 = vmatpush3.xpose.msra.mxu1 %v7507_v29  ;;  %v880_v15 = vsub.f32 %v7736_v37, %v879_v59 }
  0x34   :  { %6612 = vmatmul.mubr.f32.gmra.mxu0 %v781_v56  ;;  %6690 = vmatprep.subr.mxu1 %v7509_v30  ;;  %v860_v56 = vsub.f32 %v7714_v7, %v859_v36 }
  0x35   :  { %6614 = vmatprep.mubr.f32.mxu0 %v791_v62  ;;  %6663 = vmatpush3.xpose.msra.mxu0 %v7524_v40  ;;  %v7738_v40 = vand.u32 4294901760, %v672_v28 }
  0x36   :  { %6640 = vmatmul.mubr.f32.gmra.mxu1 %v7563_v55  ;;  %6716 = vmatprep.subr.mxu0 %v7546_v49 }
  0x37   :  { %6642 = vmatprep.mubr.f32.mxu1 %v7570_v58  ;;  %6691 = vmatpush3.xpose.msra.mxu1 %v7509_v30  ;;  %v7755_v62 = vsub.f32 %v672_v28, %v7738_v40  ;;  %v890_v28 = vsub.f32 %v7746_v47, %v889_v13 }
  0x38   :  { %6615 = vmatmul.mubr.f32.gmra.mxu0 %v801_v14  ;;  %6744 = vmatprep.subr.mxu1 %v7507_v29  ;;  %v861_v14 = vand.u32 4294901760, %v860_v56 }
  0x39   :  { %6617 = vmatprep.mubr.f32.mxu0 %v811_v39  ;;  %v899_v39 = vand.u32 4294901760, %v7755_v62 }
  0x3a   :  { %6643 = vmatmul.mubr.f32.gmra.mxu1 %v7589_v2 }
  0x3b   :  { %6645 = vmatprep.mubr.f32.mxu1 %v7597_v5  ;;  %v900_v33 = vsub.f32 %v7755_v62, %v899_v39 }
  0x3c   :  { %6618 = vmatmul.mubr.f32.gmra.mxu0 %v821_v31  ;;  %v881_v31 = vand.u32 4294901760, %v880_v15 }
  0x3d   :  { %6620 = vmatprep.mubr.f32.mxu0 %v831_v41  ;;  %v891_v41 = vand.u32 4294901760, %v890_v28  ;;  %v901_v42 = vand.u32 4294901760, %v900_v33 }
  0x3e   :  { %6646 = vmatmul.mubr.f32.gmra.mxu1 %v7620_v19 }
  0x3f   :  { %6648 = vmatprep.mubr.f32.mxu1 %v7631_v21 }
  0x40   :  { %6621 = vmatmul.mubr.f32.gmra.mxu0 %v841_v52 }
  0x41   :  { %6623 = vmatprep.mubr.f32.mxu0 %v851_v6 }
  0x42   :  { %6649 = vmatmul.mubr.f32.gmra.mxu1 %v7649_v27 }
  0x43   :  { %6651 = vmatprep.mubr.f32.mxu1 %v7666_v38 }
  0x44   :  { %6624 = vmatmul.mubr.f32.gmra.mxu0 %v861_v14 }
  0x45   :  { %6626 = vmatprep.mubr.f32.mxu0 %v871_v17 }
  0x46   :  { %6652 = vmatmul.mubr.f32.gmra.mxu1 %v7688_v61 }
  0x47   :  { %6654 = vmatprep.mubr.f32.mxu1 %v7694_v0 }
  0x48   :  { %6627 = vmatmul.mubr.f32.gmra.mxu0 %v881_v31 }
  0x49   :  { %6629 = vmatprep.mubr.f32.mxu0 %v891_v41 }
  0x4a   :  { %6655 = vmatmul.mubr.f32.gmra.mxu1 %v7716_v22 }
  0x4b   :  { %6657 = vmatprep.mubr.f32.mxu1 %v7723_v25 }
  0x4c   :  { %6630 = vmatmul.mubr.f32.gmra.mxu0 %v901_v42 }
  0x4d   :  { %6664 = vmatprep.mubr.f32.mxu0 %v7531_v43 }
  0x4e   :  { %6658 = vmatmul.mubr.f32.gmra.mxu1 %v7738_v40 }
  0x4f   :  { %6692 = vmatprep.mubr.f32.mxu1 %v749_v53 }
  0x50   :  { %6665 = vmatmul.mubr.f32.vlgmr.msra.gmra.mxu0 %v7559_v54 }
  0x51   :  { %6667 = vmatprep.mubr.f32.mxu0 %v7568_v57  ;;  %6717 = vmatpush3.xpose.msra.mxu0 %v7546_v49 }
  0x52   :  { %6693 = vmatmul.mubr.f32.vlgmr.msra.gmra.mxu1 %v759_v1  ;;  %6718 = vmatprep.subr.mxu0 %v7549_v50 }
  0x53   :  { %6695 = vmatprep.mubr.f32.mxu1 %v769_v8  ;;  %6745 = vmatpush3.xpose.msra.mxu1 %v7507_v29 }
  0x54   :  { %6668 = vmatmul.mubr.f32.gmra.mxu0 %v7595_v3  ;;  %6746 = vmatprep.subr.mxu1 %v7509_v30 }
  0x55   :  { %6670 = vmatprep.mubr.f32.mxu0 %v7604_v10  ;;  %6719 = vmatpush3.xpose.msra.mxu0 %v7549_v50 }
  0x56   :  { %6696 = vmatmul.mubr.f32.gmra.mxu1 %v779_v9 }
  0x57   :  { %6698 = vmatprep.mubr.f32.mxu1 %v789_v4  ;;  %6747 = vmatpush3.xpose.msra.mxu1 %v7509_v30 }
  0x58   :  { %6671 = vmatmul.mubr.f32.gmra.mxu0 %v7618_v18 }
  0x59   :  { %6673 = vmatprep.mubr.f32.mxu0 %v7629_v20 }
  0x5a   :  { %6699 = vmatmul.mubr.f32.gmra.mxu1 %v799_v12 }
  0x5b   :  { %6701 = vmatprep.mubr.f32.mxu1 %v809_v34 }
  0x5c   :  { %6674 = vmatmul.mubr.f32.gmra.mxu0 %v7647_v26 }
  0x5d   :  { %6676 = vmatprep.mubr.f32.mxu0 %v7660_v35 }
  0x5e   :  { %6702 = vmatmul.mubr.f32.gmra.mxu1 %v819_v48 }
  0x5f   :  { %6704 = vmatprep.mubr.f32.mxu1 %v829_v60 }
  0x60   :  { %6677 = vmatmul.mubr.f32.gmra.mxu0 %v7679_v51 }
  0x61   :  { %6679 = vmatprep.mubr.f32.mxu0 %v7692_v63 }
  0x62   :  { %6705 = vmatmul.mubr.f32.gmra.mxu1 %v839_v16 }
  0x63   :  { %6707 = vmatprep.mubr.f32.mxu1 %v849_v23 }
  0x64   :  { %6680 = vmatmul.mubr.f32.gmra.mxu0 %v7714_v7 }
  0x65   :  { %6682 = vmatprep.mubr.f32.mxu0 %v7721_v24 }
  0x66   :  { %6708 = vmatmul.mubr.f32.gmra.mxu1 %v859_v36 }
  0x67   :  { %6710 = vmatprep.mubr.f32.mxu1 %v869_v45 }
  0x68   :  { %6683 = vmatmul.mubr.f32.gmra.mxu0 %v7736_v37 }
  0x69   :  { %6685 = vmatprep.mubr.f32.mxu0 %v7746_v47 }
  0x6a   :  { %6711 = vmatmul.mubr.f32.gmra.mxu1 %v879_v59 }
  0x6b   :  { %6713 = vmatprep.mubr.f32.mxu1 %v889_v13 }
  0x6c   :  { %6686 = vmatmul.mubr.f32.gmra.mxu0 %v7755_v62 }
  0x6d   :  { %6720 = vmatprep.mubr.f32.mxu0 %v7514_v32 }
  0x6e   :  { %6714 = vmatmul.mubr.f32.gmra.mxu1 %v899_v39 }
  0x6f   :  { %6748 = vmatprep.mubr.f32.mxu1 %v7514_v32 }
  0x70   :  { %6721 = vmatmul.mubr.f32.vlgmr.msra.gmra.mxu0 %v7533_v44 }
  0x71   :  { %6723 = vmatprep.mubr.f32.mxu0 %v7538_v46 }
  0x72   :  { %6749 = vmatmul.mubr.f32.vlgmr.msra.gmra.mxu1 %v7533_v44 }
  0x73   :  { %6751 = vmatprep.mubr.f32.mxu1 %v7538_v46 }
  0x74   :  { %6724 = vmatmul.mubr.f32.gmra.mxu0 %v7563_v55 }
  0x75   :  { %6726 = vmatprep.mubr.f32.mxu0 %v7570_v58 }
  0x76   :  { %6752 = vmatmul.mubr.f32.gmra.mxu1 %v7563_v55 }
  0x77   :  { %6754 = vmatprep.mubr.f32.mxu1 %v7570_v58 }
  0x78   :  { %6727 = vmatmul.mubr.f32.gmra.mxu0 %v7589_v2 }
  0x79   :  { %6729 = vmatprep.mubr.f32.mxu0 %v7597_v5 }
  0x7a   :  { %6755 = vmatmul.mubr.f32.gmra.mxu1 %v7589_v2 }
  0x7b   :  { %6757 = vmatprep.mubr.f32.mxu1 %v7597_v5 }
  0x7c   :  { %6730 = vmatmul.mubr.f32.gmra.mxu0 %v7620_v19 }
  0x7d   :  { %6732 = vmatprep.mubr.f32.mxu0 %v7631_v21 }
  0x7e   :  { %6758 = vmatmul.mubr.f32.gmra.mxu1 %v7620_v19 }
  0x7f   :  { %6760 = vmatprep.mubr.f32.mxu1 %v7631_v21 }
  0x80   :  { %6733 = vmatmul.mubr.f32.gmra.mxu0 %v7649_v27 }
  0x81   :  { %6735 = vmatprep.mubr.f32.mxu0 %v7666_v38 }
  0x82   :  { %6761 = vmatmul.mubr.f32.gmra.mxu1 %v7649_v27 }
  0x83   :  { %6763 = vmatprep.mubr.f32.mxu1 %v7666_v38 }
  0x84   :  { %6736 = vmatmul.mubr.f32.gmra.mxu0 %v7688_v61 }
  0x85   :  { %6738 = vmatprep.mubr.f32.mxu0 %v7694_v0 }
  0x86   :  { %6764 = vmatmul.mubr.f32.gmra.mxu1 %v7688_v61 }
  0x87   :  { %6766 = vmatprep.mubr.f32.mxu1 %v7694_v0 }
  0x88   :  { %6739 = vmatmul.mubr.f32.gmra.mxu0 %v7716_v22 }
  0x89   :  { %6741 = vmatprep.mubr.f32.mxu0 %v7723_v25 }
  0x8a   :  { %6767 = vmatmul.mubr.f32.gmra.mxu1 %v7716_v22 }
  0x8b   :  { %6769 = vmatprep.mubr.f32.mxu1 %v7723_v25 }
  0x8c   :  { %6742 = vmatmul.mubr.f32.gmra.mxu0 %v7738_v40 }
  0x8e   :  { %6770 = vmatmul.mubr.f32.gmra.mxu1 %v7738_v40 }
  0xdc   :  { %v6568_v29 = vpop.f32.mrf.mxu0 }
  0xde   :  { %v132_v30 = vpop.f32.mrf.mxu0  ;;  %v6575_v32 = vpop.f32.mrf.mxu1 }
  0xdf   :  { %v230_v43 = vadd.f32 %v6575_v32, %v6568_v29 }
  0xe0   :  { %v6582_v44 = vpop.f32.mrf.mxu0  ;;  %v223_v46 = vpop.f32.mrf.mxu1 }
  0xe1   :  { %v313_v49 = vadd.f32 %v6582_v44, %v230_v43  ;;  %v224_v50 = vadd.f32 %v223_v46, %v132_v30 }
  0xe2   :  { %v305_v53 = vpop.f32.mrf.mxu0 }
  0xe3   :  { %v306_v54 = vadd.f32 %v305_v53, %v224_v50 }
  0xe4   :  { %v6589_v55 = vpop.f32.mrf.mxu1 }
  0xe5   :  { %v396_v57 = vadd.f32 %v6589_v55, %v313_v49 }
  0xe6   :  { %v6596_v58 = vpop.f32.mrf.mxu0  ;;  %v387_v1 = vpop.f32.mrf.mxu1 }
  0xe7   :  { %v388_v2 = vadd.f32 %v387_v1, %v306_v54  ;;  %v479_v3 = vadd.f32 %v6596_v58, %v396_v57 }
  0xe8   :  { %v472_v5 = vpop.f32.mrf.mxu0 }
  0xe9   :  { %v473_v8 = vadd.f32 %v472_v5, %v388_v2 }
  0xea   :  { %v6603_v10 = vpop.f32.mrf.mxu1 }
  0xeb   :  { %v7858_v19 = vadd.f32 %v6603_v10, %v479_v3 }
  0xec   :  { %v551_v18 = vpop.f32.mrf.mxu1 }
  0xed   :  { %v7860_v9 = vadd.f32 %v551_v18, %v473_v8  ;;  %v562_v21 = vmax.f32 %v7858_v19, 0.0 }
  0xef   :  { %v561_v20 = vmax.f32 %v7860_v9, 0.0  ;;  %v567_v35 = vsel %vm563_vm3, %v562_v21, -inf }
  0xf0   :  { %v6610_v12 = vpop.f32.mrf.mxu0 }
  0xf1   :  { %v564_v4 = vsel %vm563_vm3, %v561_v20, -inf }
  0xf2   :  { %565 = vmax.xlane.f32.xlu0 %v564_v4  ;;  %v753_v26 = vpop.f32.mrf.mxu0  ;;  %v6638_v27 = vpop.f32.mrf.mxu1 }
  0xf3   :  { %v991_v34 = vadd.f32 %v6638_v27, %v6610_v12 }
  0xf4   :  { %v7870_v38 = vpop.f32.mrf.mxu0  ;;  %v984_v48 = vpop.f32.mrf.mxu1 }
  0xf5   :  { %v985_v51 = vadd.f32 %v984_v48, %v753_v26 }
  0xf6   :  { %568 = vmax.xlane.f32.xlu0 %v567_v35  ;;  %v773_v60 = vpop.f32.mrf.mxu0  ;;  %v7872_v61 = vpop.f32.mrf.mxu1 }
  0xf8   :  { %v6616_v63 = vpop.f32.mrf.mxu0  ;;  %v996_v0 = vpop.f32.mrf.mxu1 }
  0xf9   :  { %v997_v16 = vadd.f32 %v996_v0, %v773_v60 }
  0xfa   :  { %v7874_v7 = vpop.f32.mrf.mxu0  ;;  %v6644_v22 = vpop.f32.mrf.mxu1 }
  0xfb   :  { %v1015_v23 = vadd.f32 %v6644_v22, %v6616_v63 }
  0xfc   :  { %v6619_v24 = vpop.f32.mrf.mxu0  ;;  %v7876_v25 = vpop.f32.mrf.mxu1 }
  0xfe   :  { %v7878_v36 = vpop.f32.mrf.mxu0  ;;  %v6647_v37 = vpop.f32.mrf.mxu1 }
  0xff   :  { %v1027_v40 = vadd.f32 %v6647_v37, %v6619_v24 }
 0x100   :  { %v6622_v45 = vpop.f32.mrf.mxu0  ;;  %v7880_v47 = vpop.f32.mrf.mxu1 }
 0x102   :  { %v7882_v52 = vpop.f32.mrf.mxu0  ;;  %v6650_v56 = vpop.f32.mrf.mxu1 }
 0x103   :  { %v1039_v59 = vadd.f32 %v6650_v56, %v6622_v45 }
 0x104   :  { %v6625_v62 = vpop.f32.mrf.mxu0  ;;  %v7884_v6 = vpop.f32.mrf.mxu1 }
 0x106   :  { %v7886_v11 = vpop.f32.mrf.mxu0  ;;  %v6653_v13 = vpop.f32.mrf.mxu1 }
 0x107   :  { %v1051_v14 = vadd.f32 %v6653_v13, %v6625_v62 }
 0x108   :  { %v6628_v15 = vpop.f32.mrf.mxu0  ;;  %v7888_v39 = vpop.f32.mrf.mxu1 }
 0x10a   :  { %v873_v17 = vpop.f32.mrf.mxu0  ;;  %v6656_v28 = vpop.f32.mrf.mxu1 }
 0x10b   :  { %v1063_v31 = vadd.f32 %v6656_v28, %v6628_v15 }
 0x10c   :  { %v6631_v33 = vpop.f32.mrf.mxu0  ;;  %v1056_v41 = vpop.f32.mrf.mxu1 }
 0x10d   :  { %v1057_v42 = vadd.f32 %v1056_v41, %v873_v17 }
 0x10e   :  { %v893_v29 = vpop.f32.mrf.mxu0  ;;  %v6659_v30 = vpop.f32.mrf.mxu1 }
 0x10f   :  { %v1075_v32 = vadd.f32 %v6659_v30, %v6631_v33  ;;  %v1003_v33 = vadd.f32 %v7872_v61, %v7870_v38 }
 0x110   :  { %v1068_v43 = vpop.f32.mrf.mxu1  ;;  %v6666_v44 = vpop.f32.mrf.mxu0 }
 0x111   :  { %v1069_v46 = vadd.f32 %v1068_v43, %v893_v29  ;;  %v1158_v49 = vadd.f32 %v6666_v44, %v991_v34 }
 0x112   :  { %v1150_v50 = vpop.f32.mrf.mxu0  ;;  %v6694_v53 = vpop.f32.mrf.mxu1 }
 0x113   :  { %v1151_v54 = vadd.f32 %v1150_v50, %v985_v51  ;;  %v1339_v55 = vadd.f32 %v6694_v53, %v1158_v49 }
 0x114   :  { %v6669_v57 = vpop.f32.mrf.mxu0  ;;  %v1330_v58 = vpop.f32.mrf.mxu1 }
 0x115   :  { %v1331_v1 = vadd.f32 %v1330_v58, %v1151_v54 }
 0x116   :  { %v1164_v2 = vpop.f32.mrf.mxu0  ;;  %v6697_v3 = vpop.f32.mrf.mxu1 }
 0x117   :  { %v1165_v5 = vadd.f32 %v1164_v2, %v997_v16  ;;  %v1009_v2 = vadd.f32 %v7876_v25, %v7874_v7 }
 0x118   :  { %v6672_v8 = vpop.f32.mrf.mxu0  ;;  %v1346_v10 = vpop.f32.mrf.mxu1 }
 0x119   :  { %v1186_v18 = vadd.f32 %v6672_v8, %v1015_v23  ;;  %v1347_v4 = vadd.f32 %v1346_v10, %v1165_v5 }
 0x11a   :  { %v1178_v12 = vpop.f32.mrf.mxu0  ;;  %v6700_v26 = vpop.f32.mrf.mxu1 }
 0x11b   :  { %v7890_v27 = vadd.f32 %v6700_v26, %v1186_v18 }
 0x11c   :  { %v6675_v35 = vpop.f32.mrf.mxu0  ;;  %v1362_v34 = vpop.f32.mrf.mxu1 }
 0x11d   :  { %v1200_v48 = vadd.f32 %v6675_v35, %v1027_v40 }
 0x11e   :  { %v1192_v60 = vpop.f32.mrf.mxu0  ;;  %v6703_v51 = vpop.f32.mrf.mxu1 }
 0x11f   :  { %v7892_v63 = vadd.f32 %v6703_v51, %v1200_v48 }
 0x120   :  { %v6678_v0 = vpop.f32.mrf.mxu0  ;;  %v1378_v22 = vpop.f32.mrf.mxu1 }
 0x121   :  { %v1214_v24 = vadd.f32 %v6678_v0, %v1039_v59 }
 0x122   :  { %v1206_v37 = vpop.f32.mrf.mxu0  ;;  %v6706_v16 = vpop.f32.mrf.mxu1 }
 0x123   :  { %v7894_v45 = vadd.f32 %v6706_v16, %v1214_v24 }
 0x124   :  { %v6681_v23 = vpop.f32.mrf.mxu0  ;;  %v7896_v56 = vpop.f32.mrf.mxu1 }
 0x125   :  { %v1228_v62 = vadd.f32 %v6681_v23, %v1051_v14  ;;  %v1172_v14 = vadd.f32 %v6669_v57, %v1003_v33  ;;  %v1179_v57 = vadd.f32 %v1178_v12, %v1009_v2  ;;  %v1045_v12 = vadd.f32 %v7888_v39, %v7886_v11 }
 0x126   :  { %v7898_v13 = vpop.f32.mrf.mxu0  ;;  %v6709_v15 = vpop.f32.mrf.mxu1 }
 0x127   :  { %v7900_v17 = vadd.f32 %v6709_v15, %v1228_v62 }
 0x128   :  { %v6684_v40 = vpop.f32.mrf.mxu0  ;;  %v7902_v28 = vpop.f32.mrf.mxu1 }
 0x129   :  { %v1242_v59 = vadd.f32 %v6684_v40, %v1063_v31  ;;  %v1355_v31 = vadd.f32 %v6697_v3, %v1172_v14  ;;  %v1033_v3 = vadd.f32 %v7884_v6, %v7882_v52 }
 0x12a   :  { %v1234_v41 = vpop.f32.mrf.mxu0  ;;  %v6712_v29 = vpop.f32.mrf.mxu1 }
 0x12b   :  { %v1235_v30 = vadd.f32 %v1234_v41, %v1057_v42  ;;  %v7906_v43 = vadd.f32 %v6712_v29, %v1242_v59  ;;  %v1207_v33 = vadd.f32 %v1206_v37, %v1033_v3 }
 0x12c   :  { %v6687_v44 = vpop.f32.mrf.mxu0  ;;  %v1426_v49 = vpop.f32.mrf.mxu1 }
 0x12d   :  { %v1256_v50 = vadd.f32 %v6687_v44, %v1075_v32  ;;  %v7908_v53 = vadd.f32 %v1426_v49, %v1235_v30  ;;  %v1021_v32 = vadd.f32 %v7880_v47, %v7878_v36  ;;  %v1221_v49 = vadd.f32 %v7898_v13, %v1045_v12 }
 0x12e   :  { %v1248_v54 = vpop.f32.mrf.mxu0  ;;  %v6715_v58 = vpop.f32.mrf.mxu1 }
 0x12f   :  { %v1249_v5 = vadd.f32 %v1248_v54, %v1069_v46  ;;  %v7912_v8 = vadd.f32 %v6715_v58, %v1256_v50  ;;  %v1193_v16 = vadd.f32 %v1192_v60, %v1021_v32 }
 0x130   :  { %v1442_v38 = vpop.f32.mrf.mxu1  ;;  %v6722_v61 = vpop.f32.mrf.mxu0 }
 0x131   :  { %v7914_v42 = vadd.f32 %v1442_v38, %v1249_v5  ;;  %v1534_v10 = vadd.f32 %v6722_v61, %v1339_v55  ;;  %v1363_v55 = vadd.f32 %v1362_v34, %v1179_v57  ;;  %v1379_v6 = vadd.f32 %v1378_v22, %v1193_v16 }
 0x132   :  { %v1527_v18 = vpop.f32.mrf.mxu0  ;;  %v6750_v26 = vpop.f32.mrf.mxu1 }
 0x133   :  { %v1528_v35 = vadd.f32 %v1527_v18, %v1331_v1  ;;  %v7918_v48 = vadd.f32 %v6750_v26, %v1534_v10 }
 0x134   :  { %v6725_v51 = vpop.f32.mrf.mxu0  ;;  %v1690_v7 = vpop.f32.mrf.mxu1 }
 0x135   :  { %v1546_v25 = vadd.f32 %v6725_v51, %v1355_v31  ;;  %v7920_v46 = vadd.f32 %v1690_v7, %v1528_v35 }
 0x136   :  { %v6753_v0 = vpop.f32.mrf.mxu1  ;;  %v1539_v24 = vpop.f32.mrf.mxu0 }
 0x137   :  { %v1709_v23 = vadd.f32 %v6753_v0, %v1546_v25  ;;  %v1540_v62 = vadd.f32 %v1539_v24, %v1347_v4 }
 0x138   :  { %v6728_v15 = vpop.f32.mrf.mxu0  ;;  %v1702_v36 = vpop.f32.mrf.mxu1 }
 0x139   :  { %1788 = vrot.lane.b32.xlu0 %v1709_v23, %s7403_s1  ;;  %v1558_v47 = vadd.f32 %v6728_v15, %v7890_v27  ;;  %v7926_v1 = vadd.f32 %v1702_v36, %v1540_v62  ;;  %v1395_v27 = vadd.f32 %v7896_v56, %v1207_v33 }
 0x13a   :  { %v1551_v40 = vpop.f32.mrf.mxu0  ;;  %v6756_v52 = vpop.f32.mrf.mxu1 }
 0x13b   :  { %v1552_v34 = vadd.f32 %v1551_v40, %v1363_v55  ;;  %v1721_v60 = vadd.f32 %v6756_v52, %v1558_v47 }
 0x13c   :  { %v6731_v59 = vpop.f32.mrf.mxu0  ;;  %v1714_v4 = vpop.f32.mrf.mxu1 }
 0x13d   :  { %v1570_v41 = vadd.f32 %v6731_v59, %v7892_v63  ;;  %v1715_v29 = vadd.f32 %v1714_v4, %v1552_v34  ;;  %v1411_v63 = vadd.f32 %v7902_v28, %v1221_v49 }
 0x13e   :  { %v1563_v30 = vpop.f32.mrf.mxu0  ;;  %v6759_v44 = vpop.f32.mrf.mxu1 }
 0x13f   :  { %v1564_v14 = vadd.f32 %v1563_v30, %v1379_v6  ;;  %v1733_v50 = vadd.f32 %v6759_v44, %v1570_v41  ;;  %1794 = vrot.lane.b32.xlu0 %v1715_v29, %s7404_s26  ;;  %v586_v6 = vlaneseq }
 0x140   :  { %v6734_v11 = vpop.f32.mrf.mxu0  ;;  %v1726_v39 = vpop.f32.mrf.mxu1 }
 0x141   :  { %v1582_v22 = vadd.f32 %v6734_v11, %v7894_v45  ;;  %v1727_v37 = vadd.f32 %v1726_v39, %v1564_v14  ;;  %v587_v33 = vshrl.u32 %v586_v6, 7  ;;  %v590_v34 = vand.u32 127, %v586_v6 }
 0x142   :  { %v1575_v54 = vpop.f32.mrf.mxu0  ;;  %v6762_v58 = vpop.f32.mrf.mxu1 }
 0x143   :  { %v1576_v2 = vadd.f32 %v1575_v54, %v1395_v27  ;;  %v1745_v5 = vadd.f32 %v6762_v58, %v1582_v22  ;;  %1802 = vrot.lane.b32.xlu0 %v1727_v37, %s7405_s27  ;;  %vm591_vm4 = vcmp.eq.s32.totalorder %v587_v33, %v590_v34  ;;  %v588_v59 = vadd.s32 8, %v587_v33 }
 0x144   :  { %v6737_v56 = vpop.f32.mrf.mxu0  ;;  %v1738_v13 = vpop.f32.mrf.mxu1  ;;  %v7410_v27 = vmov 0.0  }
 0x145   :  { %v1594_v38 = vadd.f32 %v6737_v56, %v7900_v17  ;;  %v1739_v61 = vadd.f32 %v1738_v13, %v1576_v2  ;;  %v593_v49 = vsel %vm591_vm4, 1.0, %v7410_v27  ;;  %vm592_vm8 = vcmp.eq.s32.totalorder %v588_v59, %v590_v34 }
 0x146   :  { %v1587_v31 = vpop.f32.mrf.mxu0  ;;  %v6765_v10 = vpop.f32.mrf.mxu1 }
 0x147   :  { %v1588_v18 = vadd.f32 %v1587_v31, %v1411_v63  ;;  %v1757_v26 = vadd.f32 %v6765_v10, %v1594_v38  ;;  %1810 = vrot.lane.b32.xlu0 %v1739_v61, %s7406_s28 }
 0x148   :  { %v1750_v45 = vpop.f32.mrf.mxu1  ;;  %v6740_v32 = vpop.f32.mrf.mxu0 }
 0x149   :  { %v1751_v57 = vadd.f32 %v1750_v45, %v1588_v18  ;;  %v1606_v19 = vadd.f32 %v6740_v32, %v7906_v43  ;;  %v5904_v45 = vld [vmem:[%s9460_s5 + $0x20] ss:$0 sm:$0xff] }
 0x14a   :  { %v1599_v28 = vpop.f32.mrf.mxu0  ;;  %v6768_v35 = vpop.f32.mrf.mxu1 }
 0x14b   :  { %1818 = vrot.lane.b32.xlu0 %v1751_v57, %s7407_s29  ;;  %v1600_v51 = vadd.f32 %v1599_v28, %v7908_v53 }
 0x14c   :  { %v1762_v7 = vpop.f32.mrf.mxu1  ;;  %v6743_v9 = vpop.f32.mrf.mxu0 }
 0x14d   :  { %v7939_v25 = vadd.f32 %v1762_v7, %v1600_v51 }
 0x14e   :  { %v6771_v36 = vpop.f32.mrf.mxu1  ;;  %v1611_v32 = vpop.f32.mrf.mxu0 }
 0x14f   :  { %v1612_v51 = vadd.f32 %v1611_v32, %v7914_v42 }
 0x150   :  { %v1774_v7 = vpop.f32.mrf.mxu1 }
 0x17b   :  { %v566_v17 = vpop.xlane.xlu0 %565 }
 0x17c   :  { %v570_v3 = vsub.f32 %v561_v20, %v566_v17  ;;  %v1769_v20 = vadd.f32 %v6768_v35, %v1606_v19 }
 0x17e   :  { %v572_v0 = vmul.f32 1.442695, %v570_v3 }
 0x17f   :  { %v569_v24 = vpop.xlane.xlu0 %568 }
 0x180   :  { %7330 = vpow2.f32 %v572_v0  ;;  %v571_v55 = vsub.f32 %v562_v21, %v569_v24  ;;  %v1618_v21 = vadd.f32 %v6743_v9, %v7912_v8  ;;  %v1775_v0 = vadd.f32 %v1774_v7, %v1612_v51  ;;  %v2916_v51 = vld [vmem:[#allocation2 + $0xf8] sm:$0xff] }
 0x182   :  { %v574_v16 = vmul.f32 1.442695, %v571_v55  ;;  %v1781_v47 = vadd.f32 %v6771_v36, %v1618_v21 }
 0x184   :  { %7332 = vpow2.f32 %v574_v16 }
 0x18d   :  { %v7331_v23 = vpop.eup %7330 }
 0x18e   :  { %v576_v62 = vsel %vm563_vm3, %v7331_v23, 0.0 }
 0x18f   :  { %577 = vadd.xlane.f32.xlu1 %v576_v62 }
 0x191   :  { %v7333_v53 = vpop.eup %7332 }
 0x192   :  { %v579_v15 = vsel %vm563_vm3, %v7333_v53, 0.0 }
 0x193   :  { %580 = vadd.xlane.f32.xlu1 %v579_v15 }
 0x1a4   :  { %1796 = vrot.lane.b32.xlu1 %v1721_v60, %s7404_s26 }
 0x1a8   :  { %1786 = vrot.lane.b32.xlu1 %v7926_v1, %s7403_s1 }
 0x1ab   :  { %v1789_v12 = vpop.permute.xlu0 %1788 }
 0x1ac   :  { %1804 = vrot.lane.b32.xlu1 %v1733_v50, %s7405_s27  ;;  %v1841_v38 = vsel %vm563_vm3, %v7918_v48, %v1789_v12 }
 0x1b0   :  { %1812 = vrot.lane.b32.xlu1 %v1745_v5, %s7406_s28 }
 0x1b1   :  { %v1795_v1 = vpop.permute.xlu0 %1794 }
 0x1b4   :  { %1820 = vrot.lane.b32.xlu1 %v1757_v26, %s7407_s29 }
 0x1b5   :  { %v1803_v52 = vpop.permute.xlu0 %1802 }
 0x1b8   :  { %1828 = vrot.lane.b32.xlu1 %v1769_v20, %s7408_s30 }
 0x1b9   :  { %v1811_v8 = vpop.permute.xlu0 %1810 }
 0x1bc   :  { %1836 = vrot.lane.b32.xlu1 %v1781_v47, %s7409_s7 }
 0x1bd   :  { %v1819_v44 = vpop.permute.xlu0 %1818 }
 0x218   :  { %v578_v40 = vpop.xlane.xlu1 %577 }
 0x219   :  { %7334 = vrcp.f32 %v578_v40 }
 0x21c   :  { %v581_v43 = vpop.xlane.xlu1 %580 }
 0x21d   :  { %7336 = vrcp.f32 %v581_v43 }
 0x220   :  { %v1797_v60 = vpop.permute.xlu1 %1796 }
 0x221   :  { %v1843_v61 = vsel %vm625_vm2, %v1841_v38, %v1797_v60 }
 0x224   :  { %v1787_v4 = vpop.permute.xlu1 %1786 }
 0x225   :  { %v1840_v41 = vsel %vm563_vm3, %v7920_v46, %v1787_v4  ;;  %v594_v46 = vsel %vm592_vm8, 1.0, %v7410_v27 }
 0x226   :  { %v7335_v29 = vpop.eup %7334  ;;  %v1842_v30 = vsel %vm625_vm2, %v1840_v41, %v1795_v1 }
 0x227   :  { %v1845_v14 = vsel %vm1844_vm5, %v1842_v30, %v1803_v52  ;;  %v583_v50 = vmul.f32 %v7335_v29, %v7331_v23 }
 0x228   :  { %v1848_v11 = vsel %vm1847_vm6, %v1845_v14, %v1811_v8  ;;  %v1805_v39 = vpop.permute.xlu1 %1804 }
 0x229   :  { %v1851_v22 = vsel %vm1850_vm7, %v1848_v11, %v1819_v44  ;;  %v595_v37 = vadd.f32 %v593_v49, %v583_v50  ;;  %v1846_v10 = vsel %vm1844_vm5, %v1843_v61, %v1805_v39 }
 0x22a   :  { %v7337_v54 = vpop.eup %7336 }
 0x22b   :  { %v597_v58 = vsel %vm563_vm3, %v595_v37, 0.0  ;;  %v585_v63 = vmul.f32 %v7337_v54, %v7333_v53 }
 0x22c   :  { %598 = vadd.xlane.f32.xlu0 %v597_v58  ;;  %v1813_v2 = vpop.permute.xlu1 %1812 }
 0x22d   :  { %v596_v5 = vadd.f32 %v594_v46, %v585_v63  ;;  %v1849_v18 = vsel %vm1847_vm6, %v1846_v10, %v1813_v2 }
 0x22f   :  { %v600_v56 = vsel %vm563_vm3, %v596_v5, 0.0 }
 0x230   :  { %601 = vadd.xlane.f32.xlu1 %v600_v56  ;;  %v1821_v13 = vpop.permute.xlu1 %1820 }
 0x231   :  { %v1852_v26 = vsel %vm1850_vm7, %v1849_v18, %v1821_v13 }
 0x234   :  { %v1829_v31 = vpop.permute.xlu1 %1828 }
 0x235   :  { %v1855_v57 = vsel %vm1853_vm9, %v1852_v26, %v1829_v31 }
 0x238   :  { %v1837_v28 = vpop.permute.xlu1 %1836 }
 0x239   :  { %v1858_v48 = vsel %vm1856_vm10, %v1855_v57, %v1837_v28 }
 0x23a   :  { %v7974_v35 = vadd.f32 %v5904_v45, %v1858_v48 }
 0x23c   :  { %v7978_v17 = vand.u32 4294901760, %v7974_v35  ;;  %v8073_v26 = vmul.f32 0.05, %v7974_v35 }
 0x23e   :  { %9606 = vst [vmem:[#allocation8_spill] sm:$0xff] %v7978_v17  ;;  %v7982_v3 = vsub.f32 %v7974_v35, %v7978_v17  ;;  %6772 = vmatprep.subr.mxu0 %v7978_v17  ;;  %9612 = vst [vmem:[#allocation14_spill] sm:$0xff] %v8073_v26  ;;  %v8088_v35 = vand.u32 4294901760, %v2916_v51 }
 0x23f   :  { %6773 = vmatpush3.msra.mxu0 %v7978_v17 }
 0x240   :  { %9607 = vst [vmem:[#allocation9_spill] sm:$0xff] %v7982_v3  ;;  %v7987_v24 = vand.u32 4294901760, %v7982_v3 }
 0x241   :  { %1834 = vrot.lane.b32.xlu1 %v1775_v0, %s7409_s7 }
 0x242   :  { %9608 = vst [vmem:[#allocation10_spill] sm:$0xff] %v7987_v24  ;;  %1826 = vrot.lane.b32.xlu0 %v7939_v25, %s7408_s30  ;;  %v1992_v42 = vsub.f32 %v7982_v3, %v7987_v24 }
 0x244   :  { %v7994_v55 = vand.u32 4294901760, %v1992_v42  ;;  %v2900_v42 = vld [vmem:[#allocation2 + $0x78] sm:$0xff] }
 0x246   :  { %6779 = vmatprep.subr.mxu1 %v7994_v55 }
 0x247   :  { %6780 = vmatpush3.msra.mxu1 %v7994_v55 }
 0x2b5   :  { %v599_v16 = vpop.xlane.xlu0 %598 }
 0x2b6   :  { %7338 = vrcp.f32 %v599_v16 }
 0x2b9   :  { %v602_v23 = vpop.xlane.xlu1 %601  ;;  %v1827_v62 = vpop.permute.xlu0 %1826 }
 0x2ba   :  { %7340 = vrcp.f32 %v602_v23  ;;  %v1854_v53 = vsel %vm1853_vm9, %v1851_v22, %v1827_v62  ;;  %v2915_v62 = vld [vmem:[#allocation2 + $0xf0] sm:$0xff] }
 0x2bd   :  { %v1835_v15 = vpop.permute.xlu1 %1834 }
 0x2be   :  { %v1857_v19 = vsel %vm1856_vm10, %v1854_v53, %v1835_v15  ;;  %v2899_v53 = vld [vmem:[#allocation2 + $0x70] sm:$0xff] }
 0x2bf   :  { %v8000_v25 = vadd.f32 %v5904_v45, %v1857_v19 }
 0x2c1   :  { %v8003_v9 = vand.u32 4294901760, %v8000_v25  ;;  %v8077_v28 = vmul.f32 0.05, %v8000_v25 }
 0x2c3   :  { %9609 = vst [vmem:[#allocation11_spill] sm:$0xff] %v8003_v9  ;;  %v7339_v20 = vpop.eup %7338  ;;  %v8007_v21 = vsub.f32 %v8000_v25, %v8003_v9  ;;  %6774 = vmatprep.subr.mxu0 %v8003_v9  ;;  %9613 = vst [vmem:[#allocation15_spill] sm:$0xff] %v8077_v28  ;;  %v8098_v25 = vand.u32 4294901760, %v2900_v42 }
 0x2c4   :  { %v604_v36 = vmul.f32 %v7339_v20, %v595_v37  ;;  %6775 = vmatpush3.msra.mxu0 %v8003_v9  ;;  %v2914_v20 = vld [vmem:[#allocation2 + $0xe8] sm:$0xff] }
 0x2c5   :  { %9610 = vst [vmem:[#allocation12_spill] sm:$0xff] %v8007_v21  ;;  %6786 = vmatprep.subr.mxu0 %v7982_v3  ;;  %v8013_v47 = vand.u32 4294901760, %v8007_v21 }
 0x2c6   :  { %v1868_v12 = vsel %vm563_vm3, %v604_v36, 0  ;;  %v8101_v36 = vand.u32 4294901760, %v2915_v62 }
 0x2c7   :  { %9611 = vst [vmem:[#allocation13_spill] sm:$0xff] %v8013_v47  ;;  %v7341_v1 = vpop.eup %7340  ;;  %v8016_v40 = vand.u32 4294901760, %v1868_v12  ;;  %v1999_v52 = vsub.f32 %v8007_v21, %v8013_v47 }
 0x2c8   :  { %v606_v6 = vmul.f32 %v7341_v1, %v596_v5 }
 0x2c9   :  { %6783 = vmatprep.mubr.f32.mxu1 %v8016_v40  ;;  %v8021_v43 = vand.u32 4294901760, %v1999_v52  ;;  %v8024_v33 = vsub.f32 %v1868_v12, %v8016_v40  ;;  %v2898_v12 = vld [vmem:[#allocation2 + $0x68] sm:$0xff] }
 0x2ca   :  { %v1871_v34 = vsel %vm563_vm3, %v606_v6, 0  ;;  %v8110_v6 = vand.u32 4294901760, %v2899_v53 }
 0x2cb   :  { %v8027_v60 = vand.u32 4294901760, %v1871_v34  ;;  %6781 = vmatprep.subr.mxu1 %v8021_v43  ;;  %v8031_v8 = vand.u32 4294901760, %v8024_v33 }
 0x2cc   :  { %6782 = vmatpush3.msra.mxu1 %v8021_v43 }
 0x2cd   :  { %6784 = vmatmul.mubr.f32.vlgmr.msra.gmra.mxu1 %v8027_v60  ;;  %6793 = vmatprep.subr.mxu1 %v7978_v17  ;;  %v1943_v59 = vsub.f32 %v8024_v33, %v8031_v8  ;;  %v8039_v4 = vsub.f32 %v1871_v34, %v8027_v60  ;;  %v2913_v34 = vld [vmem:[#allocation2 + $0xe0] sm:$0xff] }
 0x2ce   :  { %6794 = vmatpush3.msra.mxu1 %v7978_v17  ;;  %6797 = vmatprep.mubr.f32.mxu1 %v8031_v8 }
 0x2cf   :  { %6795 = vmatprep.subr.mxu1 %v8003_v9  ;;  %v1944_v41 = vand.u32 4294901760, %v1943_v59  ;;  %v8045_v29 = vand.u32 4294901760, %v8039_v4  ;;  %v8113_v59 = vsub.f32 %v2916_v51, %v8088_v35 }
 0x2d0   :  { %6796 = vmatpush3.msra.mxu1 %v8003_v9 }
 0x2d1   :  { %6776 = vmatprep.mubr.f32.mxu0 %v1944_v41  ;;  %v1953_v30 = vsub.f32 %v8039_v4, %v8045_v29  ;;  %6798 = vmatmul.mubr.f32.vlgmr.msra.gmra.mxu1 %v8045_v29 }
 0x2d2   :  { %6807 = vmatprep.subr.mxu1 %v7978_v17  ;;  %6811 = vmatprep.mubr.f32.mxu1 %v8016_v40 }
 0x2d3   :  { %6808 = vmatpush3.msra.mxu1 %v7978_v17  ;;  %v8054_v44 = vand.u32 4294901760, %v1953_v30  ;;  %v2897_v30 = vld [vmem:[#allocation2 + $0x60] sm:$0xff]  ;;  %v2904_v17 = vld [vmem:[#allocation2 + $0x98] sm:$0xff] }
 0x2d4   :  { %6809 = vmatprep.subr.mxu1 %v8003_v9 }
 0x2d5   :  { %6810 = vmatpush3.msra.mxu1 %v8003_v9  ;;  %6777 = vmatmul.mubr.f32.vlgmr.msra.gmra.mxu0 %v8054_v44 }
 0x2d6   :  { %6787 = vmatpush3.msra.mxu0 %v7982_v3  ;;  %6812 = vmatmul.mubr.f32.vlgmr.msra.gmra.mxu1 %v8027_v60  ;;  %v2891_v3 = vld [vmem:[#allocation2 + $0x30] sm:$0xff] }
 0x2d7   :  { %6788 = vmatprep.subr.mxu0 %v8007_v21  ;;  %6790 = vmatprep.mubr.f32.mxu0 %v8024_v33 }
 0x2d8   :  { %6825 = vmatprep.mubr.f32.mxu1 %v8016_v40  ;;  %6789 = vmatpush3.msra.mxu0 %v8007_v21 }
 0x2d9   :  { %6800 = vmatprep.subr.mxu0 %v7987_v24  ;;  %6791 = vmatmul.mubr.f32.vlgmr.msra.gmra.mxu0 %v8039_v4 }
 0x2da   :  { %6801 = vmatpush3.msra.mxu0 %v7987_v24  ;;  %6804 = vmatprep.mubr.f32.mxu0 %v8016_v40  ;;  %v2907_v24 = vld [vmem:[#allocation2 + $0xb0] sm:$0xff] }
 0x2db   :  { %6802 = vmatprep.subr.mxu0 %v8013_v47 }
 0x2dc   :  { %6803 = vmatpush3.msra.mxu0 %v8013_v47 }
 0x2dd   :  { %6805 = vmatmul.mubr.f32.vlgmr.msra.gmra.mxu0 %v8027_v60 }
 0x2de   :  { %6818 = vmatprep.mubr.f32.mxu0 %v1944_v41  ;;  %v8117_v41 = vand.u32 4294901760, %v2914_v20 }
 0x2e0   :  { %9619 = vst [vmem:[#allocation21_spill] sm:$0xff] %v8117_v41 }
 0x38d   :  { %v6785_v27 = vpop.f32.mrf.mxu1 }
 0x38f   :  { %v2037_v49 = vpop.f32.mrf.mxu1 }
 0x391   :  { %v6799_v14 = vpop.f32.mrf.mxu1 }
 0x393   :  { %v2201_v22 = vpop.f32.mrf.mxu1 }
 0x395   :  { %v6778_v50 = vpop.f32.mrf.mxu0 }
 0x396   :  { %v2044_v39 = vadd.f32 %v6785_v27, %v6778_v50  ;;  %v6813_v5 = vpop.f32.mrf.mxu1  ;;  %v2896_v50 = vld [vmem:[#allocation2 + $0x58] sm:$0xff] }
 0x397   :  { %v1946_v11 = vpop.f32.mrf.mxu0 }
 0x398   :  { %v2038_v54 = vadd.f32 %v2037_v49, %v1946_v11  ;;  %v2365_v18 = vpop.f32.mrf.mxu1  ;;  %v8125_v49 = vsub.f32 %v2900_v42, %v8098_v25  ;;  %v8130_v11 = vand.u32 4294901760, %v2913_v34 }
 0x399   :  { %v6792_v37 = vpop.f32.mrf.mxu0 }
 0x39a   :  { %v2127_v46 = vadd.f32 %v6792_v37, %v2044_v39  ;;  %9621 = vst [vmem:[#allocation23_spill] sm:$0xff] %v8130_v11  ;;  %v8140_v37 = vand.u32 4294901760, %v2897_v30 }
 0x39b   :  { %v2119_v58 = vpop.f32.mrf.mxu0 }
 0x39c   :  { %v2120_v63 = vadd.f32 %v2119_v58, %v2038_v54  ;;  %v2210_v2 = vadd.f32 %v6799_v14, %v2127_v46  ;;  %v8127_v14 = vand.u32 4294901760, %v2898_v12  ;;  %9622 = vst [vmem:[#allocation24_spill] sm:$0xff] %v8140_v37  ;;  %v2912_v54 = vld [vmem:[#allocation2 + $0xd8] sm:$0xff]  ;;  %v9464_v46 = vand.u32 4294901760, %v8113_v59 }
 0x39d   :  { %v6806_v56 = vpop.f32.mrf.mxu0  ;;  %v8145_v58 = vand.u32 4294901760, %v2896_v50 }
 0x39e   :  { %v2293_v13 = vadd.f32 %v6806_v56, %v2210_v2  ;;  %v2202_v38 = vadd.f32 %v2201_v22, %v2120_v63  ;;  %9620 = vst [vmem:[#allocation22_spill] sm:$0xff] %v8127_v14  ;;  %v8138_v22 = vsub.f32 %v2899_v53, %v8110_v6  ;;  %v2895_v63 = vld [vmem:[#allocation2 + $0x50] sm:$0xff]  ;;  %v8148_v2 = vsub.f32 %v2914_v20, %v8117_v41  ;;  %v2893_v20 = vld [vmem:[#allocation2 + $0x40] sm:$0xff] }
 0x39f   :  { %v2286_v61 = vpop.f32.mrf.mxu0  ;;  %9623 = vst [vmem:[#allocation25_spill] sm:$0xff] %v8145_v58  ;;  %v2911_v56 = vld [vmem:[#allocation2 + $0xd0] sm:$0xff] }
 0x3a0   :  { %v2372_v31 = vadd.f32 %v6813_v5, %v2293_v13  ;;  %v2287_v10 = vadd.f32 %v2286_v61, %v2202_v38  ;;  %v9463_v5 = vand.u32 4294901760, %v8125_v49  ;;  %v8157_v13 = vand.u32 4294901760, %v2912_v54  ;;  %v2910_v61 = vld [vmem:[#allocation2 + $0xc8] sm:$0xff] }
 0x3a1   :  { %v8180_v51 = vand.u32 4294901760, %v2911_v56 }
 0x3a2   :  { %v2376_v45 = vmul.f32 0.95, %v2372_v31  ;;  %v2366_v32 = vadd.f32 %v2365_v18, %v2287_v10  ;;  %9624 = vst [vmem:[#allocation26_spill] sm:$0xff] %v8157_v13  ;;  %v8161_v31 = vsub.f32 %v2913_v34, %v8130_v11  ;;  %v8165_v10 = vsub.f32 %v2897_v30, %v8140_v37  ;;  %v2909_v34 = vld [vmem:[#allocation2 + $0xc0] sm:$0xff] }
 0x3a3   :  { %v8170_v18 = vsub.f32 %v8113_v59, %v9464_v46  ;;  %9626 = vst [vmem:[#allocation28_spill] sm:$0xff] %v8180_v51  ;;  %v8188_v42 = vsub.f32 %v8125_v49, %v9463_v5  ;;  %v8228_v46 = vsub.f32 %v2911_v56, %v8180_v51 }
 0x3a4   :  { %v2378_v57 = vadd.f32 %v2376_v45, %v8073_v26  ;;  %v2375_v48 = vmul.f32 0.95, %v2366_v32  ;;  %v8172_v45 = vand.u32 4294901760, %v2895_v63  ;;  %v9465_v32 = vand.u32 4294901760, %v8138_v22  ;;  %v2892_v26 = vld [vmem:[#allocation2 + $0x38] sm:$0xff] }
 0x3a6   :  { %v8079_v7 = vand.u32 4294901760, %v2378_v57  ;;  %v2377_v0 = vadd.f32 %v2375_v48, %v8077_v28  ;;  %9625 = vst [vmem:[#allocation27_spill] sm:$0xff] %v8172_v45  ;;  %v8178_v48 = vsub.f32 %v2896_v50, %v8145_v58  ;;  %v3181_v50 = vand.u32 4294901760, %v8170_v18 }
 0x3a8   :  { %9614 = vst [vmem:[#allocation16_spill] sm:$0xff] %v8079_v7  ;;  %v8083_v16 = vsub.f32 %v2378_v57, %v8079_v7  ;;  %v8085_v23 = vand.u32 4294901760, %v2377_v0  ;;  %6814 = vmatprep.subr.mxu0 %v8079_v7  ;;  %v2894_v57 = vld [vmem:[#allocation2 + $0x48] sm:$0xff] }
 0x3a9   :  { %6815 = vmatpush3.msra.mxu0 %v8079_v7 }
 0x3aa   :  { %9615 = vst [vmem:[#allocation17_spill] sm:$0xff] %v8083_v16  ;;  %9616 = vst [vmem:[#allocation18_spill] sm:$0xff] %v8085_v23  ;;  %v8092_v15 = vsub.f32 %v2377_v0, %v8085_v23  ;;  %6816 = vmatprep.subr.mxu0 %v8085_v23  ;;  %v8096_v19 = vand.u32 4294901760, %v8083_v16  ;;  %v9466_v0 = vand.u32 4294901760, %v8148_v2 }
 0x3ab   :  { %6817 = vmatpush3.msra.mxu0 %v8085_v23 }
 0x3ac   :  { %9617 = vst [vmem:[#allocation19_spill] sm:$0xff] %v8096_v19  ;;  %6819 = vmatmul.mubr.f32.vlgmr.msra.gmra.mxu0 %v8054_v44  ;;  %6828 = vmatprep.subr.mxu0 %v8083_v16  ;;  %v2498_v1 = vsub.f32 %v8083_v16, %v8096_v19  ;;  %v8108_v52 = vand.u32 4294901760, %v8092_v15 }
 0x3ad   :  { %6829 = vmatpush3.msra.mxu0 %v8083_v16  ;;  %6832 = vmatprep.mubr.f32.mxu0 %v8024_v33  ;;  %v8133_v33 = vsub.f32 %v2915_v62, %v8101_v36  ;;  %v8190_v62 = vand.u32 4294901760, %v2910_v61 }
 0x3ae   :  { %9618 = vst [vmem:[#allocation20_spill] sm:$0xff] %v8108_v52  ;;  %6830 = vmatprep.subr.mxu0 %v8092_v15  ;;  %v8120_v44 = vand.u32 4294901760, %v2498_v1  ;;  %v2505_v27 = vsub.f32 %v8092_v15, %v8108_v52  ;;  %v8200_v1 = vand.u32 4294901760, %v2894_v57 }
 0x3af   :  { %6831 = vmatpush3.msra.mxu0 %v8092_v15  ;;  %v9462_v38 = vand.u32 4294901760, %v8133_v33  ;;  %9627 = vst [vmem:[#allocation29_spill] sm:$0xff] %v8190_v62  ;;  %v8241_v30 = vsub.f32 %v2910_v61, %v8190_v62  ;;  %v9634_v61 = vand.u32 4294901760, %v8165_v10 }
 0x3b0   :  { %6821 = vmatprep.subr.mxu1 %v8120_v44  ;;  %6833 = vmatmul.mubr.f32.vlgmr.msra.gmra.mxu0 %v8039_v4  ;;  %v2506_v39 = vand.u32 4294901760, %v2505_v27  ;;  %v8153_v4 = vsub.f32 %v2898_v12, %v8127_v14  ;;  %9628 = vst [vmem:[#allocation30_spill] sm:$0xff] %v8200_v1  ;;  %v8204_v27 = vsub.f32 %v2912_v54, %v8157_v13  ;;  %v8224_v54 = vand.u32 4294901760, %v2893_v20 }
 0x3b1   :  { %6842 = vmatprep.subr.mxu0 %v8096_v19  ;;  %6822 = vmatpush3.msra.mxu1 %v8120_v44  ;;  %v8198_v12 = vsub.f32 %v8133_v33, %v9462_v38  ;;  %v8214_v38 = vsub.f32 %v8138_v22, %v9465_v32  ;;  %v3069_v32 = vand.u32 4294901760, %v8188_v42  ;;  %9631 = vst [vmem:[#allocation33_spill] sm:$0xff] %v8241_v30  ;;  %v9633_v42 = vand.u32 4294901760, %v8161_v31 }
 0x3b2   :  { %6843 = vmatpush3.msra.mxu0 %v8096_v19  ;;  %6846 = vmatprep.mubr.f32.mxu0 %v8016_v40  ;;  %v9468_v53 = vand.u32 4294901760, %v8153_v4  ;;  %9629 = vst [vmem:[#allocation31_spill] sm:$0xff] %v8224_v54  ;;  %v8247_v18 = vsub.f32 %v2894_v57, %v8200_v1  ;;  %v8270_v19 = vsub.f32 %v2893_v20, %v8224_v54  ;;  %v8301_v20 = vand.u32 4294901760, %v2891_v3 }
 0x3b3   :  { %6823 = vmatprep.subr.mxu1 %v2506_v39  ;;  %6844 = vmatprep.subr.mxu0 %v8108_v52  ;;  %v3188_v56 = vand.u32 4294901760, %v8198_v12  ;;  %v8252_v28 = vsub.f32 %v8161_v31, %v9633_v42  ;;  %v8261_v12 = vsub.f32 %v8165_v10, %v9634_v61  ;;  %v8281_v42 = vand.u32 4294901760, %v2892_v26 }
 0x3b4   :  { %6824 = vmatpush3.msra.mxu1 %v2506_v39  ;;  %6845 = vmatpush3.msra.mxu0 %v8108_v52  ;;  %v8236_v5 = vsub.f32 %v8153_v4, %v9468_v53  ;;  %9632 = vst [vmem:[#allocation34_spill] sm:$0xff] %v8247_v18  ;;  %9636 = vst [vmem:[#allocation36_spill] sm:$0xff] %v8270_v19  ;;  %v9639_v61 = vand.u32 4294901760, %v8204_v27  ;;  %v9644_v52 = vand.u32 4294901760, %v8228_v46 }
 0x3b5   :  { %6826 = vmatmul.mubr.f32.vlgmr.msra.gmra.mxu1 %v8027_v60  ;;  %6835 = vmatprep.subr.mxu1 %v8079_v7  ;;  %9638 = vst [vmem:[#allocation37_spill] sm:$0xff] %v8281_v42  ;;  %9641 = vst [vmem:[#allocation39_spill] sm:$0xff] %v8301_v20 }
 0x3b6   :  { %6847 = vmatmul.mubr.f32.vlgmr.msra.gmra.mxu0 %v8027_v60  ;;  %6094 = vmatprep.subr.mxu0 %v8088_v35  ;;  %v8293_v21 = vsub.f32 %v8204_v27, %v9639_v61  ;;  %v2905_v61 = vld [vmem:[#allocation2 + $0xa0] sm:$0xff] }
 0x3b7   :  { %6836 = vmatpush3.msra.mxu1 %v8079_v7  ;;  %6839 = vmatprep.mubr.f32.mxu1 %v8031_v8  ;;  %v8209_v8 = vsub.f32 %v2895_v63, %v8172_v45  ;;  %v2908_v63 = vld [vmem:[#allocation2 + $0xb8] sm:$0xff] }
 0x3b8   :  { %6095 = vmatpush3.msra.mxu0 %v8098_v25  ;;  %3038 = vmatprep.mubr.f32.mxu0 %v2506_v39  ;;  %v8222_v39 = vsub.f32 %v8148_v2, %v9466_v0  ;;  %v8238_v0 = vand.u32 4294901760, %v2909_v34  ;;  %v8263_v57 = vand.u32 4294901760, %v2908_v63 }
 0x3b9   :  { %6837 = vmatprep.subr.mxu1 %v8085_v23  ;;  %6096 = vmatprep.subr.mxu0 %v8101_v36 }
 0x3ba   :  { %6838 = vmatpush3.msra.mxu1 %v8085_v23  ;;  %6097 = vmatpush3.msra.mxu0 %v8110_v6  ;;  %9630 = vst [vmem:[#allocation32_spill] sm:$0xff] %v8238_v0  ;;  %9635 = vst [vmem:[#allocation35_spill] sm:$0xff] %v8263_v57  ;;  %v3195_v53 = vand.u32 4294901760, %v8222_v39  ;;  %v2906_v39 = vld [vmem:[#allocation2 + $0xa8] sm:$0xff]  ;;  %v8285_v16 = vsub.f32 %v2909_v34, %v8238_v0  ;;  %v3090_v34 = vand.u32 4294901760, %v8261_v12 }
 0x3bb   :  { %6840 = vmatmul.mubr.f32.vlgmr.msra.gmra.mxu1 %v8045_v29  ;;  %6849 = vmatprep.subr.mxu1 %v8079_v7  ;;  %v3076_v29 = vand.u32 4294901760, %v8214_v38  ;;  %v9637_v38 = vand.u32 4294901760, %v8178_v48  ;;  %v8316_v12 = vsub.f32 %v8228_v46, %v9644_v52  ;;  %v8347_v52 = vsub.f32 %v2891_v3, %v8301_v20  ;;  %v2903_v3 = vld [vmem:[#allocation2 + $0x90] sm:$0xff] }
 0x3bc   :  { %6098 = vmatprep.subr.mxu0 %v8117_v41  ;;  %6850 = vmatpush3.msra.mxu1 %v8079_v7  ;;  %v2889_v41 = vld [vmem:[#allocation2 + $0x20] sm:$0xff] }
 0x3bd   :  { %6853 = vmatprep.mubr.f32.mxu1 %v8016_v40  ;;  %6099 = vmatpush3.msra.mxu0 %v8127_v14  ;;  %v8275_v47 = vsub.f32 %v8178_v48, %v9637_v38  ;;  %v3083_v40 = vand.u32 4294901760, %v8236_v5  ;;  %v3202_v38 = vand.u32 4294901760, %v8252_v28  ;;  %v8295_v5 = vand.u32 4294901760, %v2907_v24 }
 0x3be   :  { %6851 = vmatprep.subr.mxu1 %v8085_v23  ;;  %6100 = vmatprep.subr.mxu0 %v8130_v11  ;;  %v2890_v11 = vld [vmem:[#allocation2 + $0x28] sm:$0xff]  ;;  %v9642_v28 = vand.u32 4294901760, %v8209_v8  ;;  %v8309_v14 = vsub.f32 %v2908_v63, %v8263_v57  ;;  %v8323_v63 = vsub.f32 %v2892_v26, %v8281_v42 }
 0x3bf   :  { %6852 = vmatpush3.msra.mxu1 %v8085_v23  ;;  %6101 = vmatpush3.msra.mxu0 %v8140_v37  ;;  %9640 = vst [vmem:[#allocation38_spill] sm:$0xff] %v8295_v5 }
 0x3c0   :  { %6854 = vmatmul.mubr.f32.vlgmr.msra.gmra.mxu1 %v8027_v60  ;;  %6102 = vmatprep.subr.mxu0 %v8157_v13  ;;  %v8306_v37 = vsub.f32 %v8209_v8, %v9642_v28  ;;  %9643 = vst [vmem:[#allocation40_spill] sm:$0xff] %v8309_v14  ;;  %v3097_v60 = vand.u32 4294901760, %v8275_v47  ;;  %v8318_v13 = vand.u32 4294901760, %v2906_v39  ;;  %v9648_v28 = vand.u32 4294901760, %v8247_v18 }
 0x3c1   :  { %6132 = vmatprep.subr.mxu1 %v3181_v50  ;;  %6103 = vmatpush3.msra.mxu0 %v8145_v58  ;;  %v9646_v50 = vand.u32 4294901760, %v8241_v30  ;;  %v8330_v58 = vand.u32 4294901760, %v2890_v11 }
 0x3c2   :  { %9645 = vst [vmem:[#allocation41_spill] sm:$0xff] %v8318_v13  ;;  %6133 = vmatpush3.msra.mxu1 %v3069_v32  ;;  %3289 = vmatprep.mubr.f32.mxu1 %v8085_v23  ;;  %v3209_v32 = vand.u32 4294901760, %v8293_v21  ;;  %v8338_v26 = vsub.f32 %v8247_v18, %v9648_v28  ;;  %v8340_v23 = vand.u32 4294901760, %v2905_v61  ;;  %v3216_v28 = vand.u32 4294901760, %v8316_v12 }
 0x3c3   :  { %v8328_v47 = vsub.f32 %v8241_v30, %v9646_v50  ;;  %9647 = vst [vmem:[#allocation42_spill] sm:$0xff] %v8330_v58  ;;  %6104 = vmatprep.subr.mxu0 %v8180_v51  ;;  %6134 = vmatprep.subr.mxu1 %v3188_v56  ;;  %v8343_v50 = vsub.f32 %v2907_v24, %v8295_v5  ;;  %v3104_v56 = vand.u32 4294901760, %v8306_v37  ;;  %v8350_v51 = vand.u32 4294901760, %v2889_v41  ;;  %v2888_v30 = vld [vmem:[#allocation2 + $0x18] sm:$0xff] }
 0x3c4   :  { %6105 = vmatpush3.msra.mxu0 %v8172_v45  ;;  %6135 = vmatpush3.msra.mxu1 %v3076_v29  ;;  %v9650_v24 = vand.u32 4294901760, %v8270_v19  ;;  %v8360_v29 = vand.u32 4294901760, %v2904_v17  ;;  %v8363_v37 = vsub.f32 %v2906_v39, %v8318_v13  ;;  %v9652_v12 = vand.u32 4294901760, %v8285_v16 }
 0x3c5   :  { %9649 = vst [vmem:[#allocation43_spill] sm:$0xff] %v8350_v51  ;;  %6106 = vmatprep.subr.mxu0 %v8190_v62  ;;  %6136 = vmatprep.subr.mxu1 %v3195_v53  ;;  %v3223_v21 = vand.u32 4294901760, %v8328_v47  ;;  %v8368_v53 = vsub.f32 %v2890_v11, %v8330_v58  ;;  %v3111_v39 = vand.u32 4294901760, %v8338_v26  ;;  %v8376_v18 = vand.u32 4294901760, %v2888_v30  ;;  %v2902_v47 = vld [vmem:[#allocation2 + $0x88] sm:$0xff] }
 0x3c6   :  { %v8358_v45 = vsub.f32 %v8270_v19, %v9650_v24  ;;  %9651 = vst [vmem:[#allocation44_spill] sm:$0xff] %v8360_v29  ;;  %6107 = vmatpush3.msra.mxu0 %v8200_v1  ;;  %6137 = vmatpush3.msra.mxu1 %v3083_v40  ;;  %v3229_v62 = vsub.f32 %v8285_v16, %v9652_v12  ;;  %v2887_v19 = vld [vmem:[#allocation2 + $0x10] sm:$0xff]  ;;  %v9653_v24 = vand.u32 4294901760, %v8309_v14  ;;  %v2886_v1 = vld [vmem:[#allocation2 + $0x8] sm:$0xff] }
 0x3c7   :  { %6108 = vmatprep.subr.mxu0 %v8238_v0  ;;  %6138 = vmatprep.subr.mxu1 %v3202_v38  ;;  %v8380_v11 = vsub.f32 %v2905_v61, %v8340_v23  ;;  %v8384_v12 = vsub.f32 %v2889_v41, %v8350_v51  ;;  %v8389_v0 = vand.u32 4294901760, %v2903_v3  ;;  %v8394_v40 = vand.u32 4294901760, %v2887_v19 }
 0x3c8   :  { %6109 = vmatpush3.msra.mxu0 %v8224_v54  ;;  %6139 = vmatpush3.msra.mxu1 %v3090_v34  ;;  %v3236_v38 = vsub.f32 %v8309_v14, %v9653_v24  ;;  %v3118_v61 = vand.u32 4294901760, %v8358_v45  ;;  %v8398_v41 = vsub.f32 %v2904_v17, %v8360_v29  ;;  %v3230_v24 = vand.u32 4294901760, %v3229_v62  ;;  %v2901_v45 = vld [vmem:[#allocation2 + $0x80] sm:$0xff] }
 0x3c9   :  { %6110 = vmatprep.subr.mxu0 %v8263_v57  ;;  %6140 = vmatprep.subr.mxu1 %v3209_v32  ;;  %v9654_v54 = vand.u32 4294901760, %v8323_v63  ;;  %v8404_v14 = vand.u32 4294901760, %v2902_v47  ;;  %v8409_v34 = vsub.f32 %v2888_v30, %v8376_v18  ;;  %v9655_v17 = vand.u32 4294901760, %v8343_v50 }
 0x3ca   :  { %6111 = vmatpush3.msra.mxu0 %v8281_v42  ;;  %6141 = vmatpush3.msra.mxu1 %v3097_v60  ;;  %v8414_v62 = vand.u32 4294901760, %v2886_v1  ;;  %v3237_v32 = vand.u32 4294901760, %v3236_v38  ;;  %v9656_v57 = vand.u32 4294901760, %v8347_v52  ;;  %v9657_v42 = vand.u32 4294901760, %v8363_v37 }
 0x3cb   :  { %v3124_v26 = vsub.f32 %v8323_v63, %v9654_v54  ;;  %6112 = vmatprep.subr.mxu0 %v8295_v5  ;;  %6142 = vmatprep.subr.mxu1 %v3216_v28  ;;  %v3243_v60 = vsub.f32 %v8343_v50, %v9655_v17  ;;  %v2885_v54 = vld [vmem:[#allocation2] sm:$0xff]  ;;  %v8423_v5 = vsub.f32 %v2903_v3, %v8389_v0  ;;  %v8432_v38 = vand.u32 4294901760, %v2901_v45 }
 0x3cc   :  { %6113 = vmatpush3.msra.mxu0 %v8301_v20  ;;  %6143 = vmatpush3.msra.mxu1 %v3104_v56  ;;  %v3131_v28 = vsub.f32 %v8347_v52, %v9656_v57  ;;  %v8427_v17 = vsub.f32 %v2887_v19, %v8394_v40  ;;  %v3250_v56 = vsub.f32 %v8363_v37, %v9657_v42  ;;  %v9658_v3 = vand.u32 4294901760, %v8368_v53 }
 0x3cd   :  { %6114 = vmatprep.subr.mxu0 %v8318_v13  ;;  %6144 = vmatprep.subr.mxu1 %v3223_v21  ;;  %v3125_v57 = vand.u32 4294901760, %v3124_v26  ;;  %v8439_v21 = vand.u32 4294901760, %v2885_v54  ;;  %v8442_v19 = vsub.f32 %v2902_v47, %v8404_v14  ;;  %v3244_v42 = vand.u32 4294901760, %v3243_v60 }
 0x3ce   :  { %6115 = vmatpush3.msra.mxu0 %v8330_v58  ;;  %6145 = vmatpush3.msra.mxu1 %v3111_v39  ;;  %v3138_v30 = vsub.f32 %v8368_v53, %v9658_v3  ;;  %v8446_v13 = vsub.f32 %v2886_v1, %v8414_v62  ;;  %v9660_v20 = vand.u32 4294901760, %v8380_v11  ;;  %v3132_v3 = vand.u32 4294901760, %v3131_v28 }
 0x3cf   :  { %9659 = vst [vmem:[#allocation45_spill] sm:$0xff] %v8442_v19  ;;  %6116 = vmatprep.subr.mxu0 %v8340_v23  ;;  %6146 = vmatprep.subr.mxu1 %v3230_v24  ;;  %v9661_v47 = vand.u32 4294901760, %v8384_v12  ;;  %v9532_v24 = vand.u32 4294901760, %v8423_v5  ;;  %v3251_v1 = vand.u32 4294901760, %v3250_v56  ;;  %v9662_v60 = vand.u32 4294901760, %v8398_v41 }
 0x3d0   :  { %v3257_v39 = vsub.f32 %v8380_v11, %v9660_v20  ;;  %6117 = vmatpush3.msra.mxu0 %v8350_v51  ;;  %6147 = vmatpush3.msra.mxu1 %v3118_v61  ;;  %v9531_v26 = vand.u32 4294901760, %v8427_v17  ;;  %v8463_v51 = vsub.f32 %v2901_v45, %v8432_v38  ;;  %v3139_v61 = vand.u32 4294901760, %v3138_v30 }
 0x3d1   :  { %v3145_v58 = vsub.f32 %v8384_v12, %v9661_v47  ;;  %6118 = vmatprep.subr.mxu0 %v8360_v29  ;;  %6148 = vmatprep.subr.mxu1 %v3237_v32  ;;  %v3264_v20 = vsub.f32 %v8398_v41, %v9662_v60  ;;  %v8467_v28 = vsub.f32 %v2885_v54, %v8439_v21  ;;  %v9527_v47 = vand.u32 4294901760, %v8442_v19 }
 0x3d2   :  { %6119 = vmatpush3.msra.mxu0 %v8376_v18  ;;  %6149 = vmatpush3.msra.mxu1 %v3125_v57  ;;  %v3258_v32 = vand.u32 4294901760, %v3257_v39  ;;  %v9664_v56 = vand.u32 4294901760, %v8409_v34  ;;  %v9530_v45 = vand.u32 4294901760, %v8446_v13  ;;  %v3271_v54 = vsub.f32 %v8423_v5, %v9532_v24  ;;  %v9686_v24 = vld [vmem:[#allocation39_spill] sm:$0xff] }
 0x3d3   :  { %9663 = vst [vmem:[#allocation46_spill] sm:$0xff] %v8467_v28  ;;  %6120 = vmatprep.subr.mxu0 %v8389_v0  ;;  %6150 = vmatprep.subr.mxu1 %v3244_v42  ;;  %v3146_v57 = vand.u32 4294901760, %v3145_v58  ;;  %v3265_v30 = vand.u32 4294901760, %v3264_v20  ;;  %v3159_v42 = vsub.f32 %v8427_v17, %v9531_v26  ;;  %v9529_v39 = vand.u32 4294901760, %v8463_v51  ;;  %v9685_v26 = vld [vmem:[#allocation38_spill] sm:$0xff] }
 0x3d4   :  { %v3152_v60 = vsub.f32 %v8409_v34, %v9664_v56  ;;  %6121 = vmatpush3.msra.mxu0 %v8394_v40  ;;  %6151 = vmatpush3.msra.mxu1 %v3132_v3  ;;  %v3278_v58 = vsub.f32 %v8442_v19, %v9527_v47  ;;  %v9528_v3 = vand.u32 4294901760, %v8467_v28  ;;  %v3166_v20 = vsub.f32 %v8446_v13, %v9530_v45  ;;  %v9684_v45 = vld [vmem:[#allocation37_spill] sm:$0xff] }
 0x3d5   :  { %6122 = vmatprep.subr.mxu0 %v8404_v14  ;;  %6152 = vmatprep.subr.mxu1 %v3251_v1  ;;  %v3272_v56 = vand.u32 4294901760, %v3271_v54  ;;  %v3285_v47 = vsub.f32 %v8463_v51, %v9529_v39  ;;  %v9668_v54 = vld [vmem:[#allocation34_spill] sm:$0xff]  ;;  %v9683_v39 = vld [vmem:[#allocation35_spill] sm:$0xff] }
 0x3d6   :  { %6123 = vmatpush3.msra.mxu0 %v8414_v62  ;;  %6153 = vmatpush3.msra.mxu1 %v3139_v61  ;;  %v3153_v1 = vand.u32 4294901760, %v3152_v60  ;;  %v3160_v61 = vand.u32 4294901760, %v3159_v42  ;;  %v3173_v60 = vsub.f32 %v8467_v28, %v9528_v3  ;;  %v9670_v42 = vld [vmem:[#allocation20_spill] sm:$0xff]  ;;  %v9682_v3 = vld [vmem:[#allocation31_spill] sm:$0xff] }
 0x3d7   :  { %6124 = vmatprep.subr.mxu0 %v8432_v38  ;;  %6154 = vmatprep.subr.mxu1 %v3258_v32  ;;  %v3279_v32 = vand.u32 4294901760, %v3278_v58  ;;  %v9671_v58 = vld [vmem:[#allocation23_spill] sm:$0xff] }
 0x3d8   :  { %6125 = vmatpush3.msra.mxu0 %v8439_v21  ;;  %6155 = vmatpush3.msra.mxu1 %v3146_v57  ;;  %v3167_v57 = vand.u32 4294901760, %v3166_v20  ;;  %v9673_v20 = vld [vmem:[#allocation24_spill] sm:$0xff] }
 0x3d9   :  { %3044 = vmatmul.mubr.f32.vlgmr.msra.gmra.mxu0 %v8021_v43  ;;  %6156 = vmatprep.subr.mxu1 %v3265_v30  ;;  %v3286_v43 = vand.u32 4294901760, %v3285_v47  ;;  %v9667_v47 = vld [vmem:[#allocation21_spill] sm:$0xff]  ;;  %v9669_v30 = vld [vmem:[#allocation22_spill] sm:$0xff] }
 0x3da   :  { %6170 = vmatprep.subr.mxu0 %v8113_v59  ;;  %3053 = vmatprep.mubr.f32.mxu0 %v8120_v44  ;;  %v3174_v44 = vand.u32 4294901760, %v3173_v60  ;;  %v9677_v60 = vld [vmem:[#allocation28_spill] sm:$0xff] }
 0x3db   :  { %6157 = vmatpush3.msra.mxu1 %v3153_v1  ;;  %6171 = vmatpush3.msra.mxu0 %v8125_v49  ;;  %v9672_v1 = vld [vmem:[#allocation36_spill] sm:$0xff] }
 0x3dc   :  { %6158 = vmatprep.subr.mxu1 %v3272_v56  ;;  %6172 = vmatprep.subr.mxu0 %v8133_v33  ;;  %v9674_v56 = vld [vmem:[#allocation40_spill] sm:$0xff] }
 0x3dd   :  { %6159 = vmatpush3.msra.mxu1 %v3160_v61  ;;  %6173 = vmatpush3.msra.mxu0 %v8138_v22  ;;  %v9675_v61 = vld [vmem:[#allocation26_spill] sm:$0xff] }
 0x3de   :  { %3059 = vmatmul.mubr.f32.gmra.mxu0 %v7994_v55  ;;  %6160 = vmatprep.subr.mxu1 %v3279_v32  ;;  %v9665_v55 = vld [vmem:[#allocation8_spill] sm:$0xff]  ;;  %v9676_v32 = vld [vmem:[#allocation25_spill] sm:$0xff] }
 0x3df   :  { %6174 = vmatprep.subr.mxu0 %v8148_v2  ;;  %6161 = vmatpush3.msra.mxu1 %v3167_v57  ;;  %v9678_v57 = vld [vmem:[#allocation27_spill] sm:$0xff] }
 0x3e0   :  { %6175 = vmatpush3.msra.mxu0 %v8153_v4  ;;  %3433 = vmatprep.mubr.f32.mxu0 %v8092_v15  ;;  %v9666_v15 = vld [vmem:[#allocation33_spill] sm:$0xff] }
 0x3e1   :  { %6162 = vmatprep.subr.mxu1 %v3286_v43  ;;  %6176 = vmatprep.subr.mxu0 %v8161_v31  ;;  %v9679_v43 = vld [vmem:[#allocation29_spill] sm:$0xff] }
 0x3e2   :  { %6163 = vmatpush3.msra.mxu1 %v3174_v44  ;;  %6177 = vmatpush3.msra.mxu0 %v8165_v10  ;;  %v9680_v44 = vld [vmem:[#allocation30_spill] sm:$0xff] }
 0x3e3   :  { %3291 = vmatmul.mubr.f32.vlgmr.msra.gmra.mxu1 %v8003_v9  ;;  %6178 = vmatprep.subr.mxu0 %v8204_v27  ;;  %v9689_v9 = vld [vmem:[#allocation43_spill] sm:$0xff] }
 0x3e4   :  { %6208 = vmatprep.subr.mxu1 %v8088_v35  ;;  %3296 = vmatprep.mubr.f32.mxu1 %v8079_v7  ;;  %v9688_v7 = vld [vmem:[#allocation42_spill] sm:$0xff] }
 0x3e5   :  { %6179 = vmatpush3.msra.mxu0 %v8178_v48  ;;  %6209 = vmatpush3.msra.mxu1 %v8098_v25 }
 0x3e6   :  { %6180 = vmatprep.subr.mxu0 %v8228_v46  ;;  %6210 = vmatprep.subr.mxu1 %v8101_v36 }
 0x3e7   :  { %6181 = vmatpush3.msra.mxu0 %v8209_v8  ;;  %6211 = vmatpush3.msra.mxu1 %v8110_v6 }
 0x3e8   :  { %3298 = vmatmul.mubr.f32.gmra.mxu1 %v9665_v55  ;;  %6182 = vmatprep.subr.mxu0 %v9666_v15  ;;  %v9687_v55 = vld [vmem:[#allocation41_spill] sm:$0xff] }
 0x3e9   :  { %6212 = vmatprep.subr.mxu1 %v9667_v47  ;;  %6183 = vmatpush3.msra.mxu0 %v9668_v54 }
 0x3ea   :  { %6213 = vmatpush3.msra.mxu1 %v9669_v30  ;;  %3549 = vmatprep.mubr.f32.mxu1 %v9670_v42  ;;  %v9681_v42 = vld [vmem:[#allocation32_spill] sm:$0xff] }
 0x3eb   :  { %6184 = vmatprep.subr.mxu0 %v8285_v16  ;;  %6214 = vmatprep.subr.mxu1 %v9671_v58 }
 0x3ec   :  { %6185 = vmatpush3.msra.mxu0 %v9672_v1  ;;  %6215 = vmatpush3.msra.mxu1 %v9673_v20 }
 0x3ed   :  { %6186 = vmatprep.subr.mxu0 %v9674_v56  ;;  %6216 = vmatprep.subr.mxu1 %v9675_v61 }
 0x3ee   :  { %6187 = vmatpush3.msra.mxu0 %v8323_v63  ;;  %6217 = vmatpush3.msra.mxu1 %v9676_v32 }
 0x3ef   :  { %6188 = vmatprep.subr.mxu0 %v8343_v50  ;;  %6218 = vmatprep.subr.mxu1 %v9677_v60 }
 0x3f0   :  { %6189 = vmatpush3.msra.mxu0 %v8347_v52  ;;  %6219 = vmatpush3.msra.mxu1 %v9678_v57 }
 0x3f1   :  { %6190 = vmatprep.subr.mxu0 %v8363_v37  ;;  %6220 = vmatprep.subr.mxu1 %v9679_v43 }
 0x3f2   :  { %6191 = vmatpush3.msra.mxu0 %v8368_v53  ;;  %6221 = vmatpush3.msra.mxu1 %v9680_v44 }
 0x3f3   :  { %6192 = vmatprep.subr.mxu0 %v8380_v11  ;;  %6222 = vmatprep.subr.mxu1 %v9681_v42 }
 0x3f4   :  { %6193 = vmatpush3.msra.mxu0 %v8384_v12  ;;  %6223 = vmatpush3.msra.mxu1 %v9682_v3 }
 0x3f5   :  { %6194 = vmatprep.subr.mxu0 %v8398_v41  ;;  %6224 = vmatprep.subr.mxu1 %v9683_v39 }
 0x3f6   :  { %6195 = vmatpush3.msra.mxu0 %v8409_v34  ;;  %6225 = vmatpush3.msra.mxu1 %v9684_v45 }
 0x3f7   :  { %6196 = vmatprep.subr.mxu0 %v8423_v5  ;;  %6226 = vmatprep.subr.mxu1 %v9685_v26  ;;  %v9690_v26 = vld [vmem:[#allocation12_spill] sm:$0xff] }
 0x3f8   :  { %6197 = vmatpush3.msra.mxu0 %v8427_v17  ;;  %6227 = vmatpush3.msra.mxu1 %v9686_v24 }
 0x3f9   :  { %6198 = vmatprep.subr.mxu0 %v8442_v19  ;;  %6228 = vmatprep.subr.mxu1 %v9687_v55  ;;  %v9691_v19 = vand.u32 4294901760, %v8113_v59  ;;  %v9692_v55 = vld [vmem:[#allocation17_spill] sm:$0xff]  ;;  %v9697_v59 = vand.u32 4294901760, %v8148_v2  ;;  %v9703_v2 = vand.u32 4294901760, %v8204_v27  ;;  %v9708_v27 = vld [vmem:[#allocation10_spill] sm:$0xff] }
 0x3fa   :  { %6199 = vmatpush3.msra.mxu0 %v8446_v13  ;;  %6229 = vmatpush3.msra.mxu1 %v9688_v7  ;;  %v9693_v7 = vand.u32 4294901760, %v8125_v49  ;;  %v9699_v49 = vld [vmem:[#allocation18_spill] sm:$0xff] }
 0x3fb   :  { %6200 = vmatprep.subr.mxu0 %v8463_v51  ;;  %6230 = vmatprep.subr.mxu1 %v8340_v23 }
 0x3fc   :  { %6201 = vmatpush3.msra.mxu0 %v8467_v28  ;;  %6231 = vmatpush3.msra.mxu1 %v9689_v9  ;;  %v9694_v28 = vand.u32 4294901760, %v8133_v33  ;;  %v9700_v33 = vand.u32 4294901760, %v8161_v31  ;;  %v9706_v31 = vand.u32 4294901760, %v8228_v46  ;;  %v9714_v46 = vand.u32 4294901760, %v8323_v63 }
 0x3fd   :  { %3436 = vmatmul.mubr.f32.vlgmr.msra.gmra.mxu0 %v9690_v26  ;;  %6232 = vmatprep.subr.mxu1 %v8360_v29  ;;  %v9695_v26 = vand.u32 4294901760, %v8138_v22  ;;  %v9696_v29 = vld [vmem:[#allocation9_spill] sm:$0xff]  ;;  %v9701_v22 = vand.u32 4294901760, %v8165_v10  ;;  %v9707_v10 = vand.u32 4294901760, %v8209_v8 }
 0x3fe   :  { %6246 = vmatprep.subr.mxu0 %v9691_v19  ;;  %3442 = vmatprep.mubr.f32.mxu0 %v9692_v55  ;;  %v9705_v19 = vand.u32 4294901760, %v8178_v48  ;;  %v9710_v48 = vand.u32 4294901760, %v9668_v54  ;;  %v2932_v8 = vld [vmem:[#allocation2 + $0x178] sm:$0xff]  ;;  %v2931_v55 = vld [vmem:[#allocation2 + $0x170] sm:$0xff]  ;;  %v9719_v54 = vand.u32 4294901760, %v8380_v11 }
 0x3ff   :  { %6233 = vmatpush3.msra.mxu1 %v8376_v18  ;;  %6247 = vmatpush3.msra.mxu0 %v9693_v7  ;;  %v9698_v7 = vand.u32 4294901760, %v8153_v4  ;;  %v9704_v4 = vld [vmem:[#allocation19_spill] sm:$0xff]  ;;  %v8635_v63 = vand.u32 4294901760, %v2932_v8 }
 0x400   :  { %6234 = vmatprep.subr.mxu1 %v8389_v0  ;;  %6248 = vmatprep.subr.mxu0 %v9694_v28  ;;  %v9716_v28 = vand.u32 4294901760, %v8347_v52  ;;  %v8643_v52 = vand.u32 4294901760, %v2931_v55 }
 0x401   :  { %6235 = vmatpush3.msra.mxu1 %v8394_v40  ;;  %6249 = vmatpush3.msra.mxu0 %v9695_v26 }
 0x402   :  { %3445 = vmatmul.mubr.f32.gmra.mxu0 %v9696_v29  ;;  %6236 = vmatprep.subr.mxu1 %v8404_v14  ;;  %v9702_v29 = vld [vmem:[#allocation13_spill] sm:$0xff] }
 0x403   :  { %6250 = vmatprep.subr.mxu0 %v9697_v59  ;;  %6237 = vmatpush3.msra.mxu1 %v8414_v62 }
 0x404   :  { %6251 = vmatpush3.msra.mxu0 %v9698_v7  ;;  %3730 = vmatprep.mubr.f32.mxu0 %v9699_v49  ;;  %v2925_v7 = vld [vmem:[#allocation2 + $0x140] sm:$0xff] }
 0x405   :  { %6238 = vmatprep.subr.mxu1 %v8432_v38  ;;  %6252 = vmatprep.subr.mxu0 %v9700_v33 }
 0x406   :  { %6239 = vmatpush3.msra.mxu1 %v8439_v21  ;;  %6253 = vmatpush3.msra.mxu0 %v9701_v22  ;;  %v9735_v22 = vld [vmem:[#allocation44_spill] sm:$0xff] }
 0x407   :  { %3553 = vmatmul.mubr.f32.vlgmr.msra.gmra.mxu1 %v9702_v29  ;;  %6254 = vmatprep.subr.mxu0 %v9703_v2 }
 0x408   :  { %6284 = vmatprep.subr.mxu1 %v8088_v35  ;;  %3560 = vmatprep.mubr.f32.mxu1 %v9704_v4  ;;  %v9709_v35 = vand.u32 4294901760, %v9666_v15  ;;  %v9717_v15 = vand.u32 4294901760, %v8363_v37  ;;  %v9720_v37 = vand.u32 4294901760, %v8384_v12  ;;  %v2928_v12 = vld [vmem:[#allocation2 + $0x158] sm:$0xff]  ;;  %v9736_v4 = vld [vmem:[#allocation16_spill] sm:$0xff] }
 0x409   :  { %6255 = vmatpush3.msra.mxu0 %v9705_v19  ;;  %6285 = vmatpush3.msra.mxu1 %v8098_v25  ;;  %v9711_v25 = vand.u32 4294901760, %v8285_v16  ;;  %v9715_v16 = vand.u32 4294901760, %v8343_v50  ;;  %v2930_v50 = vld [vmem:[#allocation2 + $0x168] sm:$0xff]  ;;  %v2924_v19 = vld [vmem:[#allocation2 + $0x138] sm:$0xff] }
 0x40a   :  { %6256 = vmatprep.subr.mxu0 %v9706_v31  ;;  %6286 = vmatprep.subr.mxu1 %v8101_v36  ;;  %v9712_v36 = vand.u32 4294901760, %v9672_v1  ;;  %v8654_v11 = vand.u32 4294901760, %v2930_v50  ;;  %v9722_v1 = vand.u32 4294901760, %v8409_v34  ;;  %v2927_v34 = vld [vmem:[#allocation2 + $0x150] sm:$0xff] }
 0x40b   :  { %6257 = vmatpush3.msra.mxu0 %v9707_v10  ;;  %6287 = vmatpush3.msra.mxu1 %v8110_v6  ;;  %v9713_v6 = vand.u32 4294901760, %v9674_v56  ;;  %v9725_v56 = vand.u32 4294901760, %v8427_v17  ;;  %v9729_v17 = vand.u32 4294901760, %v8446_v13  ;;  %v8693_v59 = vand.u32 4294901760, %v2927_v34 }
 0x40c   :  { %3564 = vmatmul.mubr.f32.gmra.mxu1 %v9708_v27  ;;  %6258 = vmatprep.subr.mxu0 %v9709_v35  ;;  %v2923_v35 = vld [vmem:[#allocation2 + $0x130] sm:$0xff] }
 0x40d   :  { %6288 = vmatprep.subr.mxu1 %v9667_v47  ;;  %6259 = vmatpush3.msra.mxu0 %v9710_v48  ;;  %v9718_v47 = vand.u32 4294901760, %v8368_v53  ;;  %v8652_v53 = vsub.f32 %v2932_v8, %v8635_v63  ;;  %v8722_v27 = vsub.f32 %v2927_v34, %v8693_v59 }
 0x40e   :  { %6289 = vmatpush3.msra.mxu1 %v9669_v30  ;;  %3841 = vmatprep.mubr.f32.mxu1 %v9699_v49  ;;  %v2929_v30 = vld [vmem:[#allocation2 + $0x160] sm:$0xff] }
 0x40f   :  { %6260 = vmatprep.subr.mxu0 %v9711_v25  ;;  %6290 = vmatprep.subr.mxu1 %v9671_v58  ;;  %v9721_v58 = vand.u32 4294901760, %v8398_v41  ;;  %v8663_v41 = vsub.f32 %v2931_v55, %v8643_v52  ;;  %v9732_v49 = vld [vmem:[#allocation46_spill] sm:$0xff] }
 0x410   :  { %6261 = vmatpush3.msra.mxu0 %v9712_v36  ;;  %6291 = vmatpush3.msra.mxu1 %v9673_v20  ;;  %v9723_v20 = vand.u32 4294901760, %v8423_v5  ;;  %v8674_v5 = vand.u32 4294901760, %v8652_v53  ;;  %v9733_v33 = vand.u32 4294901760, %v9732_v49  ;;  %v2921_v55 = vld [vmem:[#allocation2 + $0x120] sm:$0xff] }
 0x411   :  { %6262 = vmatprep.subr.mxu0 %v9713_v6  ;;  %6292 = vmatprep.subr.mxu1 %v9675_v61  ;;  %v9726_v61 = vld [vmem:[#allocation45_spill] sm:$0xff]  ;;  %v8736_v6 = vand.u32 4294901760, %v2924_v19  ;;  %v2917_v49 = vld [vmem:[#allocation2 + $0x100] sm:$0xff] }
 0x412   :  { %6263 = vmatpush3.msra.mxu0 %v9714_v46  ;;  %6293 = vmatpush3.msra.mxu1 %v9676_v32  ;;  %v9727_v32 = vand.u32 4294901760, %v9726_v61  ;;  %v2922_v46 = vld [vmem:[#allocation2 + $0x128] sm:$0xff] }
 0x413   :  { %6264 = vmatprep.subr.mxu0 %v9715_v16  ;;  %6294 = vmatprep.subr.mxu1 %v9677_v60  ;;  %v8677_v60 = vsub.f32 %v2930_v50, %v8654_v11  ;;  %v8747_v16 = vand.u32 4294901760, %v8722_v27  ;;  %v8763_v50 = vand.u32 4294901760, %v2922_v46 }
 0x414   :  { %6265 = vmatpush3.msra.mxu0 %v9716_v28  ;;  %6295 = vmatpush3.msra.mxu1 %v9678_v57  ;;  %v8679_v57 = vand.u32 4294901760, %v2928_v12  ;;  %v8750_v28 = vand.u32 4294901760, %v2923_v35 }
 0x415   :  { %6266 = vmatprep.subr.mxu0 %v9717_v15  ;;  %6296 = vmatprep.subr.mxu1 %v9679_v43  ;;  %v2926_v43 = vld [vmem:[#allocation2 + $0x148] sm:$0xff]  ;;  %v8705_v29 = vand.u32 4294901760, %v8677_v60  ;;  %v8785_v34 = vsub.f32 %v2922_v46, %v8763_v50 }
 0x416   :  { %6267 = vmatpush3.msra.mxu0 %v9718_v47  ;;  %6297 = vmatpush3.msra.mxu1 %v9680_v44  ;;  %v9730_v44 = vld [vmem:[#allocation42_spill] sm:$0xff]  ;;  %v8698_v13 = vand.u32 4294901760, %v2926_v43  ;;  %v8708_v2 = vsub.f32 %v2928_v12, %v8679_v57  ;;  %v8761_v47 = vsub.f32 %v2924_v19, %v8736_v6 }
 0x417   :  { %6268 = vmatprep.subr.mxu0 %v9719_v54  ;;  %6298 = vmatprep.subr.mxu1 %v9681_v42  ;;  %v8688_v42 = vand.u32 4294901760, %v8663_v41  ;;  %v3974_v25 = vsub.f32 %v8677_v60, %v8705_v29  ;;  %v2920_v54 = vld [vmem:[#allocation2 + $0x118] sm:$0xff] }
 0x418   :  { %6269 = vmatpush3.msra.mxu0 %v9720_v37  ;;  %6299 = vmatpush3.msra.mxu1 %v9682_v3  ;;  %v9724_v3 = vld [vmem:[#allocation38_spill] sm:$0xff]  ;;  %v8734_v36 = vand.u32 4294901760, %v8708_v2  ;;  %v8787_v61 = vand.u32 4294901760, %v2920_v54 }
 0x419   :  { %6270 = vmatprep.subr.mxu0 %v9721_v58  ;;  %6300 = vmatprep.subr.mxu1 %v9683_v39  ;;  %v8665_v39 = vand.u32 4294901760, %v2929_v30  ;;  %v3967_v31 = vsub.f32 %v8663_v41, %v8688_v42  ;;  %v8773_v58 = vsub.f32 %v2923_v35, %v8750_v28 }
 0x41a   :  { %6271 = vmatpush3.msra.mxu0 %v9722_v1  ;;  %6301 = vmatpush3.msra.mxu1 %v9684_v45  ;;  %v9728_v45 = vld [vmem:[#allocation41_spill] sm:$0xff]  ;;  %v3988_v15 = vsub.f32 %v8708_v2, %v8734_v36  ;;  %v8775_v1 = vand.u32 4294901760, %v2921_v55 }
 0x41b   :  { %6272 = vmatprep.subr.mxu0 %v9723_v20  ;;  %6302 = vmatprep.subr.mxu1 %v9724_v3  ;;  %v8691_v26 = vsub.f32 %v2929_v30, %v8665_v39  ;;  %v3995_v30 = vsub.f32 %v8722_v27, %v8747_v16  ;;  %v2919_v20 = vld [vmem:[#allocation2 + $0x110] sm:$0xff] }
 0x41c   :  { %6273 = vmatpush3.msra.mxu0 %v9725_v56  ;;  %6303 = vmatpush3.msra.mxu1 %v9686_v24  ;;  %v9731_v24 = vand.u32 4294901760, %v8463_v51  ;;  %v9734_v51 = vld [vmem:[#allocation11_spill] sm:$0xff]  ;;  %v3989_v3 = vand.u32 4294901760, %v3988_v15  ;;  %v8782_v56 = vand.u32 4294901760, %v8761_v47 }
 0x41d   :  { %6274 = vmatprep.subr.mxu0 %v9727_v32  ;;  %6304 = vmatprep.subr.mxu1 %v9728_v45  ;;  %v8718_v10 = vand.u32 4294901760, %v8691_v26  ;;  %v2918_v45 = vld [vmem:[#allocation2 + $0x108] sm:$0xff] }
 0x41e   :  { %6275 = vmatpush3.msra.mxu0 %v9729_v17  ;;  %6305 = vmatpush3.msra.mxu1 %v9730_v44  ;;  %9739 = vst [vmem:[#allocation21_spill] sm:$0xff] %v8782_v56  ;;  %v8794_v17 = vand.u32 4294901760, %v8773_v58  ;;  %v8797_v44 = vsub.f32 %v2921_v55, %v8775_v1 }
 0x41f   :  { %6276 = vmatprep.subr.mxu0 %v9731_v24  ;;  %6306 = vmatprep.subr.mxu1 %v8340_v23  ;;  %v3960_v23 = vsub.f32 %v8652_v53, %v8674_v5  ;;  %v3981_v8 = vsub.f32 %v8691_v26, %v8718_v10  ;;  %v8799_v24 = vand.u32 4294901760, %v2919_v20 }
 0x420   :  { %6277 = vmatpush3.msra.mxu0 %v9733_v33  ;;  %6307 = vmatpush3.msra.mxu1 %v9689_v9  ;;  %v8712_v9 = vand.u32 4294901760, %v2925_v7  ;;  %9740 = vst [vmem:[#allocation34_spill] sm:$0xff] %v8794_v17  ;;  %v4016_v33 = vsub.f32 %v8761_v47, %v8782_v56  ;;  %v4023_v19 = vsub.f32 %v8773_v58, %v8794_v17  ;;  %v9747_v56 = vld [vmem:[#allocation14_spill] sm:$0xff] }
 0x421   :  { %3732 = vmatmul.mubr.f32.vlgmr.msra.gmra.mxu0 %v9734_v51  ;;  %6308 = vmatprep.subr.mxu1 %v9735_v22  ;;  %v3961_v48 = vand.u32 4294901760, %v3960_v23  ;;  %v3982_v37 = vand.u32 4294901760, %v3981_v8  ;;  %v8809_v22 = vsub.f32 %v2920_v54, %v8787_v61  ;;  %v8811_v23 = vand.u32 4294901760, %v2918_v45 }
 0x422   :  { %3737 = vmatprep.mubr.f32.mxu0 %v9736_v4  ;;  %6309 = vmatpush3.msra.mxu1 %v8376_v18  ;;  %v8727_v18 = vsub.f32 %v2926_v43, %v8698_v13  ;;  %v3996_v43 = vand.u32 4294901760, %v3995_v30  ;;  %v8821_v35 = vsub.f32 %v2919_v20, %v8799_v24  ;;  %v4024_v8 = vand.u32 4294901760, %v4023_v19 }
 0x423   :  { %6310 = vmatprep.subr.mxu1 %v8389_v0  ;;  %6856 = vmatprep.subr.mxu0 %v8635_v63  ;;  %v9737_v0 = vld [vmem:[#allocation8_spill] sm:$0xff]  ;;  %v8830_v46 = vand.u32 4294901760, %v8809_v22 }
 0x424   :  { %6311 = vmatpush3.msra.mxu1 %v8394_v40  ;;  %6857 = vmatpush3.msra.mxu0 %v8635_v63  ;;  %v8741_v40 = vsub.f32 %v2925_v7, %v8712_v9 }
 0x425   :  { %3739 = vmatmul.mubr.f32.gmra.mxu0 %v9737_v0  ;;  %6312 = vmatprep.subr.mxu1 %v8404_v14  ;;  %v3968_v14 = vand.u32 4294901760, %v3967_v31  ;;  %v8818_v31 = vand.u32 4294901760, %v8797_v44  ;;  %9743 = vst [vmem:[#allocation23_spill] sm:$0xff] %v8830_v46 }
 0x426   :  { %6313 = vmatpush3.msra.mxu1 %v8414_v62  ;;  %6858 = vmatprep.subr.mxu0 %v8643_v52  ;;  %v8755_v62 = vand.u32 4294901760, %v8727_v18 }
 0x427   :  { %6314 = vmatprep.subr.mxu1 %v8432_v38  ;;  %6859 = vmatpush3.msra.mxu0 %v8643_v52  ;;  %v3975_v38 = vand.u32 4294901760, %v3974_v25  ;;  %9742 = vst [vmem:[#allocation20_spill] sm:$0xff] %v8818_v31  ;;  %v4037_v55 = vsub.f32 %v8797_v44, %v8818_v31 }
 0x428   :  { %6315 = vmatpush3.msra.mxu1 %v8439_v21  ;;  %6860 = vmatprep.subr.mxu0 %v8654_v11  ;;  %v8767_v21 = vand.u32 4294901760, %v8741_v40  ;;  %v4002_v12 = vsub.f32 %v8727_v18, %v8755_v62 }
 0x429   :  { %3843 = vmatmul.mubr.f32.vlgmr.msra.gmra.mxu1 %v9734_v51  ;;  %6891 = vmatprep.subr.mxu1 %v3961_v48  ;;  %v8806_v51 = vand.u32 4294901760, %v8785_v34 }
 0x42a   :  { %3848 = vmatprep.mubr.f32.mxu1 %v9736_v4  ;;  %6892 = vmatpush3.msra.mxu1 %v3961_v48  ;;  %9738 = vst [vmem:[#allocation33_spill] sm:$0xff] %v8767_v21  ;;  %v4009_v32 = vsub.f32 %v8741_v40, %v8767_v21  ;;  %v4003_v7 = vand.u32 4294901760, %v4002_v12  ;;  %v4017_v48 = vand.u32 4294901760, %v4016_v33  ;;  %v4038_v12 = vand.u32 4294901760, %v4037_v55 }
 0x42b   :  { %6893 = vmatprep.subr.mxu1 %v3968_v14  ;;  %6861 = vmatpush3.msra.mxu0 %v8654_v11  ;;  %9741 = vst [vmem:[#allocation22_spill] sm:$0xff] %v8806_v51  ;;  %v4030_v25 = vsub.f32 %v8785_v34, %v8806_v51 }
 0x42c   :  { %6894 = vmatpush3.msra.mxu1 %v3968_v14  ;;  %6862 = vmatprep.subr.mxu0 %v8665_v39  ;;  %v4010_v4 = vand.u32 4294901760, %v4009_v32  ;;  %v8833_v14 = vsub.f32 %v2918_v45, %v8811_v23 }
 0x42d   :  { %3850 = vmatmul.mubr.f32.gmra.mxu1 %v9737_v0  ;;  %6895 = vmatprep.subr.mxu1 %v3975_v38  ;;  %v8823_v0 = vand.u32 4294901760, %v2917_v49  ;;  %v4031_v54 = vand.u32 4294901760, %v4030_v25 }
 0x42e   :  { %6896 = vmatpush3.msra.mxu1 %v3975_v38  ;;  %6863 = vmatpush3.msra.mxu0 %v8665_v39  ;;  %v8840_v38 = vand.u32 4294901760, %v8821_v35  ;;  %v8850_v30 = vand.u32 4294901760, %v8833_v14 }
 0x42f   :  { %6897 = vmatprep.subr.mxu1 %v3982_v37  ;;  %6864 = vmatprep.subr.mxu0 %v8679_v57  ;;  %v8843_v15 = vsub.f32 %v2917_v49, %v8823_v0 }
 0x430   :  { %6898 = vmatpush3.msra.mxu1 %v3982_v37  ;;  %6865 = vmatpush3.msra.mxu0 %v8679_v57  ;;  %9744 = vst [vmem:[#allocation36_spill] sm:$0xff] %v8840_v38  ;;  %v4044_v37 = vsub.f32 %v8809_v22, %v8830_v46  ;;  %9745 = vst [vmem:[#allocation24_spill] sm:$0xff] %v8850_v30  ;;  %v4051_v20 = vsub.f32 %v8821_v35, %v8840_v38 }
 0x431   :  { %6899 = vmatprep.subr.mxu1 %v3989_v3  ;;  %6866 = vmatprep.subr.mxu0 %v8693_v59  ;;  %v4058_v45 = vsub.f32 %v8833_v14, %v8850_v30 }
 0x432   :  { %6900 = vmatpush3.msra.mxu1 %v3989_v3  ;;  %6867 = vmatpush3.msra.mxu0 %v8693_v59  ;;  %v8857_v3 = vand.u32 4294901760, %v8843_v15  ;;  %v4045_v32 = vand.u32 4294901760, %v4044_v37 }
 0x433   :  { %6901 = vmatprep.subr.mxu1 %v3996_v43  ;;  %6868 = vmatprep.subr.mxu0 %v8698_v13  ;;  %v4059_v49 = vand.u32 4294901760, %v4058_v45 }
 0x434   :  { %6902 = vmatpush3.msra.mxu1 %v3996_v43  ;;  %6869 = vmatpush3.msra.mxu0 %v8698_v13  ;;  %9746 = vst [vmem:[#allocation40_spill] sm:$0xff] %v8857_v3  ;;  %v4052_v43 = vand.u32 4294901760, %v4051_v20 }
 0x435   :  { %6903 = vmatprep.subr.mxu1 %v4003_v7  ;;  %6870 = vmatprep.subr.mxu0 %v8712_v9 }
 0x436   :  { %6904 = vmatpush3.msra.mxu1 %v4003_v7  ;;  %6871 = vmatpush3.msra.mxu0 %v8712_v9  ;;  %v4065_v7 = vsub.f32 %v8843_v15, %v8857_v3 }
 0x437   :  { %6905 = vmatprep.subr.mxu1 %v4010_v4  ;;  %6872 = vmatprep.subr.mxu0 %v8736_v6 }
 0x438   :  { %6906 = vmatpush3.msra.mxu1 %v4010_v4  ;;  %6873 = vmatpush3.msra.mxu0 %v8736_v6  ;;  %v4066_v33 = vand.u32 4294901760, %v4065_v7 }
 0x439   :  { %6907 = vmatprep.subr.mxu1 %v4017_v48  ;;  %6874 = vmatprep.subr.mxu0 %v8750_v28 }
 0x43a   :  { %6908 = vmatpush3.msra.mxu1 %v4017_v48  ;;  %6875 = vmatpush3.msra.mxu0 %v8750_v28 }
 0x43b   :  { %6909 = vmatprep.subr.mxu1 %v4024_v8  ;;  %6876 = vmatprep.subr.mxu0 %v8763_v50 }
 0x43c   :  { %6910 = vmatpush3.msra.mxu1 %v4024_v8  ;;  %6877 = vmatpush3.msra.mxu0 %v8763_v50 }
 0x43d   :  { %6911 = vmatprep.subr.mxu1 %v4031_v54  ;;  %6878 = vmatprep.subr.mxu0 %v8775_v1 }
 0x43e   :  { %6912 = vmatpush3.msra.mxu1 %v4031_v54  ;;  %6879 = vmatpush3.msra.mxu0 %v8775_v1 }
 0x43f   :  { %6913 = vmatprep.subr.mxu1 %v4038_v12  ;;  %6880 = vmatprep.subr.mxu0 %v8787_v61 }
 0x440   :  { %6914 = vmatpush3.msra.mxu1 %v4038_v12  ;;  %6881 = vmatpush3.msra.mxu0 %v8787_v61 }
 0x441   :  { %6915 = vmatprep.subr.mxu1 %v4045_v32  ;;  %6882 = vmatprep.subr.mxu0 %v8799_v24 }
 0x442   :  { %6916 = vmatpush3.msra.mxu1 %v4045_v32  ;;  %6883 = vmatpush3.msra.mxu0 %v8799_v24 }
 0x443   :  { %6917 = vmatprep.subr.mxu1 %v4052_v43  ;;  %6884 = vmatprep.subr.mxu0 %v8811_v23 }
 0x444   :  { %6918 = vmatpush3.msra.mxu1 %v4052_v43  ;;  %6885 = vmatpush3.msra.mxu0 %v8811_v23 }
 0x445   :  { %6919 = vmatprep.subr.mxu1 %v4059_v49  ;;  %6886 = vmatprep.subr.mxu0 %v8823_v0 }
 0x446   :  { %6920 = vmatpush3.msra.mxu1 %v4059_v49  ;;  %6887 = vmatpush3.msra.mxu0 %v8823_v0 }
 0x447   :  { %6921 = vmatprep.subr.mxu1 %v4066_v33  ;;  %6926 = vmatprep.subr.mxu0 %v8652_v53 }
 0x448   :  { %6922 = vmatpush3.msra.mxu1 %v4066_v33 }
 0x449   :  { %6961 = vmatprep.subr.mxu1 %v8635_v63 }
 0x46c   :  { %v6820_v4 = vpop.f32.mrf.mxu0 }
 0x46e   :  { %v2452_v19 = vpop.f32.mrf.mxu0 }
 0x470   :  { %v6834_v48 = vpop.f32.mrf.mxu0 }
 0x472   :  { %v2625_v55 = vpop.f32.mrf.mxu0 }
 0x475   :  { %v6827_v25 = vpop.f32.mrf.mxu1 }
 0x476   :  { %v2550_v8 = vadd.f32 %v6827_v25, %v6820_v4  ;;  %v6848_v32 = vpop.f32.mrf.mxu0 }
 0x477   :  { %v2543_v54 = vpop.f32.mrf.mxu1 }
 0x478   :  { %v2544_v37 = vadd.f32 %v2543_v54, %v2452_v19  ;;  %v2633_v12 = vadd.f32 %v6834_v48, %v2550_v8  ;;  %v2792_v30 = vpop.f32.mrf.mxu0  ;;  %v9748_v19 = vld [vmem:[#allocation15_spill] sm:$0xff] }
 0x47a   :  { %v2626_v20 = vadd.f32 %v2625_v55, %v2544_v37 }
 0x47b   :  { %v6841_v45 = vpop.f32.mrf.mxu1 }
 0x47c   :  { %v2716_v43 = vadd.f32 %v6841_v45, %v2633_v12 }
 0x47d   :  { %v2707_v7 = vpop.f32.mrf.mxu1 }
 0x47e   :  { %v2708_v49 = vadd.f32 %v2707_v7, %v2626_v20  ;;  %v2799_v3 = vadd.f32 %v6848_v32, %v2716_v43  ;;  %v4600_v43 = vld [vmem:[%s9458_s3 + $0x38] sm:$0xff] }
 0x480   :  { %v6855_v33 = vpop.f32.mrf.mxu1  ;;  %v2793_v38 = vadd.f32 %v2792_v30, %v2708_v49 }
 0x481   :  { %v2878_v46 = vadd.f32 %v6855_v33, %v2799_v3  ;;  %v4601_v3 = vld [vmem:[%s9458_s3 + $0x40] sm:$0xff] }
 0x482   :  { %v2871_v31 = vpop.f32.mrf.mxu1  ;;  %v9121_v32 = vand.u32 4294901760, %v4601_v3 }
 0x483   :  { %v2882_v51 = vmul.f32 0.95, %v2878_v46  ;;  %v2872_v17 = vadd.f32 %v2871_v31, %v2793_v38 }
 0x484   :  { %v9136_v33 = vsub.f32 %v4601_v3, %v9121_v32 }
 0x485   :  { %v2884_v4 = vadd.f32 %v2882_v51, %v9747_v56  ;;  %v2881_v25 = vmul.f32 0.95, %v2872_v17 }
 0x487   :  { %v8877_v21 = vand.u32 4294901760, %v2884_v4  ;;  %v2883_v48 = vadd.f32 %v2881_v25, %v9748_v19  ;;  %v4599_v19 = vld [vmem:[%s9458_s3 + $0x30] sm:$0xff] }
 0x489   :  { %v8881_v8 = vsub.f32 %v2884_v4, %v8877_v21  ;;  %v8883_v55 = vand.u32 4294901760, %v2883_v48  ;;  %v9138_v4 = vand.u32 4294901760, %v4600_v43 }
 0x48b   :  { %v3948_v54 = vand.u32 4294901760, %v8881_v8  ;;  %v3937_v30 = vsub.f32 %v2883_v48, %v8883_v55  ;;  %6923 = vmatprep.mubr.f32.mxu1 %v8883_v55 }
 0x48c   :  { %6924 = vmatmul.mubr.f32.vlgmr.msra.gmra.mxu1 %v8877_v21 }
 0x48d   :  { %6962 = vmatpush3.msra.mxu1 %v8635_v63  ;;  %v3938_v56 = vand.u32 4294901760, %v3937_v30  ;;  %v3949_v17 = vsub.f32 %v8881_v8, %v3948_v54 }
 0x48e   :  { %6963 = vmatprep.subr.mxu1 %v8643_v52 }
 0x48f   :  { %6964 = vmatpush3.msra.mxu1 %v8643_v52  ;;  %6993 = vmatprep.mubr.f32.mxu1 %v3938_v56  ;;  %v3939_v51 = vsub.f32 %v3937_v30, %v3938_v56  ;;  %v3950_v46 = vand.u32 4294901760, %v3949_v17  ;;  %v4598_v56 = vld [vmem:[%s9458_s3 + $0x28] sm:$0xff] }
 0x490   :  { %6965 = vmatprep.subr.mxu1 %v8654_v11 }
 0x491   :  { %6966 = vmatpush3.msra.mxu1 %v8654_v11  ;;  %v3940_v31 = vand.u32 4294901760, %v3939_v51 }
 0x492   :  { %6967 = vmatprep.subr.mxu1 %v8665_v39 }
 0x493   :  { %6968 = vmatpush3.msra.mxu1 %v8665_v39  ;;  %6888 = vmatprep.mubr.f32.mxu0 %v3940_v31 }
 0x494   :  { %6969 = vmatprep.subr.mxu1 %v8679_v57  ;;  %6889 = vmatmul.mubr.f32.vlgmr.msra.gmra.mxu0 %v3950_v46  ;;  %v9165_v46 = vand.u32 4294901760, %v4598_v56 }
 0x495   :  { %6927 = vmatpush3.msra.mxu0 %v8652_v53  ;;  %6970 = vmatpush3.msra.mxu1 %v8679_v57  ;;  %v9751_v53 = vld [vmem:[#allocation34_spill] sm:$0xff] }
 0x496   :  { %6928 = vmatprep.subr.mxu0 %v8663_v41  ;;  %6958 = vmatprep.mubr.f32.mxu0 %v3937_v30  ;;  %v9154_v30 = vand.u32 4294901760, %v4599_v19 }
 0x497   :  { %6971 = vmatprep.subr.mxu1 %v8693_v59  ;;  %6929 = vmatpush3.msra.mxu0 %v8663_v41  ;;  %v9753_v41 = vld [vmem:[#allocation20_spill] sm:$0xff] }
 0x498   :  { %6972 = vmatpush3.msra.mxu1 %v8693_v59  ;;  %6930 = vmatprep.subr.mxu0 %v8677_v60 }
 0x499   :  { %6973 = vmatprep.subr.mxu1 %v8698_v13  ;;  %6931 = vmatpush3.msra.mxu0 %v8677_v60  ;;  %v9756_v60 = vld [vmem:[#allocation24_spill] sm:$0xff] }
 0x49a   :  { %6974 = vmatpush3.msra.mxu1 %v8698_v13  ;;  %6932 = vmatprep.subr.mxu0 %v8691_v26 }
 0x49b   :  { %6975 = vmatprep.subr.mxu1 %v8712_v9  ;;  %6933 = vmatpush3.msra.mxu0 %v8691_v26 }
 0x49c   :  { %6976 = vmatpush3.msra.mxu1 %v8712_v9  ;;  %6934 = vmatprep.subr.mxu0 %v8708_v2 }
 0x49d   :  { %6977 = vmatprep.subr.mxu1 %v8736_v6  ;;  %6935 = vmatpush3.msra.mxu0 %v8708_v2  ;;  %v4606_v2 = vld [vmem:[%s9458_s3 + $0x68] sm:$0xff] }
 0x49e   :  { %6978 = vmatpush3.msra.mxu1 %v8736_v6  ;;  %6936 = vmatprep.subr.mxu0 %v8722_v27 }
 0x49f   :  { %6979 = vmatprep.subr.mxu1 %v8750_v28  ;;  %6937 = vmatpush3.msra.mxu0 %v8722_v27  ;;  %v9049_v27 = vand.u32 4294901760, %v4606_v2 }
 0x4a0   :  { %6980 = vmatpush3.msra.mxu1 %v8750_v28  ;;  %6938 = vmatprep.subr.mxu0 %v8727_v18 }
 0x4a1   :  { %6981 = vmatprep.subr.mxu1 %v8763_v50  ;;  %6939 = vmatpush3.msra.mxu0 %v8727_v18  ;;  %v4605_v18 = vld [vmem:[%s9458_s3 + $0x60] sm:$0xff] }
 0x4a2   :  { %6982 = vmatpush3.msra.mxu1 %v8763_v50  ;;  %6940 = vmatprep.subr.mxu0 %v8741_v40 }
 0x4a3   :  { %6983 = vmatprep.subr.mxu1 %v8775_v1  ;;  %6941 = vmatpush3.msra.mxu0 %v8741_v40  ;;  %v9062_v40 = vsub.f32 %v4606_v2, %v9049_v27 }
 0x4a4   :  { %6984 = vmatpush3.msra.mxu1 %v8775_v1  ;;  %6942 = vmatprep.subr.mxu0 %v8761_v47 }
 0x4a5   :  { %6985 = vmatprep.subr.mxu1 %v8787_v61  ;;  %6943 = vmatpush3.msra.mxu0 %v8761_v47 }
 0x4a6   :  { %6986 = vmatpush3.msra.mxu1 %v8787_v61  ;;  %6944 = vmatprep.subr.mxu0 %v8773_v58 }
 0x4a7   :  { %6987 = vmatprep.subr.mxu1 %v8799_v24  ;;  %6945 = vmatpush3.msra.mxu0 %v8773_v58 }
 0x4a8   :  { %6988 = vmatpush3.msra.mxu1 %v8799_v24  ;;  %6946 = vmatprep.subr.mxu0 %v8785_v34 }
 0x4a9   :  { %6989 = vmatprep.subr.mxu1 %v8811_v23  ;;  %6947 = vmatpush3.msra.mxu0 %v8785_v34 }
 0x4aa   :  { %6990 = vmatpush3.msra.mxu1 %v8811_v23  ;;  %6948 = vmatprep.subr.mxu0 %v8797_v44 }
 0x4ab   :  { %6991 = vmatprep.subr.mxu1 %v8823_v0  ;;  %6949 = vmatpush3.msra.mxu0 %v8797_v44 }
 0x4ac   :  { %6992 = vmatpush3.msra.mxu1 %v8823_v0  ;;  %6950 = vmatprep.subr.mxu0 %v8809_v22 }
 0x4ad   :  { %6994 = vmatmul.mubr.f32.vlgmr.msra.gmra.mxu1 %v3948_v54  ;;  %7031 = vmatprep.subr.mxu1 %v8635_v63  ;;  %v9151_v54 = vsub.f32 %v4600_v43, %v9138_v4 }
 0x4ae   :  { %6951 = vmatpush3.msra.mxu0 %v8809_v22  ;;  %7032 = vmatpush3.msra.mxu1 %v8635_v63  ;;  %v9749_v63 = vld [vmem:[#allocation33_spill] sm:$0xff] }
 0x4af   :  { %7063 = vmatprep.mubr.f32.mxu1 %v8883_v55  ;;  %6952 = vmatprep.subr.mxu0 %v8821_v35  ;;  %v9163_v31 = vand.u32 4294901760, %v9151_v54 }
 0x4b0   :  { %7033 = vmatprep.subr.mxu1 %v8643_v52  ;;  %6953 = vmatpush3.msra.mxu0 %v8821_v35 }
 0x4b1   :  { %7034 = vmatpush3.msra.mxu1 %v8643_v52  ;;  %6954 = vmatprep.subr.mxu0 %v8833_v14  ;;  %v9750_v52 = vld [vmem:[#allocation21_spill] sm:$0xff]  ;;  %9766 = vst [vmem:[#allocation35_spill] sm:$0xff] %v9163_v31 }
 0x4b2   :  { %7035 = vmatprep.subr.mxu1 %v8654_v11  ;;  %6955 = vmatpush3.msra.mxu0 %v8833_v14 }
 0x4b3   :  { %7036 = vmatpush3.msra.mxu1 %v8654_v11  ;;  %6956 = vmatprep.subr.mxu0 %v8843_v15  ;;  %v9752_v11 = vld [vmem:[#allocation22_spill] sm:$0xff] }
 0x4b4   :  { %7037 = vmatprep.subr.mxu1 %v8665_v39  ;;  %6957 = vmatpush3.msra.mxu0 %v8843_v15 }
 0x4b5   :  { %7038 = vmatpush3.msra.mxu1 %v8665_v39  ;;  %6959 = vmatmul.mubr.f32.vlgmr.msra.gmra.mxu0 %v8881_v8  ;;  %v9754_v39 = vld [vmem:[#allocation23_spill] sm:$0xff] }
 0x4b6   :  { %6996 = vmatprep.subr.mxu0 %v8674_v5  ;;  %7039 = vmatprep.subr.mxu1 %v8679_v57 }
 0x4b7   :  { %6997 = vmatpush3.msra.mxu0 %v8674_v5  ;;  %7028 = vmatprep.mubr.f32.mxu0 %v8883_v55  ;;  %v9755_v5 = vld [vmem:[#allocation36_spill] sm:$0xff]  ;;  %v9148_v55 = vand.u32 4294901760, %v9136_v33 }
 0x4b8   :  { %7040 = vmatpush3.msra.mxu1 %v8679_v57  ;;  %6998 = vmatprep.subr.mxu0 %v8688_v42  ;;  %v9757_v57 = vld [vmem:[#allocation40_spill] sm:$0xff] }
 0x4b9   :  { %7041 = vmatprep.subr.mxu1 %v8693_v59  ;;  %6999 = vmatpush3.msra.mxu0 %v8688_v42  ;;  %v4608_v42 = vld [vmem:[%s9458_s3 + $0x78] sm:$0xff]  ;;  %9765 = vst [vmem:[#allocation31_spill] sm:$0xff] %v9148_v55  ;;  %v4767_v51 = vsub.f32 %v9136_v33, %v9148_v55  ;;  %v5905_v55 = vld [vmem:[%s9460_s5 + $0x28] ss:$0 sm:$0xff] }
 0x4ba   :  { %7042 = vmatpush3.msra.mxu1 %v8693_v59  ;;  %7000 = vmatprep.subr.mxu0 %v8705_v29  ;;  %v9028_v26 = vand.u32 4294901760, %v4608_v42  ;;  %v4607_v59 = vld [vmem:[%s9458_s3 + $0x70] sm:$0xff] }
 0x4bb   :  { %7043 = vmatprep.subr.mxu1 %v8698_v13  ;;  %7001 = vmatpush3.msra.mxu0 %v8705_v29  ;;  %v9036_v29 = vand.u32 4294901760, %v4607_v59 }
 0x4bc   :  { %7044 = vmatpush3.msra.mxu1 %v8698_v13  ;;  %7002 = vmatprep.subr.mxu0 %v8718_v10  ;;  %v9034_v13 = vsub.f32 %v4608_v42, %v9028_v26 }
 0x4bd   :  { %7045 = vmatprep.subr.mxu1 %v8712_v9  ;;  %7003 = vmatpush3.msra.mxu0 %v8718_v10  ;;  %v9047_v10 = vsub.f32 %v4607_v59, %v9036_v29 }
 0x4be   :  { %7046 = vmatpush3.msra.mxu1 %v8712_v9  ;;  %7004 = vmatprep.subr.mxu0 %v8734_v36  ;;  %v9044_v9 = vand.u32 4294901760, %v9034_v13 }
 0x4bf   :  { %7047 = vmatprep.subr.mxu1 %v8736_v6  ;;  %7005 = vmatpush3.msra.mxu0 %v8734_v36 }
 0x4c0   :  { %7048 = vmatpush3.msra.mxu1 %v8736_v6  ;;  %7006 = vmatprep.subr.mxu0 %v8747_v16  ;;  %9758 = vst [vmem:[#allocation26_spill] sm:$0xff] %v9044_v9  ;;  %v4718_v36 = vsub.f32 %v9034_v13, %v9044_v9  ;;  %v9059_v6 = vand.u32 4294901760, %v9047_v10 }
 0x4c1   :  { %7049 = vmatprep.subr.mxu1 %v8750_v28  ;;  %7007 = vmatpush3.msra.mxu0 %v8747_v16  ;;  %v9064_v16 = vand.u32 4294901760, %v4605_v18 }
 0x4c2   :  { %7050 = vmatpush3.msra.mxu1 %v8750_v28  ;;  %7008 = vmatprep.subr.mxu0 %v8755_v62  ;;  %9759 = vst [vmem:[#allocation25_spill] sm:$0xff] %v9059_v6  ;;  %v4604_v28 = vld [vmem:[%s9458_s3 + $0x58] sm:$0xff]  ;;  %v4725_v47 = vsub.f32 %v9047_v10, %v9059_v6 }
 0x4c3   :  { %7051 = vmatprep.subr.mxu1 %v8763_v50  ;;  %7009 = vmatpush3.msra.mxu0 %v8755_v62  ;;  %v4719_v62 = vand.u32 4294901760, %v4718_v36  ;;  %v9080_v58 = vand.u32 4294901760, %v4604_v28  ;;  %v4595_v36 = vld [vmem:[%s9458_s3 + $0x10] sm:$0xff] }
 0x4c4   :  { %7052 = vmatpush3.msra.mxu1 %v8763_v50  ;;  %7010 = vmatprep.subr.mxu0 %v9749_v63  ;;  %v9074_v50 = vand.u32 4294901760, %v9062_v40  ;;  %v4726_v34 = vand.u32 4294901760, %v4725_v47 }
 0x4c5   :  { %7053 = vmatprep.subr.mxu1 %v8775_v1  ;;  %7011 = vmatpush3.msra.mxu0 %v9749_v63  ;;  %v9094_v22 = vsub.f32 %v4604_v28, %v9080_v58  ;;  %v9169_v63 = vsub.f32 %v4599_v19, %v9154_v30 }
 0x4c6   :  { %7054 = vmatpush3.msra.mxu1 %v8775_v1  ;;  %7012 = vmatprep.subr.mxu0 %v9750_v52  ;;  %9760 = vst [vmem:[#allocation28_spill] sm:$0xff] %v9074_v50  ;;  %v4603_v1 = vld [vmem:[%s9458_s3 + $0x50] sm:$0xff] }
 0x4c7   :  { %7055 = vmatprep.subr.mxu1 %v8787_v61  ;;  %7013 = vmatpush3.msra.mxu0 %v9750_v52  ;;  %v9109_v15 = vand.u32 4294901760, %v9094_v22  ;;  %v4597_v52 = vld [vmem:[%s9458_s3 + $0x20] sm:$0xff] }
 0x4c8   :  { %7056 = vmatpush3.msra.mxu1 %v8787_v61  ;;  %7014 = vmatprep.subr.mxu0 %v9751_v53  ;;  %v4732_v61 = vsub.f32 %v9062_v40, %v9074_v50 }
 0x4c9   :  { %7057 = vmatprep.subr.mxu1 %v8799_v24  ;;  %7015 = vmatpush3.msra.mxu0 %v9751_v53  ;;  %9762 = vst [vmem:[#allocation29_spill] sm:$0xff] %v9109_v15  ;;  %v4746_v45 = vsub.f32 %v9094_v22, %v9109_v15  ;;  %v4768_v53 = vand.u32 4294901760, %v4767_v51 }
 0x4ca   :  { %7058 = vmatpush3.msra.mxu1 %v8799_v24  ;;  %7016 = vmatprep.subr.mxu0 %v9752_v11  ;;  %v9091_v24 = vand.u32 4294901760, %v4603_v1  ;;  %v4733_v35 = vand.u32 4294901760, %v4732_v61  ;;  %v4594_v61 = vld [vmem:[%s9458_s3 + $0x8] sm:$0xff] }
 0x4cb   :  { %7059 = vmatprep.subr.mxu1 %v8811_v23  ;;  %7017 = vmatpush3.msra.mxu0 %v9752_v11  ;;  %v4747_v25 = vand.u32 4294901760, %v4746_v45  ;;  %v4774_v11 = vsub.f32 %v9151_v54, %v9163_v31  ;;  %v4593_v45 = vld [vmem:[%s9458_s3] sm:$0xff] }
 0x4cc   :  { %7060 = vmatpush3.msra.mxu1 %v8811_v23  ;;  %7018 = vmatprep.subr.mxu0 %v9753_v41  ;;  %v4602_v23 = vld [vmem:[%s9458_s3 + $0x48] sm:$0xff]  ;;  %v9103_v14 = vsub.f32 %v4603_v1, %v9091_v24  ;;  %v9213_v1 = vand.u32 4294901760, %v4595_v36  ;;  %v9240_v19 = vand.u32 4294901760, %v4593_v45 }
 0x4cd   :  { %7061 = vmatprep.subr.mxu1 %v8823_v0  ;;  %7019 = vmatpush3.msra.mxu0 %v9753_v41  ;;  %v9105_v38 = vand.u32 4294901760, %v4602_v23  ;;  %v9178_v41 = vsub.f32 %v4598_v56, %v9165_v46 }
 0x4ce   :  { %7062 = vmatpush3.msra.mxu1 %v8823_v0  ;;  %7020 = vmatprep.subr.mxu0 %v9754_v39  ;;  %v9116_v12 = vand.u32 4294901760, %v9103_v14  ;;  %v9226_v3 = vsub.f32 %v4595_v36, %v9213_v1  ;;  %9777 = vst [vmem:[#allocation38_spill] sm:$0xff] %v9240_v19  ;;  %v6126_v36 = vpop.f32.mrf.mxu0 }
 0x4cf   :  { %7064 = vmatmul.mubr.f32.vlgmr.msra.gmra.mxu1 %v8877_v21  ;;  %7021 = vmatpush3.msra.mxu0 %v9754_v39  ;;  %v9119_v20 = vsub.f32 %v4602_v23, %v9105_v38  ;;  %9767 = vst [vmem:[#allocation37_spill] sm:$0xff] %v9178_v41  ;;  %v9180_v39 = vand.u32 4294901760, %v4597_v52  ;;  %v9191_v42 = vand.u32 4294901760, %v9178_v41 }
 0x4d0   :  { %7022 = vmatprep.subr.mxu0 %v9755_v5  ;;  %7101 = vmatprep.subr.mxu1 %v4719_v62  ;;  %9763 = vst [vmem:[#allocation30_spill] sm:$0xff] %v9116_v12  ;;  %v4753_v7 = vsub.f32 %v9103_v14, %v9116_v12  ;;  %9774 = vst [vmem:[#allocation13_spill] sm:$0xff] %v9226_v3 }
 0x4d1   :  { %7023 = vmatpush3.msra.mxu0 %v9755_v5  ;;  %7102 = vmatpush3.msra.mxu1 %v4719_v62  ;;  %v9133_v49 = vand.u32 4294901760, %v9119_v20  ;;  %v9184_v5 = vand.u32 4294901760, %v9169_v63  ;;  %9769 = vst [vmem:[#allocation43_spill] sm:$0xff] %v9191_v42  ;;  %v9194_v59 = vsub.f32 %v4597_v52, %v9180_v39  ;;  %v4788_v28 = vsub.f32 %v9178_v41, %v9191_v42 }
 0x4d2   :  { %7024 = vmatprep.subr.mxu0 %v9756_v60  ;;  %7103 = vmatprep.subr.mxu1 %v4726_v34  ;;  %v4754_v48 = vand.u32 4294901760, %v4753_v7 }
 0x4d3   :  { %7025 = vmatpush3.msra.mxu0 %v9756_v60  ;;  %7104 = vmatpush3.msra.mxu1 %v4726_v34  ;;  %9764 = vst [vmem:[#allocation32_spill] sm:$0xff] %v9133_v49  ;;  %v4760_v8 = vsub.f32 %v9119_v20, %v9133_v49  ;;  %9768 = vst [vmem:[#allocation39_spill] sm:$0xff] %v9184_v5  ;;  %v4596_v60 = vld [vmem:[%s9458_s3 + $0x18] sm:$0xff]  ;;  %v9208_v62 = vand.u32 4294901760, %v9194_v59  ;;  %v4789_v23 = vand.u32 4294901760, %v4788_v28  ;;  %v6164_v28 = vpop.f32.mrf.mxu1 }
 0x4d4   :  { %7026 = vmatprep.subr.mxu0 %v9757_v57  ;;  %7105 = vmatprep.subr.mxu1 %v4733_v35  ;;  %9770 = vst [vmem:[#allocation12_spill] sm:$0xff] %v9194_v59  ;;  %v9196_v2 = vand.u32 4294901760, %v4596_v60 }
 0x4d5   :  { %7027 = vmatpush3.msra.mxu0 %v9757_v57  ;;  %7106 = vmatpush3.msra.mxu1 %v4733_v35  ;;  %v4761_v17 = vand.u32 4294901760, %v4760_v8  ;;  %v4775_v57 = vand.u32 4294901760, %v4774_v11  ;;  %9771 = vst [vmem:[#allocation17_spill] sm:$0xff] %v9208_v62  ;;  %v4795_v35 = vsub.f32 %v9194_v59, %v9208_v62 }
 0x4d6   :  { %7029 = vmatmul.mubr.f32.vlgmr.msra.gmra.mxu0 %v8877_v21  ;;  %7066 = vmatprep.subr.mxu0 %v9028_v26  ;;  %v9077_v21 = vsub.f32 %v4605_v18, %v9064_v16  ;;  %v4781_v18 = vsub.f32 %v9169_v63, %v9184_v5  ;;  %v9211_v47 = vsub.f32 %v4596_v60, %v9196_v2 }
 0x4d7   :  { %7067 = vmatpush3.msra.mxu0 %v9028_v26  ;;  %v4796_v43 = vand.u32 4294901760, %v4795_v35 }
 0x4d8   :  { %7068 = vmatprep.subr.mxu0 %v9036_v29  ;;  %v9089_v44 = vand.u32 4294901760, %v9077_v21  ;;  %9772 = vst [vmem:[#allocation9_spill] sm:$0xff] %v9211_v47  ;;  %v4782_v34 = vand.u32 4294901760, %v4781_v18 }
 0x4d9   :  { %7069 = vmatpush3.msra.mxu0 %v9036_v29 }
 0x4da   :  { %7070 = vmatprep.subr.mxu0 %v9049_v27  ;;  %9761 = vst [vmem:[#allocation27_spill] sm:$0xff] %v9089_v44  ;;  %v4739_v0 = vsub.f32 %v9077_v21, %v9089_v44 }
 0x4db   :  { %7071 = vmatpush3.msra.mxu0 %v9049_v27 }
 0x4dc   :  { %7072 = vmatprep.subr.mxu0 %v9064_v16  ;;  %v4740_v37 = vand.u32 4294901760, %v4739_v0  ;;  %v9223_v0 = vand.u32 4294901760, %v9211_v47 }
 0x4dd   :  { %7073 = vmatpush3.msra.mxu0 %v9064_v16 }
 0x4de   :  { %7074 = vmatprep.subr.mxu0 %v9080_v58  ;;  %7107 = vmatprep.subr.mxu1 %v4740_v37  ;;  %9773 = vst [vmem:[#allocation18_spill] sm:$0xff] %v9223_v0  ;;  %v4802_v7 = vsub.f32 %v9211_v47, %v9223_v0 }
 0x4df   :  { %7075 = vmatpush3.msra.mxu0 %v9080_v58  ;;  %7108 = vmatpush3.msra.mxu1 %v4740_v37  ;;  %v9229_v37 = vand.u32 4294901760, %v4594_v61 }
 0x4e0   :  { %7076 = vmatprep.subr.mxu0 %v9091_v24  ;;  %7109 = vmatprep.subr.mxu1 %v4747_v25  ;;  %v4803_v8 = vand.u32 4294901760, %v4802_v7 }
 0x4e1   :  { %7077 = vmatpush3.msra.mxu0 %v9091_v24  ;;  %7110 = vmatpush3.msra.mxu1 %v4747_v25  ;;  %9775 = vst [vmem:[#allocation19_spill] sm:$0xff] %v9229_v37  ;;  %v9238_v25 = vand.u32 4294901760, %v9226_v3 }
 0x4e2   :  { %7078 = vmatprep.subr.mxu0 %v9105_v38  ;;  %7111 = vmatprep.subr.mxu1 %v4754_v48 }
 0x4e3   :  { %7079 = vmatpush3.msra.mxu0 %v9105_v38  ;;  %7112 = vmatpush3.msra.mxu1 %v4754_v48  ;;  %9776 = vst [vmem:[#allocation10_spill] sm:$0xff] %v9238_v25  ;;  %v9244_v48 = vsub.f32 %v4594_v61, %v9229_v37  ;;  %v4809_v56 = vsub.f32 %v9226_v3, %v9238_v25  ;;  %v6165_v61 = vpop.f32.mrf.mxu1 }
 0x4e4   :  { %7080 = vmatprep.subr.mxu0 %v9121_v32  ;;  %7113 = vmatprep.subr.mxu1 %v4761_v17  ;;  %v6166_v15 = vadd.f32 %v6165_v61, %v6164_v28 }
 0x4e5   :  { %7081 = vmatpush3.msra.mxu0 %v9121_v32  ;;  %7114 = vmatpush3.msra.mxu1 %v4761_v17  ;;  %9778 = vst [vmem:[#allocation45_spill] sm:$0xff] %v9244_v48  ;;  %v9250_v17 = vsub.f32 %v4593_v45, %v9240_v19  ;;  %v9254_v51 = vand.u32 4294901760, %v9244_v48  ;;  %v4810_v52 = vand.u32 4294901760, %v4809_v56  ;;  %v6167_v35 = vpop.f32.mrf.mxu1 }
 0x4e6   :  { %7082 = vmatprep.subr.mxu0 %v9138_v4  ;;  %7115 = vmatprep.subr.mxu1 %v4768_v53 }
 0x4e7   :  { %7083 = vmatpush3.msra.mxu0 %v9138_v4  ;;  %7116 = vmatpush3.msra.mxu1 %v4768_v53  ;;  %9779 = vst [vmem:[#allocation41_spill] sm:$0xff] %v9250_v17  ;;  %9780 = vst [vmem:[#allocation42_spill] sm:$0xff] %v9254_v51  ;;  %v9258_v53 = vand.u32 4294901760, %v9250_v17  ;;  %v4816_v11 = vsub.f32 %v9244_v48, %v9254_v51 }
 0x4e8   :  { %7084 = vmatprep.subr.mxu0 %v9154_v30  ;;  %7117 = vmatprep.subr.mxu1 %v4775_v57 }
 0x4e9   :  { %7085 = vmatpush3.msra.mxu0 %v9154_v30  ;;  %7118 = vmatpush3.msra.mxu1 %v4775_v57  ;;  %9781 = vst [vmem:[#allocation46_spill] sm:$0xff] %v9258_v53  ;;  %v4823_v60 = vsub.f32 %v9250_v17, %v9258_v53  ;;  %v4817_v57 = vand.u32 4294901760, %v4816_v11 }
 0x4ea   :  { %7086 = vmatprep.subr.mxu0 %v9165_v46  ;;  %7119 = vmatprep.subr.mxu1 %v4782_v34 }
 0x4eb   :  { %7087 = vmatpush3.msra.mxu0 %v9165_v46  ;;  %7120 = vmatpush3.msra.mxu1 %v4782_v34  ;;  %v4824_v18 = vand.u32 4294901760, %v4823_v60  ;;  %v6127_v34 = vpop.f32.mrf.mxu0 }
 0x4ec   :  { %7088 = vmatprep.subr.mxu0 %v9180_v39  ;;  %7121 = vmatprep.subr.mxu1 %v4789_v23  ;;  %v6128_v5 = vadd.f32 %v6127_v34, %v6126_v36 }
 0x4ed   :  { %7089 = vmatpush3.msra.mxu0 %v9180_v39  ;;  %7122 = vmatpush3.msra.mxu1 %v4789_v23  ;;  %v6129_v23 = vpop.f32.mrf.mxu0 }
 0x4ee   :  { %7090 = vmatprep.subr.mxu0 %v9196_v2  ;;  %7123 = vmatprep.subr.mxu1 %v4796_v43  ;;  %v3046_v6 = vadd.f32 %v6128_v5, %v5905_v55 }
 0x4ef   :  { %7091 = vmatpush3.msra.mxu0 %v9196_v2  ;;  %7124 = vmatpush3.msra.mxu1 %v4796_v43  ;;  %v6130_v45 = vpop.f32.mrf.mxu0  ;;  %v6168_v43 = vpop.f32.mrf.mxu1 }
 0x4f0   :  { %7092 = vmatprep.subr.mxu0 %v9213_v1  ;;  %7125 = vmatprep.subr.mxu1 %v4803_v8  ;;  %v6131_v62 = vadd.f32 %v6130_v45, %v6129_v23  ;;  %v6169_v31 = vadd.f32 %v6168_v43, %v6167_v35  ;;  %v3293_v47 = vadd.f32 %v6166_v15, %v3046_v6 }
 0x4f1   :  { %7093 = vmatpush3.msra.mxu0 %v9213_v1  ;;  %7126 = vmatpush3.msra.mxu1 %v4803_v8  ;;  %v6202_v7 = vpop.f32.mrf.mxu0  ;;  %v6240_v8 = vpop.f32.mrf.mxu1 }
 0x4f2   :  { %7094 = vmatprep.subr.mxu0 %v9229_v37  ;;  %7127 = vmatprep.subr.mxu1 %v4810_v52  ;;  %v3061_v12 = vadd.f32 %v6131_v62, %v5905_v55 }
 0x4f3   :  { %7095 = vmatpush3.msra.mxu0 %v9229_v37  ;;  %7128 = vmatpush3.msra.mxu1 %v4810_v52  ;;  %v6203_v56 = vpop.f32.mrf.mxu0  ;;  %v6241_v11 = vpop.f32.mrf.mxu1 }
 0x4f4   :  { %7096 = vmatprep.subr.mxu0 %v9240_v19  ;;  %7129 = vmatprep.subr.mxu1 %v4817_v57  ;;  %v3300_v9 = vadd.f32 %v6169_v31, %v3061_v12  ;;  %v6204_v17 = vadd.f32 %v6203_v56, %v6202_v7  ;;  %v6242_v23 = vadd.f32 %v6241_v11, %v6240_v8 }
 0x4f5   :  { %7097 = vmatpush3.msra.mxu0 %v9240_v19  ;;  %7130 = vmatpush3.msra.mxu1 %v4817_v57  ;;  %v6205_v52 = vpop.f32.mrf.mxu0  ;;  %v6243_v60 = vpop.f32.mrf.mxu1 }
 0x4f6   :  { %7136 = vmatprep.subr.mxu0 %v9034_v13  ;;  %7131 = vmatprep.subr.mxu1 %v4824_v18  ;;  %v3438_v36 = vadd.f32 %v6204_v17, %v3293_v47 }
 0x4f7   :  { %7132 = vmatpush3.msra.mxu1 %v4824_v18  ;;  %v6206_v53 = vpop.f32.mrf.mxu0  ;;  %v6244_v57 = vpop.f32.mrf.mxu1 }
 0x4f8   :  { %7171 = vmatprep.subr.mxu1 %v9028_v26  ;;  %v6207_v44 = vadd.f32 %v6206_v53, %v6205_v52  ;;  %v6245_v48 = vadd.f32 %v6244_v57, %v6243_v60  ;;  %v3555_v37 = vadd.f32 %v6242_v23, %v3438_v36 }
 0x4f9   :  { %v6278_v51 = vpop.f32.mrf.mxu0  ;;  %v6316_v25 = vpop.f32.mrf.mxu1 }
 0x4fa   :  { %v3447_v19 = vadd.f32 %v6207_v44, %v3300_v9 }
 0x4fb   :  { %v6279_v18 = vpop.f32.mrf.mxu0  ;;  %v6317_v0 = vpop.f32.mrf.mxu1 }
 0x4fc   :  { %v3566_v34 = vadd.f32 %v6245_v48, %v3447_v19  ;;  %v6280_v35 = vadd.f32 %v6279_v18, %v6278_v51  ;;  %v6318_v62 = vadd.f32 %v6317_v0, %v6316_v25 }
 0x4fd   :  { %v6281_v42 = vpop.f32.mrf.mxu0  ;;  %v6319_v49 = vpop.f32.mrf.mxu1 }
 0x4fe   :  { %v3734_v28 = vadd.f32 %v6280_v35, %v3555_v37 }
 0x4ff   :  { %v6282_v50 = vpop.f32.mrf.mxu0  ;;  %v6320_v3 = vpop.f32.mrf.mxu1 }
 0x500   :  { %v6283_v45 = vadd.f32 %v6282_v50, %v6281_v42  ;;  %v6321_v43 = vadd.f32 %v6320_v3, %v6319_v49  ;;  %v3845_v31 = vadd.f32 %v6318_v62, %v3734_v28 }
 0x502   :  { %v3741_v41 = vadd.f32 %v6283_v45, %v3566_v34 }
 0x504   :  { %v3852_v53 = vadd.f32 %v6321_v43, %v3741_v41 }
 0x54c   :  { %v6925_v61 = vpop.f32.mrf.mxu1 }
 0x54e   :  { %v4103_v6 = vpop.f32.mrf.mxu1 }
 0x554   :  { %v6890_v59 = vpop.f32.mrf.mxu0 }
 0x555   :  { %v3953_v12 = vadd.f32 %v6890_v59, %v3852_v53 }
 0x556   :  { %v3942_v55 = vpop.f32.mrf.mxu0 }
 0x557   :  { %v3943_v7 = vadd.f32 %v3942_v55, %v3845_v31  ;;  %v4110_v9 = vadd.f32 %v6925_v61, %v3953_v12 }
 0x559   :  { %v4104_v42 = vadd.f32 %v4103_v6, %v3943_v7 }
 0x56d   :  { %v6995_v44 = vpop.f32.mrf.mxu1 }
 0x56f   :  { %v4309_v49 = vpop.f32.mrf.mxu1 }
 0x575   :  { %v6960_v5 = vpop.f32.mrf.mxu0 }
 0x576   :  { %v4221_v15 = vadd.f32 %v6960_v5, %v4110_v9 }
 0x577   :  { %v4213_v50 = vpop.f32.mrf.mxu0 }
 0x578   :  { %v4214_v47 = vadd.f32 %v4213_v50, %v4104_v42  ;;  %v4318_v3 = vadd.f32 %v6995_v44, %v4221_v15 }
 0x57a   :  { %v4310_v37 = vadd.f32 %v4309_v49, %v4214_v47 }
 0x58f   :  { %v7065_v19 = vpop.f32.mrf.mxu1 }
 0x591   :  { %v4529_v59 = vpop.f32.mrf.mxu1 }
 0x596   :  { %v7030_v48 = vpop.f32.mrf.mxu0 }
 0x597   :  { %v4443_v0 = vadd.f32 %v7030_v48, %v4318_v3 }
 0x598   :  { %v4436_v41 = vpop.f32.mrf.mxu0 }
 0x599   :  { %v4536_v25 = vadd.f32 %v7065_v19, %v4443_v0  ;;  %v4437_v17 = vadd.f32 %v4436_v41, %v4310_v37 }
 0x59b   :  { %v4540_v51 = vmul.f32 0.70710677, %v4536_v25  ;;  %v4530_v8 = vadd.f32 %v4529_v59, %v4437_v17 }
 0x59d   :  { %v4542_v56 = vand.u32 2147483647, %v4540_v51  ;;  %v4539_v11 = vmul.f32 0.70710677, %v4530_v8  ;;  %vm4582_vm11 = vcmp.ge.f32.partialorder %v4540_v51, 0.0 }
 0x59f   :  { %v4544_v52 = vmul.f32 0.3275911, %v4542_v56  ;;  %v4541_v60 = vand.u32 2147483647, %v4539_v11  ;;  %v4570_v45 = vsub.f32 0.0, %v4542_v56  ;;  %vm4581_vm12 = vcmp.ge.f32.partialorder %v4539_v11, 0.0 }
 0x5a1   :  { %v4546_v57 = vadd.f32 1.0, %v4544_v52  ;;  %v4543_v18 = vmul.f32 0.3275911, %v4541_v60  ;;  %v4569_v36 = vsub.f32 0.0, %v4541_v60  ;;  %v4572_v34 = vmul.f32 %v4570_v45, %v4542_v56 }
 0x5a3   :  { %7342 = vrcp.f32 %v4546_v57  ;;  %v4545_v23 = vadd.f32 1.0, %v4543_v18  ;;  %v4571_v43 = vmul.f32 %v4569_v36, %v4541_v60  ;;  %v4575_v28 = vmul.f32 1.442695, %v4572_v34 }
 0x5a4   :  { %v4588_v18 = vmul.f32 0.5, %v4536_v25 }
 0x5a5   :  { %7344 = vrcp.f32 %v4545_v23  ;;  %v4573_v12 = vmul.f32 1.442695, %v4571_v43  ;;  %v4587_v43 = vmul.f32 0.5, %v4530_v8 }
 0x5a6   :  { %7346 = vpow2.f32 %v4575_v28 }
 0x5a7   :  { %7348 = vpow2.f32 %v4573_v12 }
 0x5b0   :  { %v7343_v35 = vpop.eup %7342 }
 0x5b1   :  { %v4552_v62 = vmul.f32 1.0614054, %v7343_v35 }
 0x5b2   :  { %v7345_v53 = vpop.eup %7344 }
 0x5b3   :  { %v5907_v61 = vadd.f32 -1.4531521, %v4552_v62  ;;  %v4551_v55 = vmul.f32 1.0614054, %v7345_v53  ;;  %v7347_v48 = vpop.eup %7346 }
 0x5b4   :  { %v7349_v17 = vpop.eup %7348 }
 0x5b5   :  { %v4556_v31 = vmul.f32 %v7343_v35, %v5907_v61  ;;  %v5906_v5 = vadd.f32 -1.4531521, %v4551_v55 }
 0x5b7   :  { %v4558_v7 = vadd.f32 1.4214138, %v4556_v31  ;;  %v4555_v6 = vmul.f32 %v7345_v53, %v5906_v5 }
 0x5b9   :  { %v4560_v9 = vmul.f32 %v7343_v35, %v4558_v7  ;;  %v4557_v44 = vadd.f32 1.4214138, %v4555_v6 }
 0x5bb   :  { %v5909_v50 = vadd.f32 -0.28449672, %v4560_v9  ;;  %v4559_v15 = vmul.f32 %v7345_v53, %v4557_v44  ;;  %v5910_v9 = vld [vmem:[%s9460_s5 + $0x30] ss:$0 sm:$0xff] }
 0x5bd   :  { %v4564_v42 = vmul.f32 %v7343_v35, %v5909_v50  ;;  %v5908_v47 = vadd.f32 -0.28449672, %v4559_v15 }
 0x5bf   :  { %v4566_v49 = vadd.f32 0.2548296, %v4564_v42  ;;  %v4563_v3 = vmul.f32 %v7345_v53, %v5908_v47 }
 0x5c1   :  { %v4568_v19 = vmul.f32 %v7343_v35, %v4566_v49  ;;  %v4565_v0 = vadd.f32 0.2548296, %v4563_v3 }
 0x5c3   :  { %v4578_v37 = vmul.f32 %v7347_v48, %v4568_v19  ;;  %v4567_v41 = vmul.f32 %v7345_v53, %v4565_v0 }
 0x5c5   :  { %v4580_v59 = vsub.f32 1.0, %v4578_v37  ;;  %v4577_v56 = vmul.f32 %v7349_v17, %v4567_v41  ;;  %v5330_v37 = vld [vmem:[%s9459_s4 + $0x8] sm:$0xff] }
 0x5c6   :  { %v5366_v17 = vand.u32 4294901760, %v5330_v37 }
 0x5c7   :  { %v4584_v52 = vsub.f32 0.0, %v4580_v59  ;;  %v4579_v60 = vsub.f32 1.0, %v4577_v56 }
 0x5c9   :  { %v4586_v57 = vsel %vm4582_vm11, %v4580_v59, %v4584_v52  ;;  %v4583_v45 = vsub.f32 0.0, %v4579_v60  ;;  %v5329_v52 = vld [vmem:[%s9459_s4] sm:$0xff] }
 0x5ca   :  { %v4590_v23 = vadd.f32 1.0, %v4586_v57  ;;  %v5454_v57 = vsub.f32 %v5330_v37, %v5366_v17 }
 0x5cb   :  { %v4585_v34 = vsel %vm4581_vm12, %v4579_v60, %v4583_v45 }
 0x5cc   :  { %v4592_v36 = vmul.f32 %v4590_v23, %v4588_v18  ;;  %v4589_v62 = vadd.f32 1.0, %v4585_v34  ;;  %v5369_v18 = vand.u32 4294901760, %v5329_v52  ;;  %v5455_v34 = vand.u32 4294901760, %v5454_v57 }
 0x5ce   :  { %v9270_v35 = vand.u32 4294901760, %v4592_v36  ;;  %v4591_v28 = vmul.f32 %v4589_v62, %v4587_v43  ;;  %v5461_v43 = vsub.f32 %v5329_v52, %v5369_v18 }
 0x5d0   :  { %v9273_v53 = vsub.f32 %v4592_v36, %v9270_v35  ;;  %v9275_v61 = vand.u32 4294901760, %v4591_v28 }
 0x5d2   :  { %v4706_v51 = vand.u32 4294901760, %v9273_v53  ;;  %7133 = vmatprep.mubr.f32.mxu1 %v9275_v61  ;;  %v4695_v25 = vsub.f32 %v4591_v28, %v9275_v61 }
 0x5d3   :  { %7134 = vmatmul.mubr.f32.vlgmr.msra.gmra.mxu1 %v9270_v35 }
 0x5d4   :  { %7172 = vmatpush3.msra.mxu1 %v9028_v26  ;;  %v4696_v8 = vand.u32 4294901760, %v4695_v25  ;;  %v4707_v11 = vsub.f32 %v9273_v53, %v4706_v51 }
 0x5d5   :  { %7173 = vmatprep.subr.mxu1 %v9036_v29 }
 0x5d6   :  { %7174 = vmatpush3.msra.mxu1 %v9036_v29  ;;  %7203 = vmatprep.mubr.f32.mxu1 %v4696_v8  ;;  %v4697_v55 = vsub.f32 %v4695_v25, %v4696_v8  ;;  %v4708_v31 = vand.u32 4294901760, %v4707_v11 }
 0x5d7   :  { %7175 = vmatprep.subr.mxu1 %v9049_v27 }
 0x5d8   :  { %7176 = vmatpush3.msra.mxu1 %v9049_v27  ;;  %v4698_v12 = vand.u32 4294901760, %v4697_v55 }
 0x5d9   :  { %7177 = vmatprep.subr.mxu1 %v9064_v16 }
 0x5da   :  { %7178 = vmatpush3.msra.mxu1 %v9064_v16  ;;  %7098 = vmatprep.mubr.f32.mxu0 %v4698_v12 }
 0x5db   :  { %7179 = vmatprep.subr.mxu1 %v9080_v58  ;;  %7099 = vmatmul.mubr.f32.vlgmr.msra.gmra.mxu0 %v4708_v31 }
 0x5dc   :  { %7137 = vmatpush3.msra.mxu0 %v9034_v13  ;;  %7180 = vmatpush3.msra.mxu1 %v9080_v58  ;;  %v9782_v13 = vld [vmem:[#allocation37_spill] sm:$0xff] }
 0x5dd   :  { %7138 = vmatprep.subr.mxu0 %v9047_v10  ;;  %7168 = vmatprep.mubr.f32.mxu0 %v4695_v25 }
 0x5de   :  { %7181 = vmatprep.subr.mxu1 %v9091_v24  ;;  %7139 = vmatpush3.msra.mxu0 %v9047_v10  ;;  %v9783_v10 = vld [vmem:[#allocation19_spill] sm:$0xff] }
 0x5df   :  { %7182 = vmatpush3.msra.mxu1 %v9091_v24  ;;  %7140 = vmatprep.subr.mxu0 %v9062_v40 }
 0x5e0   :  { %7183 = vmatprep.subr.mxu1 %v9105_v38  ;;  %7141 = vmatpush3.msra.mxu0 %v9062_v40  ;;  %v9784_v40 = vld [vmem:[#allocation12_spill] sm:$0xff] }
 0x5e1   :  { %7184 = vmatpush3.msra.mxu1 %v9105_v38  ;;  %7142 = vmatprep.subr.mxu0 %v9077_v21 }
 0x5e2   :  { %7185 = vmatprep.subr.mxu1 %v9121_v32  ;;  %7143 = vmatpush3.msra.mxu0 %v9077_v21  ;;  %v9785_v21 = vld [vmem:[#allocation38_spill] sm:$0xff] }
 0x5e3   :  { %7186 = vmatpush3.msra.mxu1 %v9121_v32  ;;  %7144 = vmatprep.subr.mxu0 %v9094_v22 }
 0x5e4   :  { %7187 = vmatprep.subr.mxu1 %v9138_v4  ;;  %7145 = vmatpush3.msra.mxu0 %v9094_v22  ;;  %v9786_v22 = vld [vmem:[#allocation9_spill] sm:$0xff] }
 0x5e5   :  { %7188 = vmatpush3.msra.mxu1 %v9138_v4  ;;  %7146 = vmatprep.subr.mxu0 %v9103_v14 }
 0x5e6   :  { %7189 = vmatprep.subr.mxu1 %v9154_v30  ;;  %7147 = vmatpush3.msra.mxu0 %v9103_v14  ;;  %v9787_v14 = vld [vmem:[#allocation13_spill] sm:$0xff] }
 0x5e7   :  { %7190 = vmatpush3.msra.mxu1 %v9154_v30  ;;  %7148 = vmatprep.subr.mxu0 %v9119_v20 }
 0x5e8   :  { %7191 = vmatprep.subr.mxu1 %v9165_v46  ;;  %7149 = vmatpush3.msra.mxu0 %v9119_v20  ;;  %v9788_v20 = vld [vmem:[#allocation45_spill] sm:$0xff] }
 0x5e9   :  { %7192 = vmatpush3.msra.mxu1 %v9165_v46  ;;  %7150 = vmatprep.subr.mxu0 %v9136_v33 }
 0x5ea   :  { %7193 = vmatprep.subr.mxu1 %v9180_v39  ;;  %7151 = vmatpush3.msra.mxu0 %v9136_v33  ;;  %v9789_v33 = vld [vmem:[#allocation41_spill] sm:$0xff] }
 0x5eb   :  { %7194 = vmatpush3.msra.mxu1 %v9180_v39  ;;  %7152 = vmatprep.subr.mxu0 %v9151_v54 }
 0x5ec   :  { %7195 = vmatprep.subr.mxu1 %v9196_v2  ;;  %7153 = vmatpush3.msra.mxu0 %v9151_v54  ;;  %v9799_v54 = vld [vmem:[#allocation39_spill] sm:$0xff] }
 0x5ed   :  { %7196 = vmatpush3.msra.mxu1 %v9196_v2  ;;  %7154 = vmatprep.subr.mxu0 %v9169_v63 }
 0x5ee   :  { %7197 = vmatprep.subr.mxu1 %v9213_v1  ;;  %7155 = vmatpush3.msra.mxu0 %v9169_v63  ;;  %v9802_v63 = vld [vmem:[#allocation18_spill] sm:$0xff] }
 0x5ef   :  { %7198 = vmatpush3.msra.mxu1 %v9213_v1  ;;  %7156 = vmatprep.subr.mxu0 %v9782_v13 }
 0x5f0   :  { %7199 = vmatprep.subr.mxu1 %v9783_v10  ;;  %7157 = vmatpush3.msra.mxu0 %v9782_v13 }
 0x5f1   :  { %7200 = vmatpush3.msra.mxu1 %v9783_v10  ;;  %7158 = vmatprep.subr.mxu0 %v9784_v40 }
 0x5f2   :  { %7201 = vmatprep.subr.mxu1 %v9785_v21  ;;  %7159 = vmatpush3.msra.mxu0 %v9784_v40 }
 0x5f3   :  { %7202 = vmatpush3.msra.mxu1 %v9785_v21  ;;  %7160 = vmatprep.subr.mxu0 %v9786_v22 }
 0x5f4   :  { %7204 = vmatmul.mubr.f32.vlgmr.msra.gmra.mxu1 %v4706_v51  ;;  %7241 = vmatprep.subr.mxu1 %v9028_v26 }
 0x5f5   :  { %7161 = vmatpush3.msra.mxu0 %v9786_v22  ;;  %7242 = vmatpush3.msra.mxu1 %v9028_v26  ;;  %v9790_v26 = vld [vmem:[#allocation26_spill] sm:$0xff] }
 0x5f6   :  { %7273 = vmatprep.mubr.f32.mxu1 %v9275_v61  ;;  %7162 = vmatprep.subr.mxu0 %v9787_v14 }
 0x5f7   :  { %7243 = vmatprep.subr.mxu1 %v9036_v29  ;;  %7163 = vmatpush3.msra.mxu0 %v9787_v14 }
 0x5f8   :  { %7244 = vmatpush3.msra.mxu1 %v9036_v29  ;;  %7164 = vmatprep.subr.mxu0 %v9788_v20  ;;  %v9791_v29 = vld [vmem:[#allocation25_spill] sm:$0xff] }
 0x5f9   :  { %7245 = vmatprep.subr.mxu1 %v9049_v27  ;;  %7165 = vmatpush3.msra.mxu0 %v9788_v20 }
 0x5fa   :  { %7246 = vmatpush3.msra.mxu1 %v9049_v27  ;;  %7166 = vmatprep.subr.mxu0 %v9789_v33  ;;  %v9792_v27 = vld [vmem:[#allocation28_spill] sm:$0xff] }
 0x5fb   :  { %7247 = vmatprep.subr.mxu1 %v9064_v16  ;;  %7167 = vmatpush3.msra.mxu0 %v9789_v33 }
 0x5fc   :  { %7248 = vmatpush3.msra.mxu1 %v9064_v16  ;;  %7169 = vmatmul.mubr.f32.vlgmr.msra.gmra.mxu0 %v9273_v53  ;;  %v9793_v16 = vld [vmem:[#allocation27_spill] sm:$0xff]  ;;  %v5456_v53 = vsub.f32 %v5454_v57, %v5455_v34 }
 0x5fd   :  { %7206 = vmatprep.subr.mxu0 %v9790_v26  ;;  %7249 = vmatprep.subr.mxu1 %v9080_v58 }
 0x5fe   :  { %7207 = vmatpush3.msra.mxu0 %v9790_v26  ;;  %7238 = vmatprep.mubr.f32.mxu0 %v9275_v61  ;;  %v5462_v61 = vand.u32 4294901760, %v5461_v43  ;;  %v5457_v51 = vand.u32 4294901760, %v5456_v53 }
 0x5ff   :  { %7250 = vmatpush3.msra.mxu1 %v9080_v58  ;;  %7208 = vmatprep.subr.mxu0 %v9791_v29  ;;  %v9794_v58 = vld [vmem:[#allocation29_spill] sm:$0xff] }
 0x600   :  { %7251 = vmatprep.subr.mxu1 %v9091_v24  ;;  %7209 = vmatpush3.msra.mxu0 %v9791_v29  ;;  %v5463_v25 = vsub.f32 %v5461_v43, %v5462_v61 }
 0x601   :  { %7252 = vmatpush3.msra.mxu1 %v9091_v24  ;;  %7210 = vmatprep.subr.mxu0 %v9792_v27  ;;  %v9795_v24 = vld [vmem:[#allocation30_spill] sm:$0xff] }
 0x602   :  { %7253 = vmatprep.subr.mxu1 %v9105_v38  ;;  %7211 = vmatpush3.msra.mxu0 %v9792_v27  ;;  %v5464_v11 = vand.u32 4294901760, %v5463_v25 }
 0x603   :  { %7254 = vmatpush3.msra.mxu1 %v9105_v38  ;;  %7212 = vmatprep.subr.mxu0 %v9793_v16  ;;  %v9796_v38 = vld [vmem:[#allocation32_spill] sm:$0xff] }
 0x604   :  { %7255 = vmatprep.subr.mxu1 %v9121_v32  ;;  %7213 = vmatpush3.msra.mxu0 %v9793_v16 }
 0x605   :  { %7256 = vmatpush3.msra.mxu1 %v9121_v32  ;;  %7214 = vmatprep.subr.mxu0 %v9794_v58  ;;  %v9797_v32 = vld [vmem:[#allocation31_spill] sm:$0xff] }
 0x606   :  { %7257 = vmatprep.subr.mxu1 %v9138_v4  ;;  %7215 = vmatpush3.msra.mxu0 %v9794_v58 }
 0x607   :  { %7258 = vmatpush3.msra.mxu1 %v9138_v4  ;;  %7216 = vmatprep.subr.mxu0 %v9795_v24  ;;  %v9798_v4 = vld [vmem:[#allocation35_spill] sm:$0xff] }
 0x608   :  { %7259 = vmatprep.subr.mxu1 %v9154_v30  ;;  %7217 = vmatpush3.msra.mxu0 %v9795_v24 }
 0x609   :  { %7260 = vmatpush3.msra.mxu1 %v9154_v30  ;;  %7218 = vmatprep.subr.mxu0 %v9796_v38  ;;  %v9800_v30 = vld [vmem:[#allocation43_spill] sm:$0xff] }
 0x60a   :  { %7261 = vmatprep.subr.mxu1 %v9165_v46  ;;  %7219 = vmatpush3.msra.mxu0 %v9796_v38 }
 0x60b   :  { %7262 = vmatpush3.msra.mxu1 %v9165_v46  ;;  %7220 = vmatprep.subr.mxu0 %v9797_v32  ;;  %v9801_v46 = vld [vmem:[#allocation17_spill] sm:$0xff] }
 0x60c   :  { %7263 = vmatprep.subr.mxu1 %v9180_v39  ;;  %7221 = vmatpush3.msra.mxu0 %v9797_v32 }
 0x60d   :  { %7264 = vmatpush3.msra.mxu1 %v9180_v39  ;;  %7222 = vmatprep.subr.mxu0 %v9798_v4  ;;  %v9803_v39 = vld [vmem:[#allocation10_spill] sm:$0xff] }
 0x60e   :  { %7265 = vmatprep.subr.mxu1 %v9196_v2  ;;  %7223 = vmatpush3.msra.mxu0 %v9798_v4 }
 0x60f   :  { %7266 = vmatpush3.msra.mxu1 %v9196_v2  ;;  %7224 = vmatprep.subr.mxu0 %v9799_v54  ;;  %v9804_v2 = vld [vmem:[#allocation42_spill] sm:$0xff] }
 0x610   :  { %7267 = vmatprep.subr.mxu1 %v9213_v1  ;;  %7225 = vmatpush3.msra.mxu0 %v9799_v54 }
 0x611   :  { %7268 = vmatpush3.msra.mxu1 %v9213_v1  ;;  %7226 = vmatprep.subr.mxu0 %v9800_v30  ;;  %v9805_v1 = vld [vmem:[#allocation46_spill] sm:$0xff] }
 0x612   :  { %7269 = vmatprep.subr.mxu1 %v9783_v10  ;;  %7227 = vmatpush3.msra.mxu0 %v9800_v30 }
 0x613   :  { %7270 = vmatpush3.msra.mxu1 %v9783_v10  ;;  %7228 = vmatprep.subr.mxu0 %v9801_v46 }
 0x614   :  { %7271 = vmatprep.subr.mxu1 %v9785_v21  ;;  %7229 = vmatpush3.msra.mxu0 %v9801_v46 }
 0x615   :  { %7272 = vmatpush3.msra.mxu1 %v9785_v21  ;;  %7230 = vmatprep.subr.mxu0 %v9802_v63 }
 0x616   :  { %7274 = vmatmul.mubr.f32.vlgmr.msra.gmra.mxu1 %v9270_v35  ;;  %7231 = vmatpush3.msra.mxu0 %v9802_v63 }
 0x617   :  { %7232 = vmatprep.subr.mxu0 %v9803_v39  ;;  %7283 = vmatprep.subr.mxu1 %v5457_v51 }
 0x618   :  { %7233 = vmatpush3.msra.mxu0 %v9803_v39  ;;  %7284 = vmatpush3.msra.mxu1 %v5457_v51 }
 0x619   :  { %7234 = vmatprep.subr.mxu0 %v9804_v2  ;;  %7285 = vmatprep.subr.mxu1 %v5464_v11 }
 0x61a   :  { %7235 = vmatpush3.msra.mxu0 %v9804_v2  ;;  %7286 = vmatpush3.msra.mxu1 %v5464_v11 }
 0x61b   :  { %7236 = vmatprep.subr.mxu0 %v9805_v1  ;;  %7297 = vmatprep.subr.mxu1 %v5366_v17 }
 0x61c   :  { %7237 = vmatpush3.msra.mxu0 %v9805_v1 }
 0x61d   :  { %7239 = vmatmul.mubr.f32.vlgmr.msra.gmra.mxu0 %v9270_v35  ;;  %7276 = vmatprep.subr.mxu0 %v5366_v17 }
 0x61e   :  { %7277 = vmatpush3.msra.mxu0 %v5366_v17 }
 0x61f   :  { %7278 = vmatprep.subr.mxu0 %v5369_v18 }
 0x620   :  { %7279 = vmatpush3.msra.mxu0 %v5369_v18 }
 0x621   :  { %7290 = vmatprep.subr.mxu0 %v5454_v57 }
 0x693   :  { %v7135_v7 = vpop.f32.mrf.mxu1 }
 0x695   :  { %v4861_v15 = vpop.f32.mrf.mxu1 }
 0x69b   :  { %v7100_v5 = vpop.f32.mrf.mxu0 }
 0x69c   :  { %v4711_v42 = vadd.f32 %v7100_v5, %v5910_v9 }
 0x69d   :  { %v4700_v6 = vpop.f32.mrf.mxu0 }
 0x69e   :  { %v4701_v50 = vadd.f32 %v5910_v9, %v4700_v6  ;;  %v4868_v19 = vadd.f32 %v7135_v7, %v4711_v42 }
 0x6a0   :  { %v4862_v3 = vadd.f32 %v4861_v15, %v4701_v50 }
 0x6b4   :  { %v7205_v47 = vpop.f32.mrf.mxu1 }
 0x6b6   :  { %v5067_v0 = vpop.f32.mrf.mxu1 }
 0x6bc   :  { %v7170_v44 = vpop.f32.mrf.mxu0 }
 0x6bd   :  { %v4979_v41 = vadd.f32 %v7170_v44, %v4868_v19 }
 0x6be   :  { %v4971_v49 = vpop.f32.mrf.mxu0 }
 0x6bf   :  { %v4972_v48 = vadd.f32 %v4971_v49, %v4862_v3  ;;  %v5076_v45 = vadd.f32 %v7205_v47, %v4979_v41  ;;  %v5911_v47 = vld [vmem:[%s9460_s5 + $0x38] ss:$0 sm:$0xff]  ;;  %v7354_v3 = vld [vmem:[%s9455_s0 + $0x8] sm:$0xff] }
 0x6c1   :  { %v5068_v60 = vadd.f32 %v5067_v0, %v4972_v48  ;;  %v7355_v0 = vld [vmem:[%s9455_s0] sm:$0xff] }
 0x6d6   :  { %v7275_v59 = vpop.f32.mrf.mxu1 }
 0x6d8   :  { %v5287_v62 = vpop.f32.mrf.mxu1 }
 0x6dd   :  { %v7240_v56 = vpop.f32.mrf.mxu0 }
 0x6de   :  { %v5201_v35 = vadd.f32 %v7240_v56, %v5076_v45 }
 0x6df   :  { %v5194_v23 = vpop.f32.mrf.mxu0 }
 0x6e0   :  { %v5195_v36 = vadd.f32 %v5194_v23, %v5068_v60  ;;  %v5294_v8 = vadd.f32 %v7275_v59, %v5201_v35 }
 0x6e2   :  { %v5288_v28 = vadd.f32 %v5287_v62, %v5195_v36 }
 0x6e4   :  { %5297 = vxpose.xlu0.b32.start [1/2] (short) (narrow) %v5288_v28, 16 }
 0x6e8   :  { %5298 = vxpose.xlu0.b32.end [2/2] (short) (narrow) %v5294_v8, 16  ;;  %v5912_v8 = vld [vmem:[%s9460_s5 + $0x40] ss:$0 sm:$0xff] }
 0x760   :  { %v5313_v55 = vpop.trf.xlu0 }
 0x761   :  { %v5332_v12 = vsel %vm563_vm3, %v5313_v55, 0  ;;  %v5913_v55 = vld [vmem:[%s9460_s5 + $0x48] ss:$0 sm:$0xff] }
 0x762   :  { %v5404_v31 = vand.u32 4294901760, %v5332_v12 }
 0x764   :  { %v5405_v13 = vsub.f32 %v5332_v12, %v5404_v31  ;;  %v5314_v10 = vpop.trf.xlu0  ;;  %7287 = vmatprep.mubr.f32.mxu1 %v5404_v31 }
 0x765   :  { %v5335_v40 = vsel %vm563_vm3, %v5314_v10, 0 }
 0x766   :  { %v5414_v21 = vand.u32 4294901760, %v5335_v40  ;;  %v5406_v22 = vand.u32 4294901760, %v5405_v13 }
 0x768   :  { %v5415_v14 = vsub.f32 %v5335_v40, %v5414_v21  ;;  %7288 = vmatmul.mubr.f32.vlgmr.msra.gmra.mxu1 %v5414_v21  ;;  %v5407_v20 = vsub.f32 %v5405_v13, %v5406_v22 }
 0x769   :  { %7298 = vmatpush3.msra.mxu1 %v5366_v17  ;;  %7301 = vmatprep.mubr.f32.mxu1 %v5406_v22 }
 0x76a   :  { %v5416_v33 = vand.u32 4294901760, %v5415_v14  ;;  %7299 = vmatprep.subr.mxu1 %v5369_v18  ;;  %v5408_v26 = vand.u32 4294901760, %v5407_v20 }
 0x76b   :  { %7300 = vmatpush3.msra.mxu1 %v5369_v18 }
 0x76c   :  { %v5417_v29 = vsub.f32 %v5415_v14, %v5416_v33  ;;  %7302 = vmatmul.mubr.f32.vlgmr.msra.gmra.mxu1 %v5416_v33  ;;  %7311 = vmatprep.subr.mxu1 %v5366_v17 }
 0x76d   :  { %7280 = vmatprep.mubr.f32.mxu0 %v5408_v26  ;;  %7312 = vmatpush3.msra.mxu1 %v5366_v17 }
 0x76e   :  { %v5418_v27 = vand.u32 4294901760, %v5417_v29  ;;  %7315 = vmatprep.mubr.f32.mxu1 %v5404_v31  ;;  %7313 = vmatprep.subr.mxu1 %v5369_v18 }
 0x76f   :  { %7314 = vmatpush3.msra.mxu1 %v5369_v18 }
 0x770   :  { %7281 = vmatmul.mubr.f32.vlgmr.msra.gmra.mxu0 %v5418_v27  ;;  %7316 = vmatmul.mubr.f32.vlgmr.msra.gmra.mxu1 %v5414_v21 }
 0x771   :  { %7291 = vmatpush3.msra.mxu0 %v5454_v57  ;;  %7294 = vmatprep.mubr.f32.mxu0 %v5405_v13 }
 0x772   :  { %7292 = vmatprep.subr.mxu0 %v5461_v43 }
 0x773   :  { %7293 = vmatpush3.msra.mxu0 %v5461_v43 }
 0x774   :  { %7295 = vmatmul.mubr.f32.vlgmr.msra.gmra.mxu0 %v5415_v14  ;;  %7304 = vmatprep.subr.mxu0 %v5455_v34 }
 0x775   :  { %7305 = vmatpush3.msra.mxu0 %v5455_v34  ;;  %7308 = vmatprep.mubr.f32.mxu0 %v5404_v31 }
 0x776   :  { %7306 = vmatprep.subr.mxu0 %v5462_v61 }
 0x777   :  { %7307 = vmatpush3.msra.mxu0 %v5462_v61 }
 0x778   :  { %7309 = vmatmul.mubr.f32.vlgmr.msra.gmra.mxu0 %v5414_v21 }
 0x828   :  { %v7289_v16 = vpop.f32.mrf.mxu1 }
 0x82a   :  { %v5501_v58 = vpop.f32.mrf.mxu1 }
 0x82c   :  { %v7303_v24 = vpop.f32.mrf.mxu1 }
 0x82e   :  { %v5665_v54 = vpop.f32.mrf.mxu1 }
 0x830   :  { %v7282_v38 = vpop.f32.mrf.mxu0  ;;  %v7317_v5 = vpop.f32.mrf.mxu1 }
 0x831   :  { %v5508_v4 = vadd.f32 %v7289_v16, %v7282_v38 }
 0x832   :  { %v5410_v32 = vpop.f32.mrf.mxu0  ;;  %v5829_v42 = vpop.f32.mrf.mxu1 }
 0x833   :  { %v5502_v46 = vadd.f32 %v5501_v58, %v5410_v32 }
 0x834   :  { %v7296_v30 = vpop.f32.mrf.mxu0 }
 0x835   :  { %v5591_v63 = vadd.f32 %v7296_v30, %v5508_v4 }
 0x836   :  { %v5583_v39 = vpop.f32.mrf.mxu0 }
 0x837   :  { %v5584_v2 = vadd.f32 %v5583_v39, %v5502_v46  ;;  %v5674_v1 = vadd.f32 %v7303_v24, %v5591_v63 }
 0x838   :  { %v7310_v7 = vpop.f32.mrf.mxu0 }
 0x839   :  { %v5757_v6 = vadd.f32 %v7310_v7, %v5674_v1  ;;  %v5666_v9 = vadd.f32 %v5665_v54, %v5584_v2 }
 0x83a   :  { %v5750_v44 = vpop.f32.mrf.mxu0 }
 0x83b   :  { %v5836_v50 = vadd.f32 %v7317_v5, %v5757_v6  ;;  %v5751_v15 = vadd.f32 %v5750_v44, %v5666_v9 }
 0x83d   :  { %v5830_v49 = vadd.f32 %v5829_v42, %v5751_v15  ;;  %v5840_v19 = vadd.f32 %v7354_v3, %v5836_v50 }
 0x83f   :  { %v5846_v48 = vadd.f32 %v5911_v47, %v5840_v19  ;;  %v5839_v37 = vadd.f32 %v7355_v0, %v5830_v49 }
 0x841   :  { %v5850_v41 = vsel %vm625_vm2, %v5846_v48, 0.0  ;;  %v5845_v17 = vadd.f32 %v5911_v47, %v5839_v37 }
 0x842   :  { %5851 = vadd.xlane.f32.xlu0 %v5850_v41 }
 0x843   :  { %v5847_v59 = vsel %vm625_vm2, %v5845_v17, 0.0 }
 0x844   :  { %5848 = vadd.xlane.f32.xlu1 %v5847_v59 }
 0x8cb   :  { %v5852_v56 = vpop.xlane.xlu0 %5851 }
 0x8cc   :  { %v5854_v52 = vmul.f32 0.03125, %v5852_v56 }
 0x8cd   :  { %v5849_v60 = vpop.xlane.xlu1 %5848 }
 0x8ce   :  { %v5853_v57 = vmul.f32 0.03125, %v5849_v60  ;;  %v5856_v18 = vsub.f32 %v5846_v48, %v5854_v52 }
 0x8d0   :  { %v5855_v23 = vsub.f32 %v5845_v17, %v5853_v57  ;;  %v5858_v34 = vmul.f32 %v5856_v18, %v5856_v18 }
 0x8d2   :  { %v5857_v45 = vmul.f32 %v5855_v23, %v5855_v23  ;;  %v5862_v43 = vsel %vm625_vm2, %v5858_v34, 0.0 }
 0x8d4   :  { %v5859_v36 = vsel %vm625_vm2, %v5857_v45, 0.0 }
 0x8d5   :  { %5860 = vadd.xlane.f32.xlu1 %v5859_v36 }
 0x8d9   :  { %5863 = vadd.xlane.f32.xlu1 %v5862_v43 }
 0x95e   :  { %v5861_v62 = vpop.xlane.xlu1 %5860 }
 0x95f   :  { %v5865_v35 = vmul.f32 0.03125, %v5861_v62 }
 0x961   :  { %v5867_v28 = vadd.f32 1e-05, %v5865_v35 }
 0x962   :  { %v5864_v53 = vpop.xlane.xlu1 %5863 }
 0x963   :  { %7350 = vrsqrt.f32 %v5867_v28  ;;  %v5866_v61 = vmul.f32 0.03125, %v5864_v53 }
 0x965   :  { %v5868_v51 = vadd.f32 1e-05, %v5866_v61 }
 0x967   :  { %7352 = vrsqrt.f32 %v5868_v51 }
 0x970   :  { %v7351_v25 = vpop.eup %7350 }
 0x971   :  { %v5871_v11 = vmul.f32 %v7351_v25, %v5855_v23 }
 0x973   :  { %v5877_v12 = vmul.f32 %v5912_v8, %v5871_v11 }
 0x974   :  { %v7353_v31 = vpop.eup %7352 }
 0x975   :  { %v5872_v13 = vmul.f32 %v7353_v31, %v5856_v18  ;;  %v5883_v10 = vadd.f32 %v5913_v55, %v5877_v12 }
 0x977   :  { %v5878_v40 = vmul.f32 %v5912_v8, %v5872_v13  ;;  %5885 = vst.msk [vmem:[#allocation5] sm:$0xff] %vm625_vm2, %v5883_v10 }
 0x979   :  { %v5884_v21 = vadd.f32 %v5913_v55, %v5878_v40 }
 0x97b   :  { %5886 = vst.msk [vmem:[#allocation5 + $0x8] sm:$0xff] %vm625_vm2, %v5884_v21 }
 0x97c   :  { %7387 = shalt.err (!%p7384_p9)
}
 0x97d   :  { %5898 = dma.vmem_to_hbm [thread:$0]  %s5893_s2, 256, %s9461_s6, [#allocation4], %s7401_s24, %s7401_s24, %s7402_s25  }
 0x97e   :  { %7398 = dma.done.wait [#allocation4], 256  }
 0x97f   :  { %7399 = vsyncadd [#allocation4], 4294967040 }
 0x980   :  { %5902 = vsyncpa [#allocation3], 1 }
 0x981   :  { %5903 = vsyncpa [#allocation4], 1 }

</bundles_post_ra>
